<compile_context>
chip_gen: v6e
topology: v6e:2x2x1
jax: 0.10.0
libtpu: 0.0.40
codegen_flags: <defaults>
</compile_context>

<pallas_src>
import math

import jax
import jax.numpy as jnp
from jax.experimental import pallas as pl
from jax.experimental.pallas import tpu as pltpu  # noqa: F401  (kept for future v7x core_map)

# ---------------- model hyper-parameters (small, consistent with the module) ----
B = 2            # batch
C_IN = 4         # in_channels
S = 16           # sequence length
D_MODEL = 64
NHEAD = 4
HEAD_DIM = D_MODEL // NHEAD
NUM_LAYERS = 2
D_FF = 128
NUM_CLASSES = 4
OUT_PAD = 128    # lane-dense padded logits width
MAX_LEN = 300
LN_EPS = 1e-5
M = B * S        # flattened token count


def _layer_norm(x, gamma, beta):
    mu = jnp.mean(x, axis=-1, keepdims=True)
    var = jnp.mean((x - mu) ** 2, axis=-1, keepdims=True)
    return (x - mu) * jax.lax.rsqrt(var + LN_EPS) * gamma + beta


def _transformer_kernel(x_ref, pe_ref, wp_ref, bp_ref,
                        wq_ref, bq_ref, wk_ref, bk_ref, wv_ref, bv_ref,
                        wo_ref, bo_ref,
                        g1_ref, be1_ref, w1_ref, b1_ref, w2_ref, b2_ref,
                        g2_ref, be2_ref,
                        wc1_ref, bc1_ref, wc2_ref, bc2_ref, pool_ref,
                        out_ref):
    # ----- input projection + positional encoding (whole flattened batch) -----
    h = jnp.dot(x_ref[...], wp_ref[...], preferred_element_type=jnp.float32)   # (M, D)
    h = h + bp_ref[...] + pe_ref[...]

    scale = 1.0 / math.sqrt(HEAD_DIM)

    # ----- transformer encoder layers (post-norm, relu FFN) -----
    for l in range(NUM_LAYERS):
        attn = None
        for hh in range(NHEAD):
            # per-head projections: leading-axis weight indexing, no lane slicing
            qh = jnp.dot(h, wq_ref[l, hh], preferred_element_type=jnp.float32) + bq_ref[l, hh]
            kh = jnp.dot(h, wk_ref[l, hh], preferred_element_type=jnp.float32) + bk_ref[l, hh]
            vh = jnp.dot(h, wv_ref[l, hh], preferred_element_type=jnp.float32) + bv_ref[l, hh]

            # split flattened tokens back into per-sample blocks (sublane-aligned,
            # last dim unchanged -> no lane movement), then batch over samples.
            q3 = qh.reshape(B, S, HEAD_DIM)
            k3 = kh.reshape(B, S, HEAD_DIM)
            v3 = vh.reshape(B, S, HEAD_DIM)

            # scores: contraction absorbs the "k^T" — no explicit XLU transpose
            s = jnp.einsum("bqc,bkc->bqk", q3, k3,
                           preferred_element_type=jnp.float32) * scale         # (B, S, S)
            s = s - jnp.max(s, axis=-1, keepdims=True)
            p = jnp.exp(s)
            p = p * pl.reciprocal(jnp.sum(p, axis=-1, keepdims=True), approx=True)

            o3 = jnp.einsum("bqk,bkc->bqc", p, v3,
                            preferred_element_type=jnp.float32)                # (B, S, hd)
            o = o3.reshape(M, HEAD_DIM)

            # fold Wo into the head loop: accumulate, no concatenate
            contrib = jnp.dot(o, wo_ref[l, hh], preferred_element_type=jnp.float32)
            attn = contrib if attn is None else attn + contrib
        attn = attn + bo_ref[l]

        h = _layer_norm(h + attn, g1_ref[l], be1_ref[l])

        ff = jnp.dot(h, w1_ref[l], preferred_element_type=jnp.float32) + b1_ref[l]
        ff = jnp.maximum(ff, 0.0)
        ff = jnp.dot(ff, w2_ref[l], preferred_element_type=jnp.float32) + b2_ref[l]

        h = _layer_norm(h + ff, g2_ref[l], be2_ref[l])

    # ----- mean pool over sequence (as a tiny matmul) + classifier head -----
    pooled = jnp.dot(pool_ref[...], h, preferred_element_type=jnp.float32)     # (B, D)
    c = jnp.dot(pooled, wc1_ref[...], preferred_element_type=jnp.float32) + bc1_ref[...]
    c = jnp.maximum(c, 0.0)
    logits = jnp.dot(c, wc2_ref[...], preferred_element_type=jnp.float32) + bc2_ref[...]
    out_ref[...] = logits                                                      # (B, 128) padded


def transformer_classifier_forward(x_bcs, params):
    """x_bcs: (B, C_in, S) like the PyTorch module. Returns (B, NUM_CLASSES)."""
    (pe, wp, bp, wq, bq, wk, bk, wv, bv, wo, bo,
     g1, be1, w1, b1, w2, b2, g2, be2, wc1, bc1, wc2, bc2) = params

    # glue (outside the kernel): flatten tokens, tile PE over batch, pad the logits
    # projection to a lane-dense 128-wide slab, and build the mean-pool matrix.
    x2 = jnp.transpose(x_bcs, (0, 2, 1)).reshape(M, C_IN).astype(jnp.float32)   # (B*S, C_in)
    pe_t = jnp.tile(pe, (B, 1))                                                 # (B*S, D)
    wc2p = jnp.zeros((D_FF, OUT_PAD), jnp.float32).at[:, :NUM_CLASSES].set(wc2)
    bc2p = jnp.zeros((1, OUT_PAD), jnp.float32).at[:, :NUM_CLASSES].set(bc2)
    pool = jnp.repeat(jnp.eye(B, dtype=jnp.float32), S, axis=1) / float(S)      # (B, B*S)

    out = pl.pallas_call(
        _transformer_kernel,
        out_shape=jax.ShapeDtypeStruct((B, OUT_PAD), jnp.float32),
    )(x2, pe_t, wp, bp, wq, bq, wk, bk, wv, bv, wo, bo,
      g1, be1, w1, b1, w2, b2, g2, be2, wc1, bc1, wc2p, bc2p, pool)
    return out[:, :NUM_CLASSES]


# ---------------- deterministic parameter construction (glue, plain JAX) --------
def make_params(key):
    ks = jax.random.split(key, 9)
    sc = 0.02

    # positional encoding (sinusoidal), sliced to seq length S
    position = jnp.arange(MAX_LEN, dtype=jnp.float32)[:, None]
    div_term = jnp.exp(jnp.arange(0, D_MODEL, 2, dtype=jnp.float32)
                       * (-math.log(10000.0) / D_MODEL))
    pe_full = jnp.zeros((MAX_LEN, D_MODEL), jnp.float32)
    pe_full = pe_full.at[:, 0::2].set(jnp.sin(position * div_term))
    pe_full = pe_full.at[:, 1::2].set(jnp.cos(position * div_term))
    pe = pe_full[:S]                                                            # (S, D)

    wp = sc * jax.random.normal(ks[0], (C_IN, D_MODEL), jnp.float32)
    bp = jnp.zeros((1, D_MODEL), jnp.float32)

    # attention weights stored per head on leading axes
    wq = sc * jax.random.normal(ks[1], (NUM_LAYERS, NHEAD, D_MODEL, HEAD_DIM), jnp.float32)
    wk = sc * jax.random.normal(ks[2], (NUM_LAYERS, NHEAD, D_MODEL, HEAD_DIM), jnp.float32)
    wv = sc * jax.random.normal(ks[3], (NUM_LAYERS, NHEAD, D_MODEL, HEAD_DIM), jnp.float32)
    bq = jnp.zeros((NUM_LAYERS, NHEAD, 1, HEAD_DIM), jnp.float32)
    bk = jnp.zeros((NUM_LAYERS, NHEAD, 1, HEAD_DIM), jnp.float32)
    bv = jnp.zeros((NUM_LAYERS, NHEAD, 1, HEAD_DIM), jnp.float32)
    wo = sc * jax.random.normal(ks[4], (NUM_LAYERS, NHEAD, HEAD_DIM, D_MODEL), jnp.float32)
    bo = jnp.zeros((NUM_LAYERS, 1, D_MODEL), jnp.float32)

    g1 = jnp.ones((NUM_LAYERS, 1, D_MODEL), jnp.float32)
    be1 = jnp.zeros((NUM_LAYERS, 1, D_MODEL), jnp.float32)
    w1 = sc * jax.random.normal(ks[5], (NUM_LAYERS, D_MODEL, D_FF), jnp.float32)
    b1 = jnp.zeros((NUM_LAYERS, 1, D_FF), jnp.float32)
    w2 = sc * jax.random.normal(ks[6], (NUM_LAYERS, D_FF, D_MODEL), jnp.float32)
    b2 = jnp.zeros((NUM_LAYERS, 1, D_MODEL), jnp.float32)
    g2 = jnp.ones((NUM_LAYERS, 1, D_MODEL), jnp.float32)
    be2 = jnp.zeros((NUM_LAYERS, 1, D_MODEL), jnp.float32)

    wc1 = sc * jax.random.normal(ks[7], (D_MODEL, D_FF), jnp.float32)
    bc1 = jnp.zeros((1, D_FF), jnp.float32)
    wc2 = sc * jax.random.normal(ks[8], (D_FF, NUM_CLASSES), jnp.float32)
    bc2 = jnp.zeros((1, NUM_CLASSES), jnp.float32)

    return (pe, wp, bp, wq, bq, wk, bk, wv, bv, wo, bo,
            g1, be1, w1, b1, w2, b2, g2, be2, wc1, bc1, wc2, bc2)


# ---------------- pure-JAX reference (same math) for sanity check ---------------
def reference_forward(x_bcs, params):
    (pe, wp, bp, wq, bq, wk, bk, wv, bv, wo, bo,
     g1, be1, w1, b1, w2, b2, g2, be2, wc1, bc1, wc2, bc2) = params
    x = jnp.transpose(x_bcs, (0, 2, 1)).astype(jnp.float32)            # (B, S, C)
    h = x @ wp + bp
    h = h + pe[None]
    scale = 1.0 / math.sqrt(HEAD_DIM)
    for l in range(NUM_LAYERS):
        qr = jnp.einsum("bsd,ndc->bnsc", h, wq[l]) + bq[l][None]
        kr = jnp.einsum("bsd,ndc->bnsc", h, wk[l]) + bk[l][None]
        vr = jnp.einsum("bsd,ndc->bnsc", h, wv[l]) + bv[l][None]
        s = jnp.einsum("bnic,bnjc->bnij", qr, kr) * scale
        p = jax.nn.softmax(s, axis=-1)
        o = jnp.einsum("bnij,bnjc->bnic", p, vr)
        attn = jnp.einsum("bnic,ncd->bid", o, wo[l]) + bo[l]
        h = _layer_norm(h + attn, g1[l], be1[l])
        ff = jax.nn.relu(h @ w1[l] + b1[l]) @ w2[l] + b2[l]
        h = _layer_norm(h + ff, g2[l], be2[l])
    pooled = jnp.mean(h, axis=1)
    return jax.nn.relu(pooled @ wc1 + bc1) @ wc2 + bc2


if __name__ == "__main__":
    key = jax.random.PRNGKey(0)
    k_x, k_p = jax.random.split(key)
    x = jax.random.normal(k_x, (B, C_IN, S), jnp.float32)              # (B, C_in, S)
    params = make_params(k_p)

    out = transformer_classifier_forward(x, params)
    out = jax.block_until_ready(out)

    ref = jax.block_until_ready(reference_forward(x, params))
    assert out.shape == (B, NUM_CLASSES)
    assert bool(jnp.all(jnp.isfinite(out)))
    assert bool(jnp.allclose(out, ref, rtol=1e-2, atol=1e-2)), (out, ref)

    print("KERNEL_OK")
</pallas_src>

<mosaic_0001>
module attributes {stable_mosaic.version = 11 : i64} {
  func.func @_transformer_kernel(%arg0: memref<32x4xf32, #tpu.memory_space<vmem>>, %arg1: memref<32x64xf32, #tpu.memory_space<vmem>>, %arg2: memref<4x64xf32, #tpu.memory_space<vmem>>, %arg3: memref<1x64xf32, #tpu.memory_space<vmem>>, %arg4: memref<2x4x64x16xf32, #tpu.memory_space<vmem>>, %arg5: memref<2x4x1x16xf32, #tpu.memory_space<vmem>>, %arg6: memref<2x4x64x16xf32, #tpu.memory_space<vmem>>, %arg7: memref<2x4x1x16xf32, #tpu.memory_space<vmem>>, %arg8: memref<2x4x64x16xf32, #tpu.memory_space<vmem>>, %arg9: memref<2x4x1x16xf32, #tpu.memory_space<vmem>>, %arg10: memref<2x4x16x64xf32, #tpu.memory_space<vmem>>, %arg11: memref<2x1x64xf32, #tpu.memory_space<vmem>>, %arg12: memref<2x1x64xf32, #tpu.memory_space<vmem>>, %arg13: memref<2x1x64xf32, #tpu.memory_space<vmem>>, %arg14: memref<2x64x128xf32, #tpu.memory_space<vmem>>, %arg15: memref<2x1x128xf32, #tpu.memory_space<vmem>>, %arg16: memref<2x128x64xf32, #tpu.memory_space<vmem>>, %arg17: memref<2x1x64xf32, #tpu.memory_space<vmem>>, %arg18: memref<2x1x64xf32, #tpu.memory_space<vmem>>, %arg19: memref<2x1x64xf32, #tpu.memory_space<vmem>>, %arg20: memref<64x128xf32, #tpu.memory_space<vmem>>, %arg21: memref<1x128xf32, #tpu.memory_space<vmem>>, %arg22: memref<128x128xf32, #tpu.memory_space<vmem>>, %arg23: memref<1x128xf32, #tpu.memory_space<vmem>>, %arg24: memref<2x32xf32, #tpu.memory_space<vmem>>, %arg25: memref<2x128xf32, #tpu.memory_space<vmem>>) attributes {dimension_semantics = [], scalar_prefetch = 0 : i64, scratch_operands = 0 : i64, tpu.core_type = #tpu.core_type<tc>} {
    %c0 = arith.constant 0 : index
    %c0_0 = arith.constant 0 : index
    %0 = vector.load %arg0[%c0, %c0_0] : memref<32x4xf32, #tpu.memory_space<vmem>>, vector<32x4xf32>
    %c0_1 = arith.constant 0 : index
    %c0_2 = arith.constant 0 : index
    %1 = vector.load %arg2[%c0_1, %c0_2] : memref<4x64xf32, #tpu.memory_space<vmem>>, vector<4x64xf32>
    %cst = arith.constant dense<0.000000e+00> : vector<32x64xf32>
    %2 = tpu.matmul %0, %1, %cst {dimension_numbers = #tpu.dot_dimension_numbers<[1], [0], [0], [1], [0, 0, 1, 1], [], []>} : vector<32x4xf32>, vector<4x64xf32>, vector<32x64xf32> -> vector<32x64xf32>
    %c0_3 = arith.constant 0 : index
    %c0_4 = arith.constant 0 : index
    %3 = vector.load %arg3[%c0_3, %c0_4] : memref<1x64xf32, #tpu.memory_space<vmem>>, vector<1x64xf32>
    %4 = vector.broadcast %3 : vector<1x64xf32> to vector<32x64xf32>
    %5 = arith.addf %2, %4 : vector<32x64xf32>
    %c0_5 = arith.constant 0 : index
    %c0_6 = arith.constant 0 : index
    %6 = vector.load %arg1[%c0_5, %c0_6] : memref<32x64xf32, #tpu.memory_space<vmem>>, vector<32x64xf32>
    %7 = arith.addf %5, %6 : vector<32x64xf32>
    %c0_7 = arith.constant 0 : index
    %c0_8 = arith.constant 0 : index
    %c0_9 = arith.constant 0 : index
    %c0_10 = arith.constant 0 : index
    %8 = vector.load %arg4[%c0_7, %c0_8, %c0_9, %c0_10] : memref<2x4x64x16xf32, #tpu.memory_space<vmem>>, vector<1x1x64x16xf32>
    %9 = vector.shape_cast %8 : vector<1x1x64x16xf32> to vector<64x16xf32>
    %cst_11 = arith.constant dense<0.000000e+00> : vector<32x16xf32>
    %10 = tpu.matmul %7, %9, %cst_11 {dimension_numbers = #tpu.dot_dimension_numbers<[1], [0], [0], [1], [0, 0, 1, 1], [], []>} : vector<32x64xf32>, vector<64x16xf32>, vector<32x16xf32> -> vector<32x16xf32>
    %c0_12 = arith.constant 0 : index
    %c0_13 = arith.constant 0 : index
    %c0_14 = arith.constant 0 : index
    %c0_15 = arith.constant 0 : index
    %11 = vector.load %arg5[%c0_12, %c0_13, %c0_14, %c0_15] : memref<2x4x1x16xf32, #tpu.memory_space<vmem>>, vector<1x1x1x16xf32>
    %12 = vector.shape_cast %11 : vector<1x1x1x16xf32> to vector<1x16xf32>
    %13 = vector.broadcast %12 : vector<1x16xf32> to vector<32x16xf32>
    %14 = arith.addf %10, %13 : vector<32x16xf32>
    %c0_16 = arith.constant 0 : index
    %c0_17 = arith.constant 0 : index
    %c0_18 = arith.constant 0 : index
    %c0_19 = arith.constant 0 : index
    %15 = vector.load %arg6[%c0_16, %c0_17, %c0_18, %c0_19] : memref<2x4x64x16xf32, #tpu.memory_space<vmem>>, vector<1x1x64x16xf32>
    %16 = vector.shape_cast %15 : vector<1x1x64x16xf32> to vector<64x16xf32>
    %cst_20 = arith.constant dense<0.000000e+00> : vector<32x16xf32>
    %17 = tpu.matmul %7, %16, %cst_20 {dimension_numbers = #tpu.dot_dimension_numbers<[1], [0], [0], [1], [0, 0, 1, 1], [], []>} : vector<32x64xf32>, vector<64x16xf32>, vector<32x16xf32> -> vector<32x16xf32>
    %c0_21 = arith.constant 0 : index
    %c0_22 = arith.constant 0 : index
    %c0_23 = arith.constant 0 : index
    %c0_24 = arith.constant 0 : index
    %18 = vector.load %arg7[%c0_21, %c0_22, %c0_23, %c0_24] : memref<2x4x1x16xf32, #tpu.memory_space<vmem>>, vector<1x1x1x16xf32>
    %19 = vector.shape_cast %18 : vector<1x1x1x16xf32> to vector<1x16xf32>
    %20 = vector.broadcast %19 : vector<1x16xf32> to vector<32x16xf32>
    %21 = arith.addf %17, %20 : vector<32x16xf32>
    %c0_25 = arith.constant 0 : index
    %c0_26 = arith.constant 0 : index
    %c0_27 = arith.constant 0 : index
    %c0_28 = arith.constant 0 : index
    %22 = vector.load %arg8[%c0_25, %c0_26, %c0_27, %c0_28] : memref<2x4x64x16xf32, #tpu.memory_space<vmem>>, vector<1x1x64x16xf32>
    %23 = vector.shape_cast %22 : vector<1x1x64x16xf32> to vector<64x16xf32>
    %cst_29 = arith.constant dense<0.000000e+00> : vector<32x16xf32>
    %24 = tpu.matmul %7, %23, %cst_29 {dimension_numbers = #tpu.dot_dimension_numbers<[1], [0], [0], [1], [0, 0, 1, 1], [], []>} : vector<32x64xf32>, vector<64x16xf32>, vector<32x16xf32> -> vector<32x16xf32>
    %c0_30 = arith.constant 0 : index
    %c0_31 = arith.constant 0 : index
    %c0_32 = arith.constant 0 : index
    %c0_33 = arith.constant 0 : index
    %25 = vector.load %arg9[%c0_30, %c0_31, %c0_32, %c0_33] : memref<2x4x1x16xf32, #tpu.memory_space<vmem>>, vector<1x1x1x16xf32>
    %26 = vector.shape_cast %25 : vector<1x1x1x16xf32> to vector<1x16xf32>
    %27 = vector.broadcast %26 : vector<1x16xf32> to vector<32x16xf32>
    %28 = arith.addf %24, %27 : vector<32x16xf32>
    %29 = vector.shape_cast %14 : vector<32x16xf32> to vector<2x16x16xf32>
    %30 = vector.shape_cast %21 : vector<32x16xf32> to vector<2x16x16xf32>
    %31 = vector.shape_cast %28 : vector<32x16xf32> to vector<2x16x16xf32>
    "tpu.trace_start"() <{level = 10 : i32, message = "bqc,bkc->bqk"}> : () -> ()
    %cst_34 = arith.constant dense<0.000000e+00> : vector<2x16x16xf32>
    %32 = tpu.matmul %29, %30, %cst_34 {dimension_numbers = #tpu.dot_dimension_numbers<[2], [2], [1], [1], [0, 0, 0, 1, 1, 1], [0], [0]>} : vector<2x16x16xf32>, vector<2x16x16xf32>, vector<2x16x16xf32> -> vector<2x16x16xf32>
    "tpu.trace_stop"() : () -> ()
    %cst_35 = arith.constant 2.500000e-01 : f32
    %33 = vector.broadcast %cst_35 : f32 to vector<2x16x16xf32>
    %34 = arith.mulf %32, %33 : vector<2x16x16xf32>
    %cst_36 = arith.constant dense<0xFF800000> : vector<2x16xf32>
    %35 = vector.multi_reduction <maximumf>, %34, %cst_36 [2] : vector<2x16x16xf32> to vector<2x16xf32>
    %36 = vector.shape_cast %35 : vector<2x16xf32> to vector<2x16x1xf32>
    %37 = vector.broadcast %36 : vector<2x16x1xf32> to vector<2x16x16xf32>
    %38 = arith.subf %34, %37 : vector<2x16x16xf32>
    %39 = math.exp %38 : vector<2x16x16xf32>
    %cst_37 = arith.constant dense<0.000000e+00> : vector<2x16xf32>
    %40 = vector.multi_reduction <add>, %39, %cst_37 [2] : vector<2x16x16xf32> to vector<2x16xf32>
    %41 = vector.shape_cast %40 : vector<2x16xf32> to vector<2x16x1xf32>
    %42 = tpu.reciprocal %41 {approx = true} : vector<2x16x1xf32> -> vector<2x16x1xf32>
    %43 = vector.broadcast %42 : vector<2x16x1xf32> to vector<2x16x16xf32>
    %44 = arith.mulf %39, %43 : vector<2x16x16xf32>
    "tpu.trace_start"() <{level = 10 : i32, message = "bqk,bkc->bqc"}> : () -> ()
    %cst_38 = arith.constant dense<0.000000e+00> : vector<2x16x16xf32>
    %45 = tpu.matmul %44, %31, %cst_38 {dimension_numbers = #tpu.dot_dimension_numbers<[2], [1], [1], [2], [0, 0, 0, 1, 1, 2], [0], [0]>} : vector<2x16x16xf32>, vector<2x16x16xf32>, vector<2x16x16xf32> -> vector<2x16x16xf32>
    "tpu.trace_stop"() : () -> ()
    %46 = vector.shape_cast %45 : vector<2x16x16xf32> to vector<32x16xf32>
    %c0_39 = arith.constant 0 : index
    %c0_40 = arith.constant 0 : index
    %c0_41 = arith.constant 0 : index
    %c0_42 = arith.constant 0 : index
    %47 = vector.load %arg10[%c0_39, %c0_40, %c0_41, %c0_42] : memref<2x4x16x64xf32, #tpu.memory_space<vmem>>, vector<1x1x16x64xf32>
    %48 = vector.shape_cast %47 : vector<1x1x16x64xf32> to vector<16x64xf32>
    %cst_43 = arith.constant dense<0.000000e+00> : vector<32x64xf32>
    %49 = tpu.matmul %46, %48, %cst_43 {dimension_numbers = #tpu.dot_dimension_numbers<[1], [0], [0], [1], [0, 0, 1, 1], [], []>} : vector<32x16xf32>, vector<16x64xf32>, vector<32x64xf32> -> vector<32x64xf32>
    %c0_44 = arith.constant 0 : index
    %c1 = arith.constant 1 : index
    %c0_45 = arith.constant 0 : index
    %c0_46 = arith.constant 0 : index
    %50 = vector.load %arg4[%c0_44, %c1, %c0_45, %c0_46] : memref<2x4x64x16xf32, #tpu.memory_space<vmem>>, vector<1x1x64x16xf32>
    %51 = vector.shape_cast %50 : vector<1x1x64x16xf32> to vector<64x16xf32>
    %cst_47 = arith.constant dense<0.000000e+00> : vector<32x16xf32>
    %52 = tpu.matmul %7, %51, %cst_47 {dimension_numbers = #tpu.dot_dimension_numbers<[1], [0], [0], [1], [0, 0, 1, 1], [], []>} : vector<32x64xf32>, vector<64x16xf32>, vector<32x16xf32> -> vector<32x16xf32>
    %c0_48 = arith.constant 0 : index
    %c1_49 = arith.constant 1 : index
    %c0_50 = arith.constant 0 : index
    %c0_51 = arith.constant 0 : index
    %53 = vector.load %arg5[%c0_48, %c1_49, %c0_50, %c0_51] : memref<2x4x1x16xf32, #tpu.memory_space<vmem>>, vector<1x1x1x16xf32>
    %54 = vector.shape_cast %53 : vector<1x1x1x16xf32> to vector<1x16xf32>
    %55 = vector.broadcast %54 : vector<1x16xf32> to vector<32x16xf32>
    %56 = arith.addf %52, %55 : vector<32x16xf32>
    %c0_52 = arith.constant 0 : index
    %c1_53 = arith.constant 1 : index
    %c0_54 = arith.constant 0 : index
    %c0_55 = arith.constant 0 : index
    %57 = vector.load %arg6[%c0_52, %c1_53, %c0_54, %c0_55] : memref<2x4x64x16xf32, #tpu.memory_space<vmem>>, vector<1x1x64x16xf32>
    %58 = vector.shape_cast %57 : vector<1x1x64x16xf32> to vector<64x16xf32>
    %cst_56 = arith.constant dense<0.000000e+00> : vector<32x16xf32>
    %59 = tpu.matmul %7, %58, %cst_56 {dimension_numbers = #tpu.dot_dimension_numbers<[1], [0], [0], [1], [0, 0, 1, 1], [], []>} : vector<32x64xf32>, vector<64x16xf32>, vector<32x16xf32> -> vector<32x16xf32>
    %c0_57 = arith.constant 0 : index
    %c1_58 = arith.constant 1 : index
    %c0_59 = arith.constant 0 : index
    %c0_60 = arith.constant 0 : index
    %60 = vector.load %arg7[%c0_57, %c1_58, %c0_59, %c0_60] : memref<2x4x1x16xf32, #tpu.memory_space<vmem>>, vector<1x1x1x16xf32>
    %61 = vector.shape_cast %60 : vector<1x1x1x16xf32> to vector<1x16xf32>
    %62 = vector.broadcast %61 : vector<1x16xf32> to vector<32x16xf32>
    %63 = arith.addf %59, %62 : vector<32x16xf32>
    %c0_61 = arith.constant 0 : index
    %c1_62 = arith.constant 1 : index
    %c0_63 = arith.constant 0 : index
    %c0_64 = arith.constant 0 : index
    %64 = vector.load %arg8[%c0_61, %c1_62, %c0_63, %c0_64] : memref<2x4x64x16xf32, #tpu.memory_space<vmem>>, vector<1x1x64x16xf32>
    %65 = vector.shape_cast %64 : vector<1x1x64x16xf32> to vector<64x16xf32>
    %cst_65 = arith.constant dense<0.000000e+00> : vector<32x16xf32>
    %66 = tpu.matmul %7, %65, %cst_65 {dimension_numbers = #tpu.dot_dimension_numbers<[1], [0], [0], [1], [0, 0, 1, 1], [], []>} : vector<32x64xf32>, vector<64x16xf32>, vector<32x16xf32> -> vector<32x16xf32>
    %c0_66 = arith.constant 0 : index
    %c1_67 = arith.constant 1 : index
    %c0_68 = arith.constant 0 : index
    %c0_69 = arith.constant 0 : index
    %67 = vector.load %arg9[%c0_66, %c1_67, %c0_68, %c0_69] : memref<2x4x1x16xf32, #tpu.memory_space<vmem>>, vector<1x1x1x16xf32>
    %68 = vector.shape_cast %67 : vector<1x1x1x16xf32> to vector<1x16xf32>
    %69 = vector.broadcast %68 : vector<1x16xf32> to vector<32x16xf32>
    %70 = arith.addf %66, %69 : vector<32x16xf32>
    %71 = vector.shape_cast %56 : vector<32x16xf32> to vector<2x16x16xf32>
    %72 = vector.shape_cast %63 : vector<32x16xf32> to vector<2x16x16xf32>
    %73 = vector.shape_cast %70 : vector<32x16xf32> to vector<2x16x16xf32>
    "tpu.trace_start"() <{level = 10 : i32, message = "bqc,bkc->bqk"}> : () -> ()
    %cst_70 = arith.constant dense<0.000000e+00> : vector<2x16x16xf32>
    %74 = tpu.matmul %71, %72, %cst_70 {dimension_numbers = #tpu.dot_dimension_numbers<[2], [2], [1], [1], [0, 0, 0, 1, 1, 1], [0], [0]>} : vector<2x16x16xf32>, vector<2x16x16xf32>, vector<2x16x16xf32> -> vector<2x16x16xf32>
    "tpu.trace_stop"() : () -> ()
    %cst_71 = arith.constant 2.500000e-01 : f32
    %75 = vector.broadcast %cst_71 : f32 to vector<2x16x16xf32>
    %76 = arith.mulf %74, %75 : vector<2x16x16xf32>
    %cst_72 = arith.constant dense<0xFF800000> : vector<2x16xf32>
    %77 = vector.multi_reduction <maximumf>, %76, %cst_72 [2] : vector<2x16x16xf32> to vector<2x16xf32>
    %78 = vector.shape_cast %77 : vector<2x16xf32> to vector<2x16x1xf32>
    %79 = vector.broadcast %78 : vector<2x16x1xf32> to vector<2x16x16xf32>
    %80 = arith.subf %76, %79 : vector<2x16x16xf32>
    %81 = math.exp %80 : vector<2x16x16xf32>
    %cst_73 = arith.constant dense<0.000000e+00> : vector<2x16xf32>
    %82 = vector.multi_reduction <add>, %81, %cst_73 [2] : vector<2x16x16xf32> to vector<2x16xf32>
    %83 = vector.shape_cast %82 : vector<2x16xf32> to vector<2x16x1xf32>
    %84 = tpu.reciprocal %83 {approx = true} : vector<2x16x1xf32> -> vector<2x16x1xf32>
    %85 = vector.broadcast %84 : vector<2x16x1xf32> to vector<2x16x16xf32>
    %86 = arith.mulf %81, %85 : vector<2x16x16xf32>
    "tpu.trace_start"() <{level = 10 : i32, message = "bqk,bkc->bqc"}> : () -> ()
    %cst_74 = arith.constant dense<0.000000e+00> : vector<2x16x16xf32>
    %87 = tpu.matmul %86, %73, %cst_74 {dimension_numbers = #tpu.dot_dimension_numbers<[2], [1], [1], [2], [0, 0, 0, 1, 1, 2], [0], [0]>} : vector<2x16x16xf32>, vector<2x16x16xf32>, vector<2x16x16xf32> -> vector<2x16x16xf32>
    "tpu.trace_stop"() : () -> ()
    %88 = vector.shape_cast %87 : vector<2x16x16xf32> to vector<32x16xf32>
    %c0_75 = arith.constant 0 : index
    %c1_76 = arith.constant 1 : index
    %c0_77 = arith.constant 0 : index
    %c0_78 = arith.constant 0 : index
    %89 = vector.load %arg10[%c0_75, %c1_76, %c0_77, %c0_78] : memref<2x4x16x64xf32, #tpu.memory_space<vmem>>, vector<1x1x16x64xf32>
    %90 = vector.shape_cast %89 : vector<1x1x16x64xf32> to vector<16x64xf32>
    %cst_79 = arith.constant dense<0.000000e+00> : vector<32x64xf32>
    %91 = tpu.matmul %88, %90, %cst_79 {dimension_numbers = #tpu.dot_dimension_numbers<[1], [0], [0], [1], [0, 0, 1, 1], [], []>} : vector<32x16xf32>, vector<16x64xf32>, vector<32x64xf32> -> vector<32x64xf32>
    %92 = arith.addf %49, %91 : vector<32x64xf32>
    %c0_80 = arith.constant 0 : index
    %c2 = arith.constant 2 : index
    %c0_81 = arith.constant 0 : index
    %c0_82 = arith.constant 0 : index
    %93 = vector.load %arg4[%c0_80, %c2, %c0_81, %c0_82] : memref<2x4x64x16xf32, #tpu.memory_space<vmem>>, vector<1x1x64x16xf32>
    %94 = vector.shape_cast %93 : vector<1x1x64x16xf32> to vector<64x16xf32>
    %cst_83 = arith.constant dense<0.000000e+00> : vector<32x16xf32>
    %95 = tpu.matmul %7, %94, %cst_83 {dimension_numbers = #tpu.dot_dimension_numbers<[1], [0], [0], [1], [0, 0, 1, 1], [], []>} : vector<32x64xf32>, vector<64x16xf32>, vector<32x16xf32> -> vector<32x16xf32>
    %c0_84 = arith.constant 0 : index
    %c2_85 = arith.constant 2 : index
    %c0_86 = arith.constant 0 : index
    %c0_87 = arith.constant 0 : index
    %96 = vector.load %arg5[%c0_84, %c2_85, %c0_86, %c0_87] : memref<2x4x1x16xf32, #tpu.memory_space<vmem>>, vector<1x1x1x16xf32>
    %97 = vector.shape_cast %96 : vector<1x1x1x16xf32> to vector<1x16xf32>
    %98 = vector.broadcast %97 : vector<1x16xf32> to vector<32x16xf32>
    %99 = arith.addf %95, %98 : vector<32x16xf32>
    %c0_88 = arith.constant 0 : index
    %c2_89 = arith.constant 2 : index
    %c0_90 = arith.constant 0 : index
    %c0_91 = arith.constant 0 : index
    %100 = vector.load %arg6[%c0_88, %c2_89, %c0_90, %c0_91] : memref<2x4x64x16xf32, #tpu.memory_space<vmem>>, vector<1x1x64x16xf32>
    %101 = vector.shape_cast %100 : vector<1x1x64x16xf32> to vector<64x16xf32>
    %cst_92 = arith.constant dense<0.000000e+00> : vector<32x16xf32>
    %102 = tpu.matmul %7, %101, %cst_92 {dimension_numbers = #tpu.dot_dimension_numbers<[1], [0], [0], [1], [0, 0, 1, 1], [], []>} : vector<32x64xf32>, vector<64x16xf32>, vector<32x16xf32> -> vector<32x16xf32>
    %c0_93 = arith.constant 0 : index
    %c2_94 = arith.constant 2 : index
    %c0_95 = arith.constant 0 : index
    %c0_96 = arith.constant 0 : index
    %103 = vector.load %arg7[%c0_93, %c2_94, %c0_95, %c0_96] : memref<2x4x1x16xf32, #tpu.memory_space<vmem>>, vector<1x1x1x16xf32>
    %104 = vector.shape_cast %103 : vector<1x1x1x16xf32> to vector<1x16xf32>
    %105 = vector.broadcast %104 : vector<1x16xf32> to vector<32x16xf32>
    %106 = arith.addf %102, %105 : vector<32x16xf32>
    %c0_97 = arith.constant 0 : index
    %c2_98 = arith.constant 2 : index
    %c0_99 = arith.constant 0 : index
    %c0_100 = arith.constant 0 : index
    %107 = vector.load %arg8[%c0_97, %c2_98, %c0_99, %c0_100] : memref<2x4x64x16xf32, #tpu.memory_space<vmem>>, vector<1x1x64x16xf32>
    %108 = vector.shape_cast %107 : vector<1x1x64x16xf32> to vector<64x16xf32>
    %cst_101 = arith.constant dense<0.000000e+00> : vector<32x16xf32>
    %109 = tpu.matmul %7, %108, %cst_101 {dimension_numbers = #tpu.dot_dimension_numbers<[1], [0], [0], [1], [0, 0, 1, 1], [], []>} : vector<32x64xf32>, vector<64x16xf32>, vector<32x16xf32> -> vector<32x16xf32>
    %c0_102 = arith.constant 0 : index
    %c2_103 = arith.constant 2 : index
    %c0_104 = arith.constant 0 : index
    %c0_105 = arith.constant 0 : index
    %110 = vector.load %arg9[%c0_102, %c2_103, %c0_104, %c0_105] : memref<2x4x1x16xf32, #tpu.memory_space<vmem>>, vector<1x1x1x16xf32>
    %111 = vector.shape_cast %110 : vector<1x1x1x16xf32> to vector<1x16xf32>
    %112 = vector.broadcast %111 : vector<1x16xf32> to vector<32x16xf32>
    %113 = arith.addf %109, %112 : vector<32x16xf32>
    %114 = vector.shape_cast %99 : vector<32x16xf32> to vector<2x16x16xf32>
    %115 = vector.shape_cast %106 : vector<32x16xf32> to vector<2x16x16xf32>
    %116 = vector.shape_cast %113 : vector<32x16xf32> to vector<2x16x16xf32>
    "tpu.trace_start"() <{level = 10 : i32, message = "bqc,bkc->bqk"}> : () -> ()
    %cst_106 = arith.constant dense<0.000000e+00> : vector<2x16x16xf32>
    %117 = tpu.matmul %114, %115, %cst_106 {dimension_numbers = #tpu.dot_dimension_numbers<[2], [2], [1], [1], [0, 0, 0, 1, 1, 1], [0], [0]>} : vector<2x16x16xf32>, vector<2x16x16xf32>, vector<2x16x16xf32> -> vector<2x16x16xf32>
    "tpu.trace_stop"() : () -> ()
    %cst_107 = arith.constant 2.500000e-01 : f32
    %118 = vector.broadcast %cst_107 : f32 to vector<2x16x16xf32>
    %119 = arith.mulf %117, %118 : vector<2x16x16xf32>
    %cst_108 = arith.constant dense<0xFF800000> : vector<2x16xf32>
    %120 = vector.multi_reduction <maximumf>, %119, %cst_108 [2] : vector<2x16x16xf32> to vector<2x16xf32>
    %121 = vector.shape_cast %120 : vector<2x16xf32> to vector<2x16x1xf32>
    %122 = vector.broadcast %121 : vector<2x16x1xf32> to vector<2x16x16xf32>
    %123 = arith.subf %119, %122 : vector<2x16x16xf32>
    %124 = math.exp %123 : vector<2x16x16xf32>
    %cst_109 = arith.constant dense<0.000000e+00> : vector<2x16xf32>
    %125 = vector.multi_reduction <add>, %124, %cst_109 [2] : vector<2x16x16xf32> to vector<2x16xf32>
    %126 = vector.shape_cast %125 : vector<2x16xf32> to vector<2x16x1xf32>
    %127 = tpu.reciprocal %126 {approx = true} : vector<2x16x1xf32> -> vector<2x16x1xf32>
    %128 = vector.broadcast %127 : vector<2x16x1xf32> to vector<2x16x16xf32>
    %129 = arith.mulf %124, %128 : vector<2x16x16xf32>
    "tpu.trace_start"() <{level = 10 : i32, message = "bqk,bkc->bqc"}> : () -> ()
    %cst_110 = arith.constant dense<0.000000e+00> : vector<2x16x16xf32>
    %130 = tpu.matmul %129, %116, %cst_110 {dimension_numbers = #tpu.dot_dimension_numbers<[2], [1], [1], [2], [0, 0, 0, 1, 1, 2], [0], [0]>} : vector<2x16x16xf32>, vector<2x16x16xf32>, vector<2x16x16xf32> -> vector<2x16x16xf32>
    "tpu.trace_stop"() : () -> ()
    %131 = vector.shape_cast %130 : vector<2x16x16xf32> to vector<32x16xf32>
    %c0_111 = arith.constant 0 : index
    %c2_112 = arith.constant 2 : index
    %c0_113 = arith.constant 0 : index
    %c0_114 = arith.constant 0 : index
    %132 = vector.load %arg10[%c0_111, %c2_112, %c0_113, %c0_114] : memref<2x4x16x64xf32, #tpu.memory_space<vmem>>, vector<1x1x16x64xf32>
    %133 = vector.shape_cast %132 : vector<1x1x16x64xf32> to vector<16x64xf32>
    %cst_115 = arith.constant dense<0.000000e+00> : vector<32x64xf32>
    %134 = tpu.matmul %131, %133, %cst_115 {dimension_numbers = #tpu.dot_dimension_numbers<[1], [0], [0], [1], [0, 0, 1, 1], [], []>} : vector<32x16xf32>, vector<16x64xf32>, vector<32x64xf32> -> vector<32x64xf32>
    %135 = arith.addf %92, %134 : vector<32x64xf32>
    %c0_116 = arith.constant 0 : index
    %c3 = arith.constant 3 : index
    %c0_117 = arith.constant 0 : index
    %c0_118 = arith.constant 0 : index
    %136 = vector.load %arg4[%c0_116, %c3, %c0_117, %c0_118] : memref<2x4x64x16xf32, #tpu.memory_space<vmem>>, vector<1x1x64x16xf32>
    %137 = vector.shape_cast %136 : vector<1x1x64x16xf32> to vector<64x16xf32>
    %cst_119 = arith.constant dense<0.000000e+00> : vector<32x16xf32>
    %138 = tpu.matmul %7, %137, %cst_119 {dimension_numbers = #tpu.dot_dimension_numbers<[1], [0], [0], [1], [0, 0, 1, 1], [], []>} : vector<32x64xf32>, vector<64x16xf32>, vector<32x16xf32> -> vector<32x16xf32>
    %c0_120 = arith.constant 0 : index
    %c3_121 = arith.constant 3 : index
    %c0_122 = arith.constant 0 : index
    %c0_123 = arith.constant 0 : index
    %139 = vector.load %arg5[%c0_120, %c3_121, %c0_122, %c0_123] : memref<2x4x1x16xf32, #tpu.memory_space<vmem>>, vector<1x1x1x16xf32>
    %140 = vector.shape_cast %139 : vector<1x1x1x16xf32> to vector<1x16xf32>
    %141 = vector.broadcast %140 : vector<1x16xf32> to vector<32x16xf32>
    %142 = arith.addf %138, %141 : vector<32x16xf32>
    %c0_124 = arith.constant 0 : index
    %c3_125 = arith.constant 3 : index
    %c0_126 = arith.constant 0 : index
    %c0_127 = arith.constant 0 : index
    %143 = vector.load %arg6[%c0_124, %c3_125, %c0_126, %c0_127] : memref<2x4x64x16xf32, #tpu.memory_space<vmem>>, vector<1x1x64x16xf32>
    %144 = vector.shape_cast %143 : vector<1x1x64x16xf32> to vector<64x16xf32>
    %cst_128 = arith.constant dense<0.000000e+00> : vector<32x16xf32>
    %145 = tpu.matmul %7, %144, %cst_128 {dimension_numbers = #tpu.dot_dimension_numbers<[1], [0], [0], [1], [0, 0, 1, 1], [], []>} : vector<32x64xf32>, vector<64x16xf32>, vector<32x16xf32> -> vector<32x16xf32>
    %c0_129 = arith.constant 0 : index
    %c3_130 = arith.constant 3 : index
    %c0_131 = arith.constant 0 : index
    %c0_132 = arith.constant 0 : index
    %146 = vector.load %arg7[%c0_129, %c3_130, %c0_131, %c0_132] : memref<2x4x1x16xf32, #tpu.memory_space<vmem>>, vector<1x1x1x16xf32>
    %147 = vector.shape_cast %146 : vector<1x1x1x16xf32> to vector<1x16xf32>
    %148 = vector.broadcast %147 : vector<1x16xf32> to vector<32x16xf32>
    %149 = arith.addf %145, %148 : vector<32x16xf32>
    %c0_133 = arith.constant 0 : index
    %c3_134 = arith.constant 3 : index
    %c0_135 = arith.constant 0 : index
    %c0_136 = arith.constant 0 : index
    %150 = vector.load %arg8[%c0_133, %c3_134, %c0_135, %c0_136] : memref<2x4x64x16xf32, #tpu.memory_space<vmem>>, vector<1x1x64x16xf32>
    %151 = vector.shape_cast %150 : vector<1x1x64x16xf32> to vector<64x16xf32>
    %cst_137 = arith.constant dense<0.000000e+00> : vector<32x16xf32>
    %152 = tpu.matmul %7, %151, %cst_137 {dimension_numbers = #tpu.dot_dimension_numbers<[1], [0], [0], [1], [0, 0, 1, 1], [], []>} : vector<32x64xf32>, vector<64x16xf32>, vector<32x16xf32> -> vector<32x16xf32>
    %c0_138 = arith.constant 0 : index
    %c3_139 = arith.constant 3 : index
    %c0_140 = arith.constant 0 : index
    %c0_141 = arith.constant 0 : index
    %153 = vector.load %arg9[%c0_138, %c3_139, %c0_140, %c0_141] : memref<2x4x1x16xf32, #tpu.memory_space<vmem>>, vector<1x1x1x16xf32>
    %154 = vector.shape_cast %153 : vector<1x1x1x16xf32> to vector<1x16xf32>
    %155 = vector.broadcast %154 : vector<1x16xf32> to vector<32x16xf32>
    %156 = arith.addf %152, %155 : vector<32x16xf32>
    %157 = vector.shape_cast %142 : vector<32x16xf32> to vector<2x16x16xf32>
    %158 = vector.shape_cast %149 : vector<32x16xf32> to vector<2x16x16xf32>
    %159 = vector.shape_cast %156 : vector<32x16xf32> to vector<2x16x16xf32>
    "tpu.trace_start"() <{level = 10 : i32, message = "bqc,bkc->bqk"}> : () -> ()
    %cst_142 = arith.constant dense<0.000000e+00> : vector<2x16x16xf32>
    %160 = tpu.matmul %157, %158, %cst_142 {dimension_numbers = #tpu.dot_dimension_numbers<[2], [2], [1], [1], [0, 0, 0, 1, 1, 1], [0], [0]>} : vector<2x16x16xf32>, vector<2x16x16xf32>, vector<2x16x16xf32> -> vector<2x16x16xf32>
    "tpu.trace_stop"() : () -> ()
    %cst_143 = arith.constant 2.500000e-01 : f32
    %161 = vector.broadcast %cst_143 : f32 to vector<2x16x16xf32>
    %162 = arith.mulf %160, %161 : vector<2x16x16xf32>
    %cst_144 = arith.constant dense<0xFF800000> : vector<2x16xf32>
    %163 = vector.multi_reduction <maximumf>, %162, %cst_144 [2] : vector<2x16x16xf32> to vector<2x16xf32>
    %164 = vector.shape_cast %163 : vector<2x16xf32> to vector<2x16x1xf32>
    %165 = vector.broadcast %164 : vector<2x16x1xf32> to vector<2x16x16xf32>
    %166 = arith.subf %162, %165 : vector<2x16x16xf32>
    %167 = math.exp %166 : vector<2x16x16xf32>
    %cst_145 = arith.constant dense<0.000000e+00> : vector<2x16xf32>
    %168 = vector.multi_reduction <add>, %167, %cst_145 [2] : vector<2x16x16xf32> to vector<2x16xf32>
    %169 = vector.shape_cast %168 : vector<2x16xf32> to vector<2x16x1xf32>
    %170 = tpu.reciprocal %169 {approx = true} : vector<2x16x1xf32> -> vector<2x16x1xf32>
    %171 = vector.broadcast %170 : vector<2x16x1xf32> to vector<2x16x16xf32>
    %172 = arith.mulf %167, %171 : vector<2x16x16xf32>
    "tpu.trace_start"() <{level = 10 : i32, message = "bqk,bkc->bqc"}> : () -> ()
    %cst_146 = arith.constant dense<0.000000e+00> : vector<2x16x16xf32>
    %173 = tpu.matmul %172, %159, %cst_146 {dimension_numbers = #tpu.dot_dimension_numbers<[2], [1], [1], [2], [0, 0, 0, 1, 1, 2], [0], [0]>} : vector<2x16x16xf32>, vector<2x16x16xf32>, vector<2x16x16xf32> -> vector<2x16x16xf32>
    "tpu.trace_stop"() : () -> ()
    %174 = vector.shape_cast %173 : vector<2x16x16xf32> to vector<32x16xf32>
    %c0_147 = arith.constant 0 : index
    %c3_148 = arith.constant 3 : index
    %c0_149 = arith.constant 0 : index
    %c0_150 = arith.constant 0 : index
    %175 = vector.load %arg10[%c0_147, %c3_148, %c0_149, %c0_150] : memref<2x4x16x64xf32, #tpu.memory_space<vmem>>, vector<1x1x16x64xf32>
    %176 = vector.shape_cast %175 : vector<1x1x16x64xf32> to vector<16x64xf32>
    %cst_151 = arith.constant dense<0.000000e+00> : vector<32x64xf32>
    %177 = tpu.matmul %174, %176, %cst_151 {dimension_numbers = #tpu.dot_dimension_numbers<[1], [0], [0], [1], [0, 0, 1, 1], [], []>} : vector<32x16xf32>, vector<16x64xf32>, vector<32x64xf32> -> vector<32x64xf32>
    %178 = arith.addf %135, %177 : vector<32x64xf32>
    %c0_152 = arith.constant 0 : index
    %c0_153 = arith.constant 0 : index
    %c0_154 = arith.constant 0 : index
    %179 = vector.load %arg11[%c0_152, %c0_153, %c0_154] : memref<2x1x64xf32, #tpu.memory_space<vmem>>, vector<1x1x64xf32>
    %180 = vector.shape_cast %179 : vector<1x1x64xf32> to vector<1x64xf32>
    %181 = vector.broadcast %180 : vector<1x64xf32> to vector<32x64xf32>
    %182 = arith.addf %178, %181 : vector<32x64xf32>
    %183 = arith.addf %7, %182 : vector<32x64xf32>
    %c0_155 = arith.constant 0 : index
    %c0_156 = arith.constant 0 : index
    %c0_157 = arith.constant 0 : index
    %184 = vector.load %arg12[%c0_155, %c0_156, %c0_157] : memref<2x1x64xf32, #tpu.memory_space<vmem>>, vector<1x1x64xf32>
    %185 = vector.shape_cast %184 : vector<1x1x64xf32> to vector<1x64xf32>
    %c0_158 = arith.constant 0 : index
    %c0_159 = arith.constant 0 : index
    %c0_160 = arith.constant 0 : index
    %186 = vector.load %arg13[%c0_158, %c0_159, %c0_160] : memref<2x1x64xf32, #tpu.memory_space<vmem>>, vector<1x1x64xf32>
    %187 = vector.shape_cast %186 : vector<1x1x64xf32> to vector<1x64xf32>
    %cst_161 = arith.constant dense<0.000000e+00> : vector<32xf32>
    %188 = vector.multi_reduction <add>, %183, %cst_161 [1] : vector<32x64xf32> to vector<32xf32>
    %189 = vector.shape_cast %188 : vector<32xf32> to vector<32x1xf32>
    %cst_162 = arith.constant 6.400000e+01 : f32
    %190 = vector.broadcast %cst_162 : f32 to vector<32x1xf32>
    %191 = arith.divf %189, %190 : vector<32x1xf32>
    %192 = vector.broadcast %191 : vector<32x1xf32> to vector<32x64xf32>
    %193 = arith.subf %183, %192 : vector<32x64xf32>
    %194 = arith.mulf %193, %193 : vector<32x64xf32>
    %cst_163 = arith.constant dense<0.000000e+00> : vector<32xf32>
    %195 = vector.multi_reduction <add>, %194, %cst_163 [1] : vector<32x64xf32> to vector<32xf32>
    %196 = vector.shape_cast %195 : vector<32xf32> to vector<32x1xf32>
    %cst_164 = arith.constant 6.400000e+01 : f32
    %197 = vector.broadcast %cst_164 : f32 to vector<32x1xf32>
    %198 = arith.divf %196, %197 : vector<32x1xf32>
    %199 = vector.broadcast %191 : vector<32x1xf32> to vector<32x64xf32>
    %200 = arith.subf %183, %199 : vector<32x64xf32>
    %cst_165 = arith.constant 9.99999974E-6 : f32
    %201 = vector.broadcast %cst_165 : f32 to vector<32x1xf32>
    %202 = arith.addf %198, %201 : vector<32x1xf32>
    %203 = math.rsqrt %202 : vector<32x1xf32>
    %204 = vector.broadcast %203 : vector<32x1xf32> to vector<32x64xf32>
    %205 = arith.mulf %200, %204 : vector<32x64xf32>
    %206 = vector.broadcast %185 : vector<1x64xf32> to vector<32x64xf32>
    %207 = arith.mulf %205, %206 : vector<32x64xf32>
    %208 = vector.broadcast %187 : vector<1x64xf32> to vector<32x64xf32>
    %209 = arith.addf %207, %208 : vector<32x64xf32>
    %c0_166 = arith.constant 0 : index
    %c0_167 = arith.constant 0 : index
    %c0_168 = arith.constant 0 : index
    %210 = vector.load %arg14[%c0_166, %c0_167, %c0_168] : memref<2x64x128xf32, #tpu.memory_space<vmem>>, vector<1x64x128xf32>
    %211 = vector.shape_cast %210 : vector<1x64x128xf32> to vector<64x128xf32>
    %cst_169 = arith.constant dense<0.000000e+00> : vector<32x128xf32>
    %212 = tpu.matmul %209, %211, %cst_169 {dimension_numbers = #tpu.dot_dimension_numbers<[1], [0], [0], [1], [0, 0, 1, 1], [], []>} : vector<32x64xf32>, vector<64x128xf32>, vector<32x128xf32> -> vector<32x128xf32>
    %c0_170 = arith.constant 0 : index
    %c0_171 = arith.constant 0 : index
    %c0_172 = arith.constant 0 : index
    %213 = vector.load %arg15[%c0_170, %c0_171, %c0_172] : memref<2x1x128xf32, #tpu.memory_space<vmem>>, vector<1x1x128xf32>
    %214 = vector.shape_cast %213 : vector<1x1x128xf32> to vector<1x128xf32>
    %215 = vector.broadcast %214 : vector<1x128xf32> to vector<32x128xf32>
    %216 = arith.addf %212, %215 : vector<32x128xf32>
    %cst_173 = arith.constant 0.000000e+00 : f32
    %217 = vector.broadcast %cst_173 : f32 to vector<32x128xf32>
    %218 = arith.maximumf %216, %217 : vector<32x128xf32>
    %c0_174 = arith.constant 0 : index
    %c0_175 = arith.constant 0 : index
    %c0_176 = arith.constant 0 : index
    %219 = vector.load %arg16[%c0_174, %c0_175, %c0_176] : memref<2x128x64xf32, #tpu.memory_space<vmem>>, vector<1x128x64xf32>
    %220 = vector.shape_cast %219 : vector<1x128x64xf32> to vector<128x64xf32>
    %cst_177 = arith.constant dense<0.000000e+00> : vector<32x64xf32>
    %221 = tpu.matmul %218, %220, %cst_177 {dimension_numbers = #tpu.dot_dimension_numbers<[1], [0], [0], [1], [0, 0, 1, 1], [], []>} : vector<32x128xf32>, vector<128x64xf32>, vector<32x64xf32> -> vector<32x64xf32>
    %c0_178 = arith.constant 0 : index
    %c0_179 = arith.constant 0 : index
    %c0_180 = arith.constant 0 : index
    %222 = vector.load %arg17[%c0_178, %c0_179, %c0_180] : memref<2x1x64xf32, #tpu.memory_space<vmem>>, vector<1x1x64xf32>
    %223 = vector.shape_cast %222 : vector<1x1x64xf32> to vector<1x64xf32>
    %224 = vector.broadcast %223 : vector<1x64xf32> to vector<32x64xf32>
    %225 = arith.addf %221, %224 : vector<32x64xf32>
    %226 = arith.addf %209, %225 : vector<32x64xf32>
    %c0_181 = arith.constant 0 : index
    %c0_182 = arith.constant 0 : index
    %c0_183 = arith.constant 0 : index
    %227 = vector.load %arg18[%c0_181, %c0_182, %c0_183] : memref<2x1x64xf32, #tpu.memory_space<vmem>>, vector<1x1x64xf32>
    %228 = vector.shape_cast %227 : vector<1x1x64xf32> to vector<1x64xf32>
    %c0_184 = arith.constant 0 : index
    %c0_185 = arith.constant 0 : index
    %c0_186 = arith.constant 0 : index
    %229 = vector.load %arg19[%c0_184, %c0_185, %c0_186] : memref<2x1x64xf32, #tpu.memory_space<vmem>>, vector<1x1x64xf32>
    %230 = vector.shape_cast %229 : vector<1x1x64xf32> to vector<1x64xf32>
    %cst_187 = arith.constant dense<0.000000e+00> : vector<32xf32>
    %231 = vector.multi_reduction <add>, %226, %cst_187 [1] : vector<32x64xf32> to vector<32xf32>
    %232 = vector.shape_cast %231 : vector<32xf32> to vector<32x1xf32>
    %cst_188 = arith.constant 6.400000e+01 : f32
    %233 = vector.broadcast %cst_188 : f32 to vector<32x1xf32>
    %234 = arith.divf %232, %233 : vector<32x1xf32>
    %235 = vector.broadcast %234 : vector<32x1xf32> to vector<32x64xf32>
    %236 = arith.subf %226, %235 : vector<32x64xf32>
    %237 = arith.mulf %236, %236 : vector<32x64xf32>
    %cst_189 = arith.constant dense<0.000000e+00> : vector<32xf32>
    %238 = vector.multi_reduction <add>, %237, %cst_189 [1] : vector<32x64xf32> to vector<32xf32>
    %239 = vector.shape_cast %238 : vector<32xf32> to vector<32x1xf32>
    %cst_190 = arith.constant 6.400000e+01 : f32
    %240 = vector.broadcast %cst_190 : f32 to vector<32x1xf32>
    %241 = arith.divf %239, %240 : vector<32x1xf32>
    %242 = vector.broadcast %234 : vector<32x1xf32> to vector<32x64xf32>
    %243 = arith.subf %226, %242 : vector<32x64xf32>
    %cst_191 = arith.constant 9.99999974E-6 : f32
    %244 = vector.broadcast %cst_191 : f32 to vector<32x1xf32>
    %245 = arith.addf %241, %244 : vector<32x1xf32>
    %246 = math.rsqrt %245 : vector<32x1xf32>
    %247 = vector.broadcast %246 : vector<32x1xf32> to vector<32x64xf32>
    %248 = arith.mulf %243, %247 : vector<32x64xf32>
    %249 = vector.broadcast %228 : vector<1x64xf32> to vector<32x64xf32>
    %250 = arith.mulf %248, %249 : vector<32x64xf32>
    %251 = vector.broadcast %230 : vector<1x64xf32> to vector<32x64xf32>
    %252 = arith.addf %250, %251 : vector<32x64xf32>
    %c1_192 = arith.constant 1 : index
    %c0_193 = arith.constant 0 : index
    %c0_194 = arith.constant 0 : index
    %c0_195 = arith.constant 0 : index
    %253 = vector.load %arg4[%c1_192, %c0_193, %c0_194, %c0_195] : memref<2x4x64x16xf32, #tpu.memory_space<vmem>>, vector<1x1x64x16xf32>
    %254 = vector.shape_cast %253 : vector<1x1x64x16xf32> to vector<64x16xf32>
    %cst_196 = arith.constant dense<0.000000e+00> : vector<32x16xf32>
    %255 = tpu.matmul %252, %254, %cst_196 {dimension_numbers = #tpu.dot_dimension_numbers<[1], [0], [0], [1], [0, 0, 1, 1], [], []>} : vector<32x64xf32>, vector<64x16xf32>, vector<32x16xf32> -> vector<32x16xf32>
    %c1_197 = arith.constant 1 : index
    %c0_198 = arith.constant 0 : index
    %c0_199 = arith.constant 0 : index
    %c0_200 = arith.constant 0 : index
    %256 = vector.load %arg5[%c1_197, %c0_198, %c0_199, %c0_200] : memref<2x4x1x16xf32, #tpu.memory_space<vmem>>, vector<1x1x1x16xf32>
    %257 = vector.shape_cast %256 : vector<1x1x1x16xf32> to vector<1x16xf32>
    %258 = vector.broadcast %257 : vector<1x16xf32> to vector<32x16xf32>
    %259 = arith.addf %255, %258 : vector<32x16xf32>
    %c1_201 = arith.constant 1 : index
    %c0_202 = arith.constant 0 : index
    %c0_203 = arith.constant 0 : index
    %c0_204 = arith.constant 0 : index
    %260 = vector.load %arg6[%c1_201, %c0_202, %c0_203, %c0_204] : memref<2x4x64x16xf32, #tpu.memory_space<vmem>>, vector<1x1x64x16xf32>
    %261 = vector.shape_cast %260 : vector<1x1x64x16xf32> to vector<64x16xf32>
    %cst_205 = arith.constant dense<0.000000e+00> : vector<32x16xf32>
    %262 = tpu.matmul %252, %261, %cst_205 {dimension_numbers = #tpu.dot_dimension_numbers<[1], [0], [0], [1], [0, 0, 1, 1], [], []>} : vector<32x64xf32>, vector<64x16xf32>, vector<32x16xf32> -> vector<32x16xf32>
    %c1_206 = arith.constant 1 : index
    %c0_207 = arith.constant 0 : index
    %c0_208 = arith.constant 0 : index
    %c0_209 = arith.constant 0 : index
    %263 = vector.load %arg7[%c1_206, %c0_207, %c0_208, %c0_209] : memref<2x4x1x16xf32, #tpu.memory_space<vmem>>, vector<1x1x1x16xf32>
    %264 = vector.shape_cast %263 : vector<1x1x1x16xf32> to vector<1x16xf32>
    %265 = vector.broadcast %264 : vector<1x16xf32> to vector<32x16xf32>
    %266 = arith.addf %262, %265 : vector<32x16xf32>
    %c1_210 = arith.constant 1 : index
    %c0_211 = arith.constant 0 : index
    %c0_212 = arith.constant 0 : index
    %c0_213 = arith.constant 0 : index
    %267 = vector.load %arg8[%c1_210, %c0_211, %c0_212, %c0_213] : memref<2x4x64x16xf32, #tpu.memory_space<vmem>>, vector<1x1x64x16xf32>
    %268 = vector.shape_cast %267 : vector<1x1x64x16xf32> to vector<64x16xf32>
    %cst_214 = arith.constant dense<0.000000e+00> : vector<32x16xf32>
    %269 = tpu.matmul %252, %268, %cst_214 {dimension_numbers = #tpu.dot_dimension_numbers<[1], [0], [0], [1], [0, 0, 1, 1], [], []>} : vector<32x64xf32>, vector<64x16xf32>, vector<32x16xf32> -> vector<32x16xf32>
    %c1_215 = arith.constant 1 : index
    %c0_216 = arith.constant 0 : index
    %c0_217 = arith.constant 0 : index
    %c0_218 = arith.constant 0 : index
    %270 = vector.load %arg9[%c1_215, %c0_216, %c0_217, %c0_218] : memref<2x4x1x16xf32, #tpu.memory_space<vmem>>, vector<1x1x1x16xf32>
    %271 = vector.shape_cast %270 : vector<1x1x1x16xf32> to vector<1x16xf32>
    %272 = vector.broadcast %271 : vector<1x16xf32> to vector<32x16xf32>
    %273 = arith.addf %269, %272 : vector<32x16xf32>
    %274 = vector.shape_cast %259 : vector<32x16xf32> to vector<2x16x16xf32>
    %275 = vector.shape_cast %266 : vector<32x16xf32> to vector<2x16x16xf32>
    %276 = vector.shape_cast %273 : vector<32x16xf32> to vector<2x16x16xf32>
    "tpu.trace_start"() <{level = 10 : i32, message = "bqc,bkc->bqk"}> : () -> ()
    %cst_219 = arith.constant dense<0.000000e+00> : vector<2x16x16xf32>
    %277 = tpu.matmul %274, %275, %cst_219 {dimension_numbers = #tpu.dot_dimension_numbers<[2], [2], [1], [1], [0, 0, 0, 1, 1, 1], [0], [0]>} : vector<2x16x16xf32>, vector<2x16x16xf32>, vector<2x16x16xf32> -> vector<2x16x16xf32>
    "tpu.trace_stop"() : () -> ()
    %cst_220 = arith.constant 2.500000e-01 : f32
    %278 = vector.broadcast %cst_220 : f32 to vector<2x16x16xf32>
    %279 = arith.mulf %277, %278 : vector<2x16x16xf32>
    %cst_221 = arith.constant dense<0xFF800000> : vector<2x16xf32>
    %280 = vector.multi_reduction <maximumf>, %279, %cst_221 [2] : vector<2x16x16xf32> to vector<2x16xf32>
    %281 = vector.shape_cast %280 : vector<2x16xf32> to vector<2x16x1xf32>
    %282 = vector.broadcast %281 : vector<2x16x1xf32> to vector<2x16x16xf32>
    %283 = arith.subf %279, %282 : vector<2x16x16xf32>
    %284 = math.exp %283 : vector<2x16x16xf32>
    %cst_222 = arith.constant dense<0.000000e+00> : vector<2x16xf32>
    %285 = vector.multi_reduction <add>, %284, %cst_222 [2] : vector<2x16x16xf32> to vector<2x16xf32>
    %286 = vector.shape_cast %285 : vector<2x16xf32> to vector<2x16x1xf32>
    %287 = tpu.reciprocal %286 {approx = true} : vector<2x16x1xf32> -> vector<2x16x1xf32>
    %288 = vector.broadcast %287 : vector<2x16x1xf32> to vector<2x16x16xf32>
    %289 = arith.mulf %284, %288 : vector<2x16x16xf32>
    "tpu.trace_start"() <{level = 10 : i32, message = "bqk,bkc->bqc"}> : () -> ()
    %cst_223 = arith.constant dense<0.000000e+00> : vector<2x16x16xf32>
    %290 = tpu.matmul %289, %276, %cst_223 {dimension_numbers = #tpu.dot_dimension_numbers<[2], [1], [1], [2], [0, 0, 0, 1, 1, 2], [0], [0]>} : vector<2x16x16xf32>, vector<2x16x16xf32>, vector<2x16x16xf32> -> vector<2x16x16xf32>
    "tpu.trace_stop"() : () -> ()
    %291 = vector.shape_cast %290 : vector<2x16x16xf32> to vector<32x16xf32>
    %c1_224 = arith.constant 1 : index
    %c0_225 = arith.constant 0 : index
    %c0_226 = arith.constant 0 : index
    %c0_227 = arith.constant 0 : index
    %292 = vector.load %arg10[%c1_224, %c0_225, %c0_226, %c0_227] : memref<2x4x16x64xf32, #tpu.memory_space<vmem>>, vector<1x1x16x64xf32>
    %293 = vector.shape_cast %292 : vector<1x1x16x64xf32> to vector<16x64xf32>
    %cst_228 = arith.constant dense<0.000000e+00> : vector<32x64xf32>
    %294 = tpu.matmul %291, %293, %cst_228 {dimension_numbers = #tpu.dot_dimension_numbers<[1], [0], [0], [1], [0, 0, 1, 1], [], []>} : vector<32x16xf32>, vector<16x64xf32>, vector<32x64xf32> -> vector<32x64xf32>
    %c1_229 = arith.constant 1 : index
    %c1_230 = arith.constant 1 : index
    %c0_231 = arith.constant 0 : index
    %c0_232 = arith.constant 0 : index
    %295 = vector.load %arg4[%c1_229, %c1_230, %c0_231, %c0_232] : memref<2x4x64x16xf32, #tpu.memory_space<vmem>>, vector<1x1x64x16xf32>
    %296 = vector.shape_cast %295 : vector<1x1x64x16xf32> to vector<64x16xf32>
    %cst_233 = arith.constant dense<0.000000e+00> : vector<32x16xf32>
    %297 = tpu.matmul %252, %296, %cst_233 {dimension_numbers = #tpu.dot_dimension_numbers<[1], [0], [0], [1], [0, 0, 1, 1], [], []>} : vector<32x64xf32>, vector<64x16xf32>, vector<32x16xf32> -> vector<32x16xf32>
    %c1_234 = arith.constant 1 : index
    %c1_235 = arith.constant 1 : index
    %c0_236 = arith.constant 0 : index
    %c0_237 = arith.constant 0 : index
    %298 = vector.load %arg5[%c1_234, %c1_235, %c0_236, %c0_237] : memref<2x4x1x16xf32, #tpu.memory_space<vmem>>, vector<1x1x1x16xf32>
    %299 = vector.shape_cast %298 : vector<1x1x1x16xf32> to vector<1x16xf32>
    %300 = vector.broadcast %299 : vector<1x16xf32> to vector<32x16xf32>
    %301 = arith.addf %297, %300 : vector<32x16xf32>
    %c1_238 = arith.constant 1 : index
    %c1_239 = arith.constant 1 : index
    %c0_240 = arith.constant 0 : index
    %c0_241 = arith.constant 0 : index
    %302 = vector.load %arg6[%c1_238, %c1_239, %c0_240, %c0_241] : memref<2x4x64x16xf32, #tpu.memory_space<vmem>>, vector<1x1x64x16xf32>
    %303 = vector.shape_cast %302 : vector<1x1x64x16xf32> to vector<64x16xf32>
    %cst_242 = arith.constant dense<0.000000e+00> : vector<32x16xf32>
    %304 = tpu.matmul %252, %303, %cst_242 {dimension_numbers = #tpu.dot_dimension_numbers<[1], [0], [0], [1], [0, 0, 1, 1], [], []>} : vector<32x64xf32>, vector<64x16xf32>, vector<32x16xf32> -> vector<32x16xf32>
    %c1_243 = arith.constant 1 : index
    %c1_244 = arith.constant 1 : index
    %c0_245 = arith.constant 0 : index
    %c0_246 = arith.constant 0 : index
    %305 = vector.load %arg7[%c1_243, %c1_244, %c0_245, %c0_246] : memref<2x4x1x16xf32, #tpu.memory_space<vmem>>, vector<1x1x1x16xf32>
    %306 = vector.shape_cast %305 : vector<1x1x1x16xf32> to vector<1x16xf32>
    %307 = vector.broadcast %306 : vector<1x16xf32> to vector<32x16xf32>
    %308 = arith.addf %304, %307 : vector<32x16xf32>
    %c1_247 = arith.constant 1 : index
    %c1_248 = arith.constant 1 : index
    %c0_249 = arith.constant 0 : index
    %c0_250 = arith.constant 0 : index
    %309 = vector.load %arg8[%c1_247, %c1_248, %c0_249, %c0_250] : memref<2x4x64x16xf32, #tpu.memory_space<vmem>>, vector<1x1x64x16xf32>
    %310 = vector.shape_cast %309 : vector<1x1x64x16xf32> to vector<64x16xf32>
    %cst_251 = arith.constant dense<0.000000e+00> : vector<32x16xf32>
    %311 = tpu.matmul %252, %310, %cst_251 {dimension_numbers = #tpu.dot_dimension_numbers<[1], [0], [0], [1], [0, 0, 1, 1], [], []>} : vector<32x64xf32>, vector<64x16xf32>, vector<32x16xf32> -> vector<32x16xf32>
    %c1_252 = arith.constant 1 : index
    %c1_253 = arith.constant 1 : index
    %c0_254 = arith.constant 0 : index
    %c0_255 = arith.constant 0 : index
    %312 = vector.load %arg9[%c1_252, %c1_253, %c0_254, %c0_255] : memref<2x4x1x16xf32, #tpu.memory_space<vmem>>, vector<1x1x1x16xf32>
    %313 = vector.shape_cast %312 : vector<1x1x1x16xf32> to vector<1x16xf32>
    %314 = vector.broadcast %313 : vector<1x16xf32> to vector<32x16xf32>
    %315 = arith.addf %311, %314 : vector<32x16xf32>
    %316 = vector.shape_cast %301 : vector<32x16xf32> to vector<2x16x16xf32>
    %317 = vector.shape_cast %308 : vector<32x16xf32> to vector<2x16x16xf32>
    %318 = vector.shape_cast %315 : vector<32x16xf32> to vector<2x16x16xf32>
    "tpu.trace_start"() <{level = 10 : i32, message = "bqc,bkc->bqk"}> : () -> ()
    %cst_256 = arith.constant dense<0.000000e+00> : vector<2x16x16xf32>
    %319 = tpu.matmul %316, %317, %cst_256 {dimension_numbers = #tpu.dot_dimension_numbers<[2], [2], [1], [1], [0, 0, 0, 1, 1, 1], [0], [0]>} : vector<2x16x16xf32>, vector<2x16x16xf32>, vector<2x16x16xf32> -> vector<2x16x16xf32>
    "tpu.trace_stop"() : () -> ()
    %cst_257 = arith.constant 2.500000e-01 : f32
    %320 = vector.broadcast %cst_257 : f32 to vector<2x16x16xf32>
    %321 = arith.mulf %319, %320 : vector<2x16x16xf32>
    %cst_258 = arith.constant dense<0xFF800000> : vector<2x16xf32>
    %322 = vector.multi_reduction <maximumf>, %321, %cst_258 [2] : vector<2x16x16xf32> to vector<2x16xf32>
    %323 = vector.shape_cast %322 : vector<2x16xf32> to vector<2x16x1xf32>
    %324 = vector.broadcast %323 : vector<2x16x1xf32> to vector<2x16x16xf32>
    %325 = arith.subf %321, %324 : vector<2x16x16xf32>
    %326 = math.exp %325 : vector<2x16x16xf32>
    %cst_259 = arith.constant dense<0.000000e+00> : vector<2x16xf32>
    %327 = vector.multi_reduction <add>, %326, %cst_259 [2] : vector<2x16x16xf32> to vector<2x16xf32>
    %328 = vector.shape_cast %327 : vector<2x16xf32> to vector<2x16x1xf32>
    %329 = tpu.reciprocal %328 {approx = true} : vector<2x16x1xf32> -> vector<2x16x1xf32>
    %330 = vector.broadcast %329 : vector<2x16x1xf32> to vector<2x16x16xf32>
    %331 = arith.mulf %326, %330 : vector<2x16x16xf32>
    "tpu.trace_start"() <{level = 10 : i32, message = "bqk,bkc->bqc"}> : () -> ()
    %cst_260 = arith.constant dense<0.000000e+00> : vector<2x16x16xf32>
    %332 = tpu.matmul %331, %318, %cst_260 {dimension_numbers = #tpu.dot_dimension_numbers<[2], [1], [1], [2], [0, 0, 0, 1, 1, 2], [0], [0]>} : vector<2x16x16xf32>, vector<2x16x16xf32>, vector<2x16x16xf32> -> vector<2x16x16xf32>
    "tpu.trace_stop"() : () -> ()
    %333 = vector.shape_cast %332 : vector<2x16x16xf32> to vector<32x16xf32>
    %c1_261 = arith.constant 1 : index
    %c1_262 = arith.constant 1 : index
    %c0_263 = arith.constant 0 : index
    %c0_264 = arith.constant 0 : index
    %334 = vector.load %arg10[%c1_261, %c1_262, %c0_263, %c0_264] : memref<2x4x16x64xf32, #tpu.memory_space<vmem>>, vector<1x1x16x64xf32>
    %335 = vector.shape_cast %334 : vector<1x1x16x64xf32> to vector<16x64xf32>
    %cst_265 = arith.constant dense<0.000000e+00> : vector<32x64xf32>
    %336 = tpu.matmul %333, %335, %cst_265 {dimension_numbers = #tpu.dot_dimension_numbers<[1], [0], [0], [1], [0, 0, 1, 1], [], []>} : vector<32x16xf32>, vector<16x64xf32>, vector<32x64xf32> -> vector<32x64xf32>
    %337 = arith.addf %294, %336 : vector<32x64xf32>
    %c1_266 = arith.constant 1 : index
    %c2_267 = arith.constant 2 : index
    %c0_268 = arith.constant 0 : index
    %c0_269 = arith.constant 0 : index
    %338 = vector.load %arg4[%c1_266, %c2_267, %c0_268, %c0_269] : memref<2x4x64x16xf32, #tpu.memory_space<vmem>>, vector<1x1x64x16xf32>
    %339 = vector.shape_cast %338 : vector<1x1x64x16xf32> to vector<64x16xf32>
    %cst_270 = arith.constant dense<0.000000e+00> : vector<32x16xf32>
    %340 = tpu.matmul %252, %339, %cst_270 {dimension_numbers = #tpu.dot_dimension_numbers<[1], [0], [0], [1], [0, 0, 1, 1], [], []>} : vector<32x64xf32>, vector<64x16xf32>, vector<32x16xf32> -> vector<32x16xf32>
    %c1_271 = arith.constant 1 : index
    %c2_272 = arith.constant 2 : index
    %c0_273 = arith.constant 0 : index
    %c0_274 = arith.constant 0 : index
    %341 = vector.load %arg5[%c1_271, %c2_272, %c0_273, %c0_274] : memref<2x4x1x16xf32, #tpu.memory_space<vmem>>, vector<1x1x1x16xf32>
    %342 = vector.shape_cast %341 : vector<1x1x1x16xf32> to vector<1x16xf32>
    %343 = vector.broadcast %342 : vector<1x16xf32> to vector<32x16xf32>
    %344 = arith.addf %340, %343 : vector<32x16xf32>
    %c1_275 = arith.constant 1 : index
    %c2_276 = arith.constant 2 : index
    %c0_277 = arith.constant 0 : index
    %c0_278 = arith.constant 0 : index
    %345 = vector.load %arg6[%c1_275, %c2_276, %c0_277, %c0_278] : memref<2x4x64x16xf32, #tpu.memory_space<vmem>>, vector<1x1x64x16xf32>
    %346 = vector.shape_cast %345 : vector<1x1x64x16xf32> to vector<64x16xf32>
    %cst_279 = arith.constant dense<0.000000e+00> : vector<32x16xf32>
    %347 = tpu.matmul %252, %346, %cst_279 {dimension_numbers = #tpu.dot_dimension_numbers<[1], [0], [0], [1], [0, 0, 1, 1], [], []>} : vector<32x64xf32>, vector<64x16xf32>, vector<32x16xf32> -> vector<32x16xf32>
    %c1_280 = arith.constant 1 : index
    %c2_281 = arith.constant 2 : index
    %c0_282 = arith.constant 0 : index
    %c0_283 = arith.constant 0 : index
    %348 = vector.load %arg7[%c1_280, %c2_281, %c0_282, %c0_283] : memref<2x4x1x16xf32, #tpu.memory_space<vmem>>, vector<1x1x1x16xf32>
    %349 = vector.shape_cast %348 : vector<1x1x1x16xf32> to vector<1x16xf32>
    %350 = vector.broadcast %349 : vector<1x16xf32> to vector<32x16xf32>
    %351 = arith.addf %347, %350 : vector<32x16xf32>
    %c1_284 = arith.constant 1 : index
    %c2_285 = arith.constant 2 : index
    %c0_286 = arith.constant 0 : index
    %c0_287 = arith.constant 0 : index
    %352 = vector.load %arg8[%c1_284, %c2_285, %c0_286, %c0_287] : memref<2x4x64x16xf32, #tpu.memory_space<vmem>>, vector<1x1x64x16xf32>
    %353 = vector.shape_cast %352 : vector<1x1x64x16xf32> to vector<64x16xf32>
    %cst_288 = arith.constant dense<0.000000e+00> : vector<32x16xf32>
    %354 = tpu.matmul %252, %353, %cst_288 {dimension_numbers = #tpu.dot_dimension_numbers<[1], [0], [0], [1], [0, 0, 1, 1], [], []>} : vector<32x64xf32>, vector<64x16xf32>, vector<32x16xf32> -> vector<32x16xf32>
    %c1_289 = arith.constant 1 : index
    %c2_290 = arith.constant 2 : index
    %c0_291 = arith.constant 0 : index
    %c0_292 = arith.constant 0 : index
    %355 = vector.load %arg9[%c1_289, %c2_290, %c0_291, %c0_292] : memref<2x4x1x16xf32, #tpu.memory_space<vmem>>, vector<1x1x1x16xf32>
    %356 = vector.shape_cast %355 : vector<1x1x1x16xf32> to vector<1x16xf32>
    %357 = vector.broadcast %356 : vector<1x16xf32> to vector<32x16xf32>
    %358 = arith.addf %354, %357 : vector<32x16xf32>
    %359 = vector.shape_cast %344 : vector<32x16xf32> to vector<2x16x16xf32>
    %360 = vector.shape_cast %351 : vector<32x16xf32> to vector<2x16x16xf32>
    %361 = vector.shape_cast %358 : vector<32x16xf32> to vector<2x16x16xf32>
    "tpu.trace_start"() <{level = 10 : i32, message = "bqc,bkc->bqk"}> : () -> ()
    %cst_293 = arith.constant dense<0.000000e+00> : vector<2x16x16xf32>
    %362 = tpu.matmul %359, %360, %cst_293 {dimension_numbers = #tpu.dot_dimension_numbers<[2], [2], [1], [1], [0, 0, 0, 1, 1, 1], [0], [0]>} : vector<2x16x16xf32>, vector<2x16x16xf32>, vector<2x16x16xf32> -> vector<2x16x16xf32>
    "tpu.trace_stop"() : () -> ()
    %cst_294 = arith.constant 2.500000e-01 : f32
    %363 = vector.broadcast %cst_294 : f32 to vector<2x16x16xf32>
    %364 = arith.mulf %362, %363 : vector<2x16x16xf32>
    %cst_295 = arith.constant dense<0xFF800000> : vector<2x16xf32>
    %365 = vector.multi_reduction <maximumf>, %364, %cst_295 [2] : vector<2x16x16xf32> to vector<2x16xf32>
    %366 = vector.shape_cast %365 : vector<2x16xf32> to vector<2x16x1xf32>
    %367 = vector.broadcast %366 : vector<2x16x1xf32> to vector<2x16x16xf32>
    %368 = arith.subf %364, %367 : vector<2x16x16xf32>
    %369 = math.exp %368 : vector<2x16x16xf32>
    %cst_296 = arith.constant dense<0.000000e+00> : vector<2x16xf32>
    %370 = vector.multi_reduction <add>, %369, %cst_296 [2] : vector<2x16x16xf32> to vector<2x16xf32>
    %371 = vector.shape_cast %370 : vector<2x16xf32> to vector<2x16x1xf32>
    %372 = tpu.reciprocal %371 {approx = true} : vector<2x16x1xf32> -> vector<2x16x1xf32>
    %373 = vector.broadcast %372 : vector<2x16x1xf32> to vector<2x16x16xf32>
    %374 = arith.mulf %369, %373 : vector<2x16x16xf32>
    "tpu.trace_start"() <{level = 10 : i32, message = "bqk,bkc->bqc"}> : () -> ()
    %cst_297 = arith.constant dense<0.000000e+00> : vector<2x16x16xf32>
    %375 = tpu.matmul %374, %361, %cst_297 {dimension_numbers = #tpu.dot_dimension_numbers<[2], [1], [1], [2], [0, 0, 0, 1, 1, 2], [0], [0]>} : vector<2x16x16xf32>, vector<2x16x16xf32>, vector<2x16x16xf32> -> vector<2x16x16xf32>
    "tpu.trace_stop"() : () -> ()
    %376 = vector.shape_cast %375 : vector<2x16x16xf32> to vector<32x16xf32>
    %c1_298 = arith.constant 1 : index
    %c2_299 = arith.constant 2 : index
    %c0_300 = arith.constant 0 : index
    %c0_301 = arith.constant 0 : index
    %377 = vector.load %arg10[%c1_298, %c2_299, %c0_300, %c0_301] : memref<2x4x16x64xf32, #tpu.memory_space<vmem>>, vector<1x1x16x64xf32>
    %378 = vector.shape_cast %377 : vector<1x1x16x64xf32> to vector<16x64xf32>
    %cst_302 = arith.constant dense<0.000000e+00> : vector<32x64xf32>
    %379 = tpu.matmul %376, %378, %cst_302 {dimension_numbers = #tpu.dot_dimension_numbers<[1], [0], [0], [1], [0, 0, 1, 1], [], []>} : vector<32x16xf32>, vector<16x64xf32>, vector<32x64xf32> -> vector<32x64xf32>
    %380 = arith.addf %337, %379 : vector<32x64xf32>
    %c1_303 = arith.constant 1 : index
    %c3_304 = arith.constant 3 : index
    %c0_305 = arith.constant 0 : index
    %c0_306 = arith.constant 0 : index
    %381 = vector.load %arg4[%c1_303, %c3_304, %c0_305, %c0_306] : memref<2x4x64x16xf32, #tpu.memory_space<vmem>>, vector<1x1x64x16xf32>
    %382 = vector.shape_cast %381 : vector<1x1x64x16xf32> to vector<64x16xf32>
    %cst_307 = arith.constant dense<0.000000e+00> : vector<32x16xf32>
    %383 = tpu.matmul %252, %382, %cst_307 {dimension_numbers = #tpu.dot_dimension_numbers<[1], [0], [0], [1], [0, 0, 1, 1], [], []>} : vector<32x64xf32>, vector<64x16xf32>, vector<32x16xf32> -> vector<32x16xf32>
    %c1_308 = arith.constant 1 : index
    %c3_309 = arith.constant 3 : index
    %c0_310 = arith.constant 0 : index
    %c0_311 = arith.constant 0 : index
    %384 = vector.load %arg5[%c1_308, %c3_309, %c0_310, %c0_311] : memref<2x4x1x16xf32, #tpu.memory_space<vmem>>, vector<1x1x1x16xf32>
    %385 = vector.shape_cast %384 : vector<1x1x1x16xf32> to vector<1x16xf32>
    %386 = vector.broadcast %385 : vector<1x16xf32> to vector<32x16xf32>
    %387 = arith.addf %383, %386 : vector<32x16xf32>
    %c1_312 = arith.constant 1 : index
    %c3_313 = arith.constant 3 : index
    %c0_314 = arith.constant 0 : index
    %c0_315 = arith.constant 0 : index
    %388 = vector.load %arg6[%c1_312, %c3_313, %c0_314, %c0_315] : memref<2x4x64x16xf32, #tpu.memory_space<vmem>>, vector<1x1x64x16xf32>
    %389 = vector.shape_cast %388 : vector<1x1x64x16xf32> to vector<64x16xf32>
    %cst_316 = arith.constant dense<0.000000e+00> : vector<32x16xf32>
    %390 = tpu.matmul %252, %389, %cst_316 {dimension_numbers = #tpu.dot_dimension_numbers<[1], [0], [0], [1], [0, 0, 1, 1], [], []>} : vector<32x64xf32>, vector<64x16xf32>, vector<32x16xf32> -> vector<32x16xf32>
    %c1_317 = arith.constant 1 : index
    %c3_318 = arith.constant 3 : index
    %c0_319 = arith.constant 0 : index
    %c0_320 = arith.constant 0 : index
    %391 = vector.load %arg7[%c1_317, %c3_318, %c0_319, %c0_320] : memref<2x4x1x16xf32, #tpu.memory_space<vmem>>, vector<1x1x1x16xf32>
    %392 = vector.shape_cast %391 : vector<1x1x1x16xf32> to vector<1x16xf32>
    %393 = vector.broadcast %392 : vector<1x16xf32> to vector<32x16xf32>
    %394 = arith.addf %390, %393 : vector<32x16xf32>
    %c1_321 = arith.constant 1 : index
    %c3_322 = arith.constant 3 : index
    %c0_323 = arith.constant 0 : index
    %c0_324 = arith.constant 0 : index
    %395 = vector.load %arg8[%c1_321, %c3_322, %c0_323, %c0_324] : memref<2x4x64x16xf32, #tpu.memory_space<vmem>>, vector<1x1x64x16xf32>
    %396 = vector.shape_cast %395 : vector<1x1x64x16xf32> to vector<64x16xf32>
    %cst_325 = arith.constant dense<0.000000e+00> : vector<32x16xf32>
    %397 = tpu.matmul %252, %396, %cst_325 {dimension_numbers = #tpu.dot_dimension_numbers<[1], [0], [0], [1], [0, 0, 1, 1], [], []>} : vector<32x64xf32>, vector<64x16xf32>, vector<32x16xf32> -> vector<32x16xf32>
    %c1_326 = arith.constant 1 : index
    %c3_327 = arith.constant 3 : index
    %c0_328 = arith.constant 0 : index
    %c0_329 = arith.constant 0 : index
    %398 = vector.load %arg9[%c1_326, %c3_327, %c0_328, %c0_329] : memref<2x4x1x16xf32, #tpu.memory_space<vmem>>, vector<1x1x1x16xf32>
    %399 = vector.shape_cast %398 : vector<1x1x1x16xf32> to vector<1x16xf32>
    %400 = vector.broadcast %399 : vector<1x16xf32> to vector<32x16xf32>
    %401 = arith.addf %397, %400 : vector<32x16xf32>
    %402 = vector.shape_cast %387 : vector<32x16xf32> to vector<2x16x16xf32>
    %403 = vector.shape_cast %394 : vector<32x16xf32> to vector<2x16x16xf32>
    %404 = vector.shape_cast %401 : vector<32x16xf32> to vector<2x16x16xf32>
    "tpu.trace_start"() <{level = 10 : i32, message = "bqc,bkc->bqk"}> : () -> ()
    %cst_330 = arith.constant dense<0.000000e+00> : vector<2x16x16xf32>
    %405 = tpu.matmul %402, %403, %cst_330 {dimension_numbers = #tpu.dot_dimension_numbers<[2], [2], [1], [1], [0, 0, 0, 1, 1, 1], [0], [0]>} : vector<2x16x16xf32>, vector<2x16x16xf32>, vector<2x16x16xf32> -> vector<2x16x16xf32>
    "tpu.trace_stop"() : () -> ()
    %cst_331 = arith.constant 2.500000e-01 : f32
    %406 = vector.broadcast %cst_331 : f32 to vector<2x16x16xf32>
    %407 = arith.mulf %405, %406 : vector<2x16x16xf32>
    %cst_332 = arith.constant dense<0xFF800000> : vector<2x16xf32>
    %408 = vector.multi_reduction <maximumf>, %407, %cst_332 [2] : vector<2x16x16xf32> to vector<2x16xf32>
    %409 = vector.shape_cast %408 : vector<2x16xf32> to vector<2x16x1xf32>
    %410 = vector.broadcast %409 : vector<2x16x1xf32> to vector<2x16x16xf32>
    %411 = arith.subf %407, %410 : vector<2x16x16xf32>
    %412 = math.exp %411 : vector<2x16x16xf32>
    %cst_333 = arith.constant dense<0.000000e+00> : vector<2x16xf32>
    %413 = vector.multi_reduction <add>, %412, %cst_333 [2] : vector<2x16x16xf32> to vector<2x16xf32>
    %414 = vector.shape_cast %413 : vector<2x16xf32> to vector<2x16x1xf32>
    %415 = tpu.reciprocal %414 {approx = true} : vector<2x16x1xf32> -> vector<2x16x1xf32>
    %416 = vector.broadcast %415 : vector<2x16x1xf32> to vector<2x16x16xf32>
    %417 = arith.mulf %412, %416 : vector<2x16x16xf32>
    "tpu.trace_start"() <{level = 10 : i32, message = "bqk,bkc->bqc"}> : () -> ()
    %cst_334 = arith.constant dense<0.000000e+00> : vector<2x16x16xf32>
    %418 = tpu.matmul %417, %404, %cst_334 {dimension_numbers = #tpu.dot_dimension_numbers<[2], [1], [1], [2], [0, 0, 0, 1, 1, 2], [0], [0]>} : vector<2x16x16xf32>, vector<2x16x16xf32>, vector<2x16x16xf32> -> vector<2x16x16xf32>
    "tpu.trace_stop"() : () -> ()
    %419 = vector.shape_cast %418 : vector<2x16x16xf32> to vector<32x16xf32>
    %c1_335 = arith.constant 1 : index
    %c3_336 = arith.constant 3 : index
    %c0_337 = arith.constant 0 : index
    %c0_338 = arith.constant 0 : index
    %420 = vector.load %arg10[%c1_335, %c3_336, %c0_337, %c0_338] : memref<2x4x16x64xf32, #tpu.memory_space<vmem>>, vector<1x1x16x64xf32>
    %421 = vector.shape_cast %420 : vector<1x1x16x64xf32> to vector<16x64xf32>
    %cst_339 = arith.constant dense<0.000000e+00> : vector<32x64xf32>
    %422 = tpu.matmul %419, %421, %cst_339 {dimension_numbers = #tpu.dot_dimension_numbers<[1], [0], [0], [1], [0, 0, 1, 1], [], []>} : vector<32x16xf32>, vector<16x64xf32>, vector<32x64xf32> -> vector<32x64xf32>
    %423 = arith.addf %380, %422 : vector<32x64xf32>
    %c1_340 = arith.constant 1 : index
    %c0_341 = arith.constant 0 : index
    %c0_342 = arith.constant 0 : index
    %424 = vector.load %arg11[%c1_340, %c0_341, %c0_342] : memref<2x1x64xf32, #tpu.memory_space<vmem>>, vector<1x1x64xf32>
    %425 = vector.shape_cast %424 : vector<1x1x64xf32> to vector<1x64xf32>
    %426 = vector.broadcast %425 : vector<1x64xf32> to vector<32x64xf32>
    %427 = arith.addf %423, %426 : vector<32x64xf32>
    %428 = arith.addf %252, %427 : vector<32x64xf32>
    %c1_343 = arith.constant 1 : index
    %c0_344 = arith.constant 0 : index
    %c0_345 = arith.constant 0 : index
    %429 = vector.load %arg12[%c1_343, %c0_344, %c0_345] : memref<2x1x64xf32, #tpu.memory_space<vmem>>, vector<1x1x64xf32>
    %430 = vector.shape_cast %429 : vector<1x1x64xf32> to vector<1x64xf32>
    %c1_346 = arith.constant 1 : index
    %c0_347 = arith.constant 0 : index
    %c0_348 = arith.constant 0 : index
    %431 = vector.load %arg13[%c1_346, %c0_347, %c0_348] : memref<2x1x64xf32, #tpu.memory_space<vmem>>, vector<1x1x64xf32>
    %432 = vector.shape_cast %431 : vector<1x1x64xf32> to vector<1x64xf32>
    %cst_349 = arith.constant dense<0.000000e+00> : vector<32xf32>
    %433 = vector.multi_reduction <add>, %428, %cst_349 [1] : vector<32x64xf32> to vector<32xf32>
    %434 = vector.shape_cast %433 : vector<32xf32> to vector<32x1xf32>
    %cst_350 = arith.constant 6.400000e+01 : f32
    %435 = vector.broadcast %cst_350 : f32 to vector<32x1xf32>
    %436 = arith.divf %434, %435 : vector<32x1xf32>
    %437 = vector.broadcast %436 : vector<32x1xf32> to vector<32x64xf32>
    %438 = arith.subf %428, %437 : vector<32x64xf32>
    %439 = arith.mulf %438, %438 : vector<32x64xf32>
    %cst_351 = arith.constant dense<0.000000e+00> : vector<32xf32>
    %440 = vector.multi_reduction <add>, %439, %cst_351 [1] : vector<32x64xf32> to vector<32xf32>
    %441 = vector.shape_cast %440 : vector<32xf32> to vector<32x1xf32>
    %cst_352 = arith.constant 6.400000e+01 : f32
    %442 = vector.broadcast %cst_352 : f32 to vector<32x1xf32>
    %443 = arith.divf %441, %442 : vector<32x1xf32>
    %444 = vector.broadcast %436 : vector<32x1xf32> to vector<32x64xf32>
    %445 = arith.subf %428, %444 : vector<32x64xf32>
    %cst_353 = arith.constant 9.99999974E-6 : f32
    %446 = vector.broadcast %cst_353 : f32 to vector<32x1xf32>
    %447 = arith.addf %443, %446 : vector<32x1xf32>
    %448 = math.rsqrt %447 : vector<32x1xf32>
    %449 = vector.broadcast %448 : vector<32x1xf32> to vector<32x64xf32>
    %450 = arith.mulf %445, %449 : vector<32x64xf32>
    %451 = vector.broadcast %430 : vector<1x64xf32> to vector<32x64xf32>
    %452 = arith.mulf %450, %451 : vector<32x64xf32>
    %453 = vector.broadcast %432 : vector<1x64xf32> to vector<32x64xf32>
    %454 = arith.addf %452, %453 : vector<32x64xf32>
    %c1_354 = arith.constant 1 : index
    %c0_355 = arith.constant 0 : index
    %c0_356 = arith.constant 0 : index
    %455 = vector.load %arg14[%c1_354, %c0_355, %c0_356] : memref<2x64x128xf32, #tpu.memory_space<vmem>>, vector<1x64x128xf32>
    %456 = vector.shape_cast %455 : vector<1x64x128xf32> to vector<64x128xf32>
    %cst_357 = arith.constant dense<0.000000e+00> : vector<32x128xf32>
    %457 = tpu.matmul %454, %456, %cst_357 {dimension_numbers = #tpu.dot_dimension_numbers<[1], [0], [0], [1], [0, 0, 1, 1], [], []>} : vector<32x64xf32>, vector<64x128xf32>, vector<32x128xf32> -> vector<32x128xf32>
    %c1_358 = arith.constant 1 : index
    %c0_359 = arith.constant 0 : index
    %c0_360 = arith.constant 0 : index
    %458 = vector.load %arg15[%c1_358, %c0_359, %c0_360] : memref<2x1x128xf32, #tpu.memory_space<vmem>>, vector<1x1x128xf32>
    %459 = vector.shape_cast %458 : vector<1x1x128xf32> to vector<1x128xf32>
    %460 = vector.broadcast %459 : vector<1x128xf32> to vector<32x128xf32>
    %461 = arith.addf %457, %460 : vector<32x128xf32>
    %cst_361 = arith.constant 0.000000e+00 : f32
    %462 = vector.broadcast %cst_361 : f32 to vector<32x128xf32>
    %463 = arith.maximumf %461, %462 : vector<32x128xf32>
    %c1_362 = arith.constant 1 : index
    %c0_363 = arith.constant 0 : index
    %c0_364 = arith.constant 0 : index
    %464 = vector.load %arg16[%c1_362, %c0_363, %c0_364] : memref<2x128x64xf32, #tpu.memory_space<vmem>>, vector<1x128x64xf32>
    %465 = vector.shape_cast %464 : vector<1x128x64xf32> to vector<128x64xf32>
    %cst_365 = arith.constant dense<0.000000e+00> : vector<32x64xf32>
    %466 = tpu.matmul %463, %465, %cst_365 {dimension_numbers = #tpu.dot_dimension_numbers<[1], [0], [0], [1], [0, 0, 1, 1], [], []>} : vector<32x128xf32>, vector<128x64xf32>, vector<32x64xf32> -> vector<32x64xf32>
    %c1_366 = arith.constant 1 : index
    %c0_367 = arith.constant 0 : index
    %c0_368 = arith.constant 0 : index
    %467 = vector.load %arg17[%c1_366, %c0_367, %c0_368] : memref<2x1x64xf32, #tpu.memory_space<vmem>>, vector<1x1x64xf32>
    %468 = vector.shape_cast %467 : vector<1x1x64xf32> to vector<1x64xf32>
    %469 = vector.broadcast %468 : vector<1x64xf32> to vector<32x64xf32>
    %470 = arith.addf %466, %469 : vector<32x64xf32>
    %471 = arith.addf %454, %470 : vector<32x64xf32>
    %c1_369 = arith.constant 1 : index
    %c0_370 = arith.constant 0 : index
    %c0_371 = arith.constant 0 : index
    %472 = vector.load %arg18[%c1_369, %c0_370, %c0_371] : memref<2x1x64xf32, #tpu.memory_space<vmem>>, vector<1x1x64xf32>
    %473 = vector.shape_cast %472 : vector<1x1x64xf32> to vector<1x64xf32>
    %c1_372 = arith.constant 1 : index
    %c0_373 = arith.constant 0 : index
    %c0_374 = arith.constant 0 : index
    %474 = vector.load %arg19[%c1_372, %c0_373, %c0_374] : memref<2x1x64xf32, #tpu.memory_space<vmem>>, vector<1x1x64xf32>
    %475 = vector.shape_cast %474 : vector<1x1x64xf32> to vector<1x64xf32>
    %cst_375 = arith.constant dense<0.000000e+00> : vector<32xf32>
    %476 = vector.multi_reduction <add>, %471, %cst_375 [1] : vector<32x64xf32> to vector<32xf32>
    %477 = vector.shape_cast %476 : vector<32xf32> to vector<32x1xf32>
    %cst_376 = arith.constant 6.400000e+01 : f32
    %478 = vector.broadcast %cst_376 : f32 to vector<32x1xf32>
    %479 = arith.divf %477, %478 : vector<32x1xf32>
    %480 = vector.broadcast %479 : vector<32x1xf32> to vector<32x64xf32>
    %481 = arith.subf %471, %480 : vector<32x64xf32>
    %482 = arith.mulf %481, %481 : vector<32x64xf32>
    %cst_377 = arith.constant dense<0.000000e+00> : vector<32xf32>
    %483 = vector.multi_reduction <add>, %482, %cst_377 [1] : vector<32x64xf32> to vector<32xf32>
    %484 = vector.shape_cast %483 : vector<32xf32> to vector<32x1xf32>
    %cst_378 = arith.constant 6.400000e+01 : f32
    %485 = vector.broadcast %cst_378 : f32 to vector<32x1xf32>
    %486 = arith.divf %484, %485 : vector<32x1xf32>
    %487 = vector.broadcast %479 : vector<32x1xf32> to vector<32x64xf32>
    %488 = arith.subf %471, %487 : vector<32x64xf32>
    %cst_379 = arith.constant 9.99999974E-6 : f32
    %489 = vector.broadcast %cst_379 : f32 to vector<32x1xf32>
    %490 = arith.addf %486, %489 : vector<32x1xf32>
    %491 = math.rsqrt %490 : vector<32x1xf32>
    %492 = vector.broadcast %491 : vector<32x1xf32> to vector<32x64xf32>
    %493 = arith.mulf %488, %492 : vector<32x64xf32>
    %494 = vector.broadcast %473 : vector<1x64xf32> to vector<32x64xf32>
    %495 = arith.mulf %493, %494 : vector<32x64xf32>
    %496 = vector.broadcast %475 : vector<1x64xf32> to vector<32x64xf32>
    %497 = arith.addf %495, %496 : vector<32x64xf32>
    %c0_380 = arith.constant 0 : index
    %c0_381 = arith.constant 0 : index
    %498 = vector.load %arg24[%c0_380, %c0_381] : memref<2x32xf32, #tpu.memory_space<vmem>>, vector<2x32xf32>
    %cst_382 = arith.constant dense<0.000000e+00> : vector<2x64xf32>
    %499 = tpu.matmul %498, %497, %cst_382 {dimension_numbers = #tpu.dot_dimension_numbers<[1], [0], [0], [1], [0, 0, 1, 1], [], []>} : vector<2x32xf32>, vector<32x64xf32>, vector<2x64xf32> -> vector<2x64xf32>
    %c0_383 = arith.constant 0 : index
    %c0_384 = arith.constant 0 : index
    %500 = vector.load %arg20[%c0_383, %c0_384] : memref<64x128xf32, #tpu.memory_space<vmem>>, vector<64x128xf32>
    %cst_385 = arith.constant dense<0.000000e+00> : vector<2x128xf32>
    %501 = tpu.matmul %499, %500, %cst_385 {dimension_numbers = #tpu.dot_dimension_numbers<[1], [0], [0], [1], [0, 0, 1, 1], [], []>} : vector<2x64xf32>, vector<64x128xf32>, vector<2x128xf32> -> vector<2x128xf32>
    %c0_386 = arith.constant 0 : index
    %c0_387 = arith.constant 0 : index
    %502 = vector.load %arg21[%c0_386, %c0_387] : memref<1x128xf32, #tpu.memory_space<vmem>>, vector<1x128xf32>
    %503 = vector.broadcast %502 : vector<1x128xf32> to vector<2x128xf32>
    %504 = arith.addf %501, %503 : vector<2x128xf32>
    %cst_388 = arith.constant 0.000000e+00 : f32
    %505 = vector.broadcast %cst_388 : f32 to vector<2x128xf32>
    %506 = arith.maximumf %504, %505 : vector<2x128xf32>
    %c0_389 = arith.constant 0 : index
    %c0_390 = arith.constant 0 : index
    %507 = vector.load %arg22[%c0_389, %c0_390] : memref<128x128xf32, #tpu.memory_space<vmem>>, vector<128x128xf32>
    %cst_391 = arith.constant dense<0.000000e+00> : vector<2x128xf32>
    %508 = tpu.matmul %506, %507, %cst_391 {dimension_numbers = #tpu.dot_dimension_numbers<[1], [0], [0], [1], [0, 0, 1, 1], [], []>} : vector<2x128xf32>, vector<128x128xf32>, vector<2x128xf32> -> vector<2x128xf32>
    %c0_392 = arith.constant 0 : index
    %c0_393 = arith.constant 0 : index
    %509 = vector.load %arg23[%c0_392, %c0_393] : memref<1x128xf32, #tpu.memory_space<vmem>>, vector<1x128xf32>
    %510 = vector.broadcast %509 : vector<1x128xf32> to vector<2x128xf32>
    %511 = arith.addf %508, %510 : vector<2x128xf32>
    %c0_394 = arith.constant 0 : index
    %c0_395 = arith.constant 0 : index
    %512 = vector.load %arg25[%c0_394, %c0_395] : memref<2x128xf32, #tpu.memory_space<vmem>>, vector<2x128xf32>
    tpu.vector_store %arg25[%c0_394, %c0_395], %511 {strides = array<i32>} : memref<2x128xf32, #tpu.memory_space<vmem>>, vector<2x128xf32>,
    return
  }
}

</mosaic_0001>

<bundles_post_ra>
// kernel: tpu_custom_call.1
= control target key start
LH: loop header
LB: loop body
LE: loop exit
PB: predicated region body
PF: predicated region fallthrough
CT: control target
= control target key end

     0   :  { %s11714_s0 = inlined_call_operand.vmem [shape: f32[32,4], index: 0, kind: input, shape index: {}]   ;;  %s11715_s1 = inlined_call_operand.vmem [shape: f32[32,64], index: 1, kind: input, shape index: {}]   ;;  %s11716_s2 = inlined_call_operand.vmem [shape: f32[4,64], index: 2, kind: input, shape index: {}]   ;;  %s11717_s3 = inlined_call_operand.vmem [shape: f32[1,64], index: 3, kind: input, shape index: {}]   ;;  %s11718_s4 = inlined_call_operand.vmem [shape: f32[2,4,64,16], index: 4, kind: input, shape index: {}]   ;;  %s11719_s5 = inlined_call_operand.vmem [shape: f32[2,4,1,16], index: 5, kind: input, shape index: {}]   ;;  %s11720_s6 = inlined_call_operand.vmem [shape: f32[2,4,64,16], index: 6, kind: input, shape index: {}]   ;;  %s11721_s7 = inlined_call_operand.vmem [shape: f32[2,4,1,16], index: 7, kind: input, shape index: {}]   ;;  %s11722_s8 = inlined_call_operand.vmem [shape: f32[2,4,64,16], index: 8, kind: input, shape index: {}]   ;;  %s11723_s9 = inlined_call_operand.vmem [shape: f32[2,4,1,16], index: 9, kind: input, shape index: {}]   ;;  %s11724_s10 = inlined_call_operand.vmem [shape: f32[2,4,16,64], index: 10, kind: input, shape index: {}]   ;;  %s11725_s11 = inlined_call_operand.vmem [shape: f32[2,1,64], index: 11, kind: input, shape index: {}]   ;;  %s11726_s12 = inlined_call_operand.vmem [shape: f32[2,1,64], index: 12, kind: input, shape index: {}]   ;;  %s11727_s13 = inlined_call_operand.vmem [shape: f32[2,1,64], index: 13, kind: input, shape index: {}]   ;;  %s11728_s14 = inlined_call_operand.vmem [shape: f32[2,64,128], index: 14, kind: input, shape index: {}]   ;;  %s11729_s15 = inlined_call_operand.vmem [shape: f32[2,1,128], index: 15, kind: input, shape index: {}]   ;;  %s11730_s16 = inlined_call_operand.vmem [shape: f32[2,128,64], index: 16, kind: input, shape index: {}]   ;;  %s11731_s17 = inlined_call_operand.vmem [shape: f32[2,1,64], index: 17, kind: input, shape index: {}]   ;;  %s11732_s18 = inlined_call_operand.vmem [shape: f32[2,1,64], index: 18, kind: input, shape index: {}]   ;;  %s11733_s19 = inlined_call_operand.vmem [shape: f32[2,1,64], index: 19, kind: input, shape index: {}]   ;;  %s11734_s20 = inlined_call_operand.vmem [shape: f32[64,128], index: 20, kind: input, shape index: {}]   ;;  %s11735_s21 = inlined_call_operand.vmem [shape: f32[1,128], index: 21, kind: input, shape index: {}]   ;;  %s11736_s22 = inlined_call_operand.vmem [shape: f32[128,128], index: 22, kind: input, shape index: {}]   ;;  %s11737_s23 = inlined_call_operand.vmem [shape: f32[1,128], index: 23, kind: input, shape index: {}]   ;;  %s11738_s24 = inlined_call_operand.vmem [shape: f32[2,32], index: 24, kind: input, shape index: {}]   ;;  %s11739_s25 = inlined_call_operand.hbm [shape: f32[2,128], index: 25, kind: output, shape index: {}]  }
   0x1   :  { %11748 = sst [smem:[#allocation5_spill]] %s11714_s0 }
   0x2   :  { %11749 = sst [smem:[#allocation6_spill]] %s11715_s1 }
   0x3   :  { %11750 = sst [smem:[#allocation7_spill]] %s11716_s2 }
   0x4   :  { %11751 = sst [smem:[#allocation8_spill]] %s11717_s3 }
   0x5   :  { %11752 = sst [smem:[#allocation9_spill]] %s11718_s4 }
   0x6   :  { %11753 = sst [smem:[#allocation10_spill]] %s11719_s5 }
   0x7   :  { %11754 = sst [smem:[#allocation11_spill]] %s11720_s6 }
   0x8   :  { %11755 = sst [smem:[#allocation12_spill]] %s11721_s7 }
   0x9   :  { %11756 = sst [smem:[#allocation13_spill]] %s11722_s8 }
   0xa   :  { %11757 = sst [smem:[#allocation14_spill]] %s11723_s9 }
   0xb   :  { %s11758_s6 = sld [smem:[#allocation7_spill]]  ;;  %vm106_vm0 = vcmask 1043456   ;;  %vm93_vm1 = vcmask 31744  }
   0xc   :  { %s11759_s3 = sld [smem:[#allocation5_spill]] }
   0xd   :  { %s11760_s9 = sld [smem:[#allocation9_spill]] }
   0xe   :  { %s11761_s29 = sld [smem:[#allocation13_spill]] }
  0x11   :  { %v85_v0 = vld [vmem:[%s11758_s6] sm:$0xf] }
  0x12   :  { %v81_v1 = vld [vmem:[%s11759_s3] sm:$0xff]  ;;  %v82_v2 = vld [vmem:[%s11759_s3 + $0x8] sm:$0xff]  ;;  %8700 = vmatprep.subr.msk.mxu1 %vm106_vm0, %v85_v0  ;;  %v83_v3 = vld [vmem:[%s11759_s3 + $0x10] sm:$0xff] }
  0x13   :  { %8702 = vmatprep.mubr.msk.f32.mxu1 %vm93_vm1, %v81_v1  ;;  %v210_v4 = vld [vmem:[%s11760_s9 + $0x38] sm:$0xff]  ;;  %8701 = vmatpush3.msk.msra.mxu1 %vm106_vm0, %v85_v0  ;;  %v209_v6 = vld [vmem:[%s11760_s9 + $0x30] sm:$0xff]  ;;  %v208_v9 = vld [vmem:[%s11760_s9 + $0x28] sm:$0xff] }
  0x14   :  { %8708 = vmatprep.subr.mxu0 %v210_v4  ;;  %v423_v5 = vld [vmem:[%s11761_s29 + $0x38] sm:$0xff]  ;;  %8703 = vmatmul.mubr.msk.f32.vlgmr.msra.gmra.mxu1 %vm93_vm1, %v82_v2  ;;  %v422_v7 = vld [vmem:[%s11761_s29 + $0x30] sm:$0xff] }
  0x15   :  { %8709 = vmatpush3.msra.mxu0 %v210_v4  ;;  %8705 = vmatprep.mubr.msk.f32.mxu1 %vm93_vm1, %v83_v3  ;;  %v84_v8 = vld [vmem:[%s11759_s3 + $0x18] sm:$0xff] }
  0x16   :  { %8752 = vmatprep.subr.mxu1 %v423_v5 }
  0x17   :  { %30 = vsyncpa [#allocation3], 0  ;;  %8710 = vmatprep.subr.mxu0 %v209_v6  ;;  %8753 = vmatpush3.msra.mxu1 %v423_v5  ;;  %v421_v10 = vld [vmem:[%s11761_s29 + $0x28] sm:$0xff]  ;;  %v207_v11 = vld [vmem:[%s11760_s9 + $0x20] sm:$0xff]  ;;  %s11762_s8 = sld [smem:[#allocation11_spill]]  ;;  %vm218_vm2 = vcmask 523264  }
  0x18   :  { %8711 = vmatpush3.msra.mxu0 %v209_v6  ;;  %8754 = vmatprep.subr.mxu1 %v422_v7  ;;  %v420_v12 = vld [vmem:[%s11761_s29 + $0x20] sm:$0xff]  ;;  %v206_v13 = vld [vmem:[%s11760_s9 + $0x18] sm:$0xff]  ;;  %v205_v15 = vld [vmem:[%s11760_s9 + $0x10] sm:$0xff]  ;;  %s11763_s28 = sld [smem:[#allocation8_spill]]  ;;  %vm516_vm3 = vcmask 130048   ;;  %vm9911_vm4 = vmmov 0  }
  0x19   :  { %8706 = vmatmul.mubr.msk.f32.gmra.mxu1 %vm93_vm1, %v84_v8  ;;  %8712 = vmatprep.subr.mxu0 %v208_v9  ;;  %v419_v14 = vld [vmem:[%s11761_s29 + $0x18] sm:$0xff]  ;;  %v418_v16 = vld [vmem:[%s11761_s29 + $0x10] sm:$0xff]  ;;  %v204_v17 = vld [vmem:[%s11760_s9 + $0x8] sm:$0xff]  ;;  %s11764_s3 = sld [smem:[#allocation6_spill]]  ;;  %vm7351_vm5 = vcmask 261120  }
  0x1a   :  { %8755 = vmatpush3.msra.mxu1 %v422_v7  ;;  %8713 = vmatpush3.msra.mxu0 %v208_v9  ;;  %v417_v18 = vld [vmem:[%s11761_s29 + $0x8] sm:$0xff]  ;;  %v203_v19 = vld [vmem:[%s11760_s9] sm:$0xff]  ;;  %s11765_s0 = sld [smem:[#allocation10_spill]] }
  0x1b   :  { %8756 = vmatprep.subr.mxu1 %v421_v10  ;;  %8714 = vmatprep.subr.mxu0 %v207_v11  ;;  %v416_v20 = vld [vmem:[%s11761_s29] sm:$0xff]  ;;  %s11766_s6 = sld [smem:[#allocation14_spill]] }
  0x1c   :  { %8757 = vmatpush3.msra.mxu1 %v421_v10  ;;  %8715 = vmatpush3.msra.mxu0 %v207_v11  ;;  %s11767_s26 = sld [smem:[#allocation12_spill]] }
  0x1d   :  { %8758 = vmatprep.subr.mxu1 %v420_v12  ;;  %8716 = vmatprep.subr.mxu0 %v206_v13  ;;  %v323_v21 = vld [vmem:[%s11762_s8 + $0x38] sm:$0xff]  ;;  %v322_v37 = vld [vmem:[%s11762_s8 + $0x30] sm:$0xff]  ;;  %v321_v40 = vld [vmem:[%s11762_s8 + $0x28] sm:$0xff] }
  0x1e   :  { %8759 = vmatpush3.msra.mxu1 %v420_v12  ;;  %8717 = vmatpush3.msra.mxu0 %v206_v13  ;;  %v7622_v22 = vld [vmem:[%s11763_s28] ss:$0 sm:$0xff]  ;;  %v319_v42 = vld [vmem:[%s11762_s8 + $0x18] sm:$0xff]  ;;  %v318_v43 = vld [vmem:[%s11762_s8 + $0x10] sm:$0xff] }
  0x1f   :  { %8760 = vmatprep.subr.mxu1 %v419_v14  ;;  %8718 = vmatprep.subr.mxu0 %v205_v15  ;;  %v195_v26 = vld [vmem:[%s11764_s3] sm:$0xff]  ;;  %v196_v27 = vld [vmem:[%s11764_s3 + $0x8] sm:$0xff]  ;;  %v198_v32 = vld [vmem:[%s11764_s3 + $0x18] sm:$0xff] }
  0x20   :  { %8761 = vmatpush3.msra.mxu1 %v419_v14  ;;  %8719 = vmatpush3.msra.mxu0 %v205_v15  ;;  %v197_v35 = vld [vmem:[%s11764_s3 + $0x10] sm:$0xff]  ;;  %v320_v41 = vld [vmem:[%s11762_s8 + $0x20] sm:$0xff]  ;;  %v317_v44 = vld [vmem:[%s11762_s8 + $0x8] sm:$0xff] }
  0x21   :  { %8762 = vmatprep.subr.mxu1 %v418_v16  ;;  %8720 = vmatprep.subr.mxu0 %v204_v17  ;;  %v316_v45 = vld [vmem:[%s11762_s8] sm:$0xff] }
  0x22   :  { %8763 = vmatpush3.msra.mxu1 %v418_v16  ;;  %8721 = vmatpush3.msra.mxu0 %v204_v17  ;;  %v7628_v48 = vld [vmem:[%s11765_s0] ss:$0 sm:$0xff] }
  0x23   :  { %8764 = vmatprep.subr.mxu1 %v417_v18  ;;  %8722 = vmatprep.subr.mxu0 %v203_v19  ;;  %v7638_v52 = vld [vmem:[%s11766_s6] ss:$0 sm:$0xff] }
  0x24   :  { %8765 = vmatpush3.msra.mxu1 %v417_v18  ;;  %8723 = vmatpush3.msra.mxu0 %v203_v19  ;;  %v7633_v59 = vld [vmem:[%s11767_s26] ss:$0 sm:$0xff] }
  0x25   :  { %8766 = vmatprep.subr.mxu1 %v416_v20  ;;  %8730 = vmatprep.subr.mxu0 %v323_v21 }
  0x26   :  { %8767 = vmatpush3.msra.mxu1 %v416_v20 }
  0xd4   :  { %v8704_v23 = vpop.f32.mrf.mxu1 }
  0xd5   :  { %v182_v24 = vadd.f32 %v8704_v23, %v7622_v22 }
  0xd6   :  { %v176_v25 = vpop.f32.mrf.mxu1 }
  0xd7   :  { %v177_v28 = vadd.f32 %v7622_v22, %v176_v25  ;;  %v10127_v33 = vadd.f32 %v196_v27, %v182_v24 }
  0xd9   :  { %v8707_v29 = vpop.f32.mrf.mxu1  ;;  %v10122_v30 = vadd.f32 %v195_v26, %v177_v28 }
  0xda   :  { %v192_v31 = vadd.f32 %v8707_v29, %v7622_v22 }
  0xdb   :  { %v186_v34 = vpop.f32.mrf.mxu1  ;;  %8724 = vmatprep.mubr.msk.f32.mxu0 %vm218_vm2, %v10122_v30  ;;  %8768 = vmatprep.mubr.msk.f32.mxu1 %vm218_vm2, %v10122_v30 }
  0xdc   :  { %v187_v36 = vadd.f32 %v7622_v22, %v186_v34  ;;  %v10139_v38 = vadd.f32 %v198_v32, %v192_v31  ;;  %8725 = vmatmul.mubr.msk.f32.vlgmr.msra.gmra.mxu0 %vm218_vm2, %v10127_v33  ;;  %8769 = vmatmul.mubr.msk.f32.vlgmr.msra.gmra.mxu1 %vm218_vm2, %v10127_v33 }
  0xdd   :  { %8731 = vmatpush3.msra.mxu0 %v323_v21 }
  0xde   :  { %v10145_v39 = vadd.f32 %v197_v35, %v187_v36  ;;  %8732 = vmatprep.subr.mxu0 %v322_v37 }
  0xdf   :  { %8733 = vmatpush3.msra.mxu0 %v322_v37 }
  0xe0   :  { %8727 = vmatprep.mubr.msk.f32.mxu0 %vm218_vm2, %v10145_v39  ;;  %8734 = vmatprep.subr.mxu0 %v321_v40 }
  0xe1   :  { %8728 = vmatmul.mubr.msk.f32.gmra.mxu0 %vm218_vm2, %v10139_v38  ;;  %8771 = vmatprep.mubr.msk.f32.mxu1 %vm218_vm2, %v10145_v39 }
  0xe2   :  { %8735 = vmatpush3.msra.mxu0 %v321_v40  ;;  %8746 = vmatprep.mubr.msk.f32.mxu0 %vm218_vm2, %v10122_v30 }
  0xe3   :  { %8736 = vmatprep.subr.mxu0 %v320_v41  ;;  %8772 = vmatmul.mubr.msk.f32.gmra.mxu1 %vm218_vm2, %v10139_v38 }
  0xe4   :  { %8737 = vmatpush3.msra.mxu0 %v320_v41 }
  0xe5   :  { %8738 = vmatprep.subr.mxu0 %v319_v42 }
  0xe6   :  { %8739 = vmatpush3.msra.mxu0 %v319_v42 }
  0xe7   :  { %8740 = vmatprep.subr.mxu0 %v318_v43 }
  0xe8   :  { %8741 = vmatpush3.msra.mxu0 %v318_v43 }
  0xe9   :  { %8742 = vmatprep.subr.mxu0 %v317_v44 }
  0xea   :  { %8743 = vmatpush3.msra.mxu0 %v317_v44 }
  0xeb   :  { %8744 = vmatprep.subr.mxu0 %v316_v45 }
  0xec   :  { %8745 = vmatpush3.msra.mxu0 %v316_v45  ;;  %v7676_v45 = vld [vmem:[%s11762_s8 + $0x78] sm:$0xff] }
  0xed   :  { %8747 = vmatmul.mubr.msk.f32.vlgmr.msra.gmra.mxu0 %vm218_vm2, %v10127_v33 }
  0xee   :  { %8749 = vmatprep.mubr.msk.f32.mxu0 %vm218_vm2, %v10145_v39 }
  0xf1   :  { %8750 = vmatmul.mubr.msk.f32.gmra.mxu0 %vm218_vm2, %v10139_v38 }
 0x19c   :  { %v8726_v46 = vpop.f32.mrf.mxu0  ;;  %v8770_v47 = vpop.f32.mrf.mxu1 }
 0x19d   :  { %v303_v3 = vadd.f32 %v8726_v46, %v7628_v48  ;;  %v503_v6 = vadd.f32 %v8770_v47, %v7638_v52  ;;  %v7662_v46 = vld [vmem:[%s11760_s9 + $0x78] sm:$0xff] }
 0x19e   :  { %v297_v49 = vpop.f32.mrf.mxu0  ;;  %v497_v51 = vpop.f32.mrf.mxu1 }
 0x19f   :  { %v298_v50 = vadd.f32 %v7628_v48, %v297_v49  ;;  %v498_v8 = vadd.f32 %v7638_v52, %v497_v51 }
 0x1a1   :  { %8778 = vmatprep.mubr.msk.f32.mxu0 %vm516_vm3, %v298_v50  ;;  %v8729_v56 = vpop.f32.mrf.mxu0 }
 0x1a2   :  { %v313_v7 = vadd.f32 %v8729_v56, %v7628_v48 }
 0x1a3   :  { %v8773_v53 = vpop.f32.mrf.mxu1  ;;  %v307_v58 = vpop.f32.mrf.mxu0 }
 0x1a4   :  { %v513_v54 = vadd.f32 %v8773_v53, %v7638_v52  ;;  %v308_v4 = vadd.f32 %v7628_v48, %v307_v58 }
 0x1a5   :  { %v507_v55 = vpop.f32.mrf.mxu1 }
 0x1a6   :  { %v508_v57 = vadd.f32 %v7638_v52, %v507_v55  ;;  %8795 = vmatprep.subr.mxu1 %v513_v54 }
 0x1a7   :  { %8796 = vmatpush3.msra.mxu1 %v513_v54 }
 0x1a8   :  { %8797 = vmatprep.subr.mxu1 %v508_v57 }
 0x1a9   :  { %8798 = vmatpush3.msra.mxu1 %v508_v57  ;;  %v7675_v57 = vld [vmem:[%s11762_s8 + $0x70] sm:$0xff] }
 0x1aa   :  { %8824 = vmatprep.subr.mxu1 %v7676_v45 }
 0x1ad   :  { %v8748_v60 = vpop.f32.mrf.mxu0 }
 0x1ae   :  { %v403_v61 = vadd.f32 %v8748_v60, %v7633_v59 }
 0x1af   :  { %v397_v62 = vpop.f32.mrf.mxu0 }
 0x1b0   :  { %v398_v63 = vadd.f32 %v7633_v59, %v397_v62  ;;  %8774 = vmatprep.subr.msk.mxu0 %vm516_vm3, %v403_v61  ;;  %v7673_v62 = vld [vmem:[%s11762_s8 + $0x60] sm:$0xff] }
 0x1b1   :  { %v8751_v0 = vpop.f32.mrf.mxu0  ;;  %8775 = vmatpush3.xpose.msk.msra.mxu0 %vm516_vm3, %v403_v61  ;;  %v7661_v61 = vld [vmem:[%s11760_s9 + $0x70] sm:$0xff] }
 0x1b2   :  { %8776 = vmatprep.subr.msk.mxu0 %vm516_vm3, %v398_v63  ;;  %v413_v1 = vadd.f32 %v8751_v0, %v7633_v59  ;;  %v7672_v0 = vld [vmem:[%s11762_s8 + $0x58] sm:$0xff] }
 0x1b3   :  { %v407_v2 = vpop.f32.mrf.mxu0 }
 0x1b4   :  { %v408_v5 = vadd.f32 %v7633_v59, %v407_v2  ;;  %v7674_v59 = vld [vmem:[%s11762_s8 + $0x68] sm:$0xff]  ;;  %v7671_v2 = vld [vmem:[%s11762_s8 + $0x50] sm:$0xff] }
 0x1b5   :  { %8777 = vmatpush3.xpose.msk.msra.mxu0 %vm516_vm3, %v398_v63  ;;  %v7660_v63 = vld [vmem:[%s11760_s9 + $0x68] sm:$0xff] }
 0x1b6   :  { %8781 = vmatprep.subr.msk.mxu0 %vm516_vm3, %v413_v1 }
 0x1b8   :  { %8779 = vmatmul.mubr.msk.f32.vlgmr.msra.gmra.mxu0 %vm516_vm3, %v303_v3  ;;  %v7658_v3 = vld [vmem:[%s11760_s9 + $0x58] sm:$0xff] }
 0x1b9   :  { %8782 = vmatpush3.xpose.msk.msra.mxu0 %vm516_vm3, %v413_v1  ;;  %8785 = vmatprep.mubr.msk.f32.mxu0 %vm516_vm3, %v308_v4  ;;  %v7659_v1 = vld [vmem:[%s11760_s9 + $0x60] sm:$0xff]  ;;  %v7670_v4 = vld [vmem:[%s11762_s8 + $0x48] sm:$0xff] }
 0x1ba   :  { %8783 = vmatprep.subr.msk.mxu0 %vm516_vm3, %v408_v5 }
 0x1bd   :  { %8784 = vmatpush3.xpose.msk.msra.mxu0 %vm516_vm3, %v408_v5  ;;  %v7657_v5 = vld [vmem:[%s11760_s9 + $0x50] sm:$0xff] }
 0x1be   :  { %8788 = vmatprep.subr.mxu0 %v503_v6 }
 0x1c0   :  { %8786 = vmatmul.mubr.msk.f32.vlgmr.msra.gmra.mxu0 %vm516_vm3, %v313_v7  ;;  %v7656_v7 = vld [vmem:[%s11760_s9 + $0x48] sm:$0xff] }
 0x1c1   :  { %8789 = vmatpush3.msra.mxu0 %v503_v6  ;;  %v7669_v6 = vld [vmem:[%s11762_s8 + $0x40] sm:$0xff] }
 0x1c2   :  { %8790 = vmatprep.subr.mxu0 %v498_v8 }
 0x1c3   :  { %8791 = vmatpush3.msra.mxu0 %v498_v8  ;;  %v7655_v8 = vld [vmem:[%s11760_s9 + $0x40] sm:$0xff] }
 0x1c4   :  { %8802 = vmatprep.subr.mxu0 %v7662_v46 }
 0x278   :  { %v8780_v9 = vpop.f32.mrf.mxu0 }
 0x279   :  { %v692_v12 = vmul.f32 0.25, %v8780_v9  ;;  %v7690_v9 = vld [vmem:[%s11761_s29 + $0x78] sm:$0xff] }
 0x27a   :  { %v595_v10 = vpop.f32.mrf.mxu0 }
 0x27b   :  { %v691_v11 = vmul.f32 0.25, %v595_v10  ;;  %v698_v15 = vsel %vm516_vm3, %v692_v12, -inf  ;;  %v7689_v10 = vld [vmem:[%s11761_s29 + $0x70] sm:$0xff] }
 0x27d   :  { %v695_v13 = vsel %vm516_vm3, %v691_v11, -inf }
 0x27e   :  { %696 = vmax.xlane.f32.xlu1 %v695_v13  ;;  %v7686_v13 = vld [vmem:[%s11761_s29 + $0x58] sm:$0xff] }
 0x280   :  { %v8787_v14 = vpop.f32.mrf.mxu0 }
 0x281   :  { %v694_v18 = vmul.f32 0.25, %v8787_v14  ;;  %v7685_v14 = vld [vmem:[%s11761_s29 + $0x50] sm:$0xff] }
 0x282   :  { %699 = vmax.xlane.f32.xlu1 %v698_v15  ;;  %v682_v16 = vpop.f32.mrf.mxu0  ;;  %v7684_v15 = vld [vmem:[%s11761_s29 + $0x48] sm:$0xff] }
 0x283   :  { %v693_v17 = vmul.f32 0.25, %v682_v16  ;;  %v704_v20 = vsel %vm516_vm3, %v694_v18, -inf  ;;  %v7683_v16 = vld [vmem:[%s11761_s29 + $0x40] sm:$0xff] }
 0x285   :  { %v701_v19 = vsel %vm516_vm3, %v693_v17, -inf }
 0x286   :  { %702 = vmax.xlane.f32.xlu0 %v701_v19 }
 0x28a   :  { %705 = vmax.xlane.f32.xlu0 %v704_v20  ;;  %v7678_v20 = vld [vmem:[%s11767_s26 + $0x1] ss:$0 sm:$0xff] }
 0x307   :  { %v697_v21 = vpop.xlane.xlu1 %696 }
 0x308   :  { %v707_v22 = vsub.f32 %v691_v11, %v697_v21  ;;  %v7688_v11 = vld [vmem:[%s11761_s29 + $0x68] sm:$0xff] }
 0x30a   :  { %v711_v26 = vmul.f32 1.442695, %v707_v22 }
 0x30b   :  { %v700_v23 = vpop.xlane.xlu1 %699 }
 0x30c   :  { %v708_v27 = vsub.f32 %v692_v12, %v700_v23  ;;  %v7687_v12 = vld [vmem:[%s11761_s29 + $0x60] sm:$0xff] }
 0x30e   :  { %v713_v32 = vmul.f32 1.442695, %v708_v27 }
 0x30f   :  { %v703_v24 = vpop.xlane.xlu0 %702 }
 0x310   :  { %v709_v25 = vsub.f32 %v693_v17, %v703_v24 }
 0x312   :  { %v715_v28 = vmul.f32 1.442695, %v709_v25 }
 0x313   :  { %v706_v29 = vpop.xlane.xlu0 %705 }
 0x314   :  { %9728 = vpow2.f32 %v715_v28  ;;  %v710_v31 = vsub.f32 %v694_v18, %v706_v29  ;;  %v7664_v28 = vld [vmem:[%s11765_s0 + $0x1] ss:$0 sm:$0xff] }
 0x315   :  { %9730 = vpow2.f32 %v711_v26 }
 0x316   :  { %v717_v34 = vmul.f32 1.442695, %v710_v31 }
 0x318   :  { %9732 = vpow2.f32 %v717_v34 }
 0x319   :  { %9734 = vpow2.f32 %v713_v32 }
 0x321   :  { %v9729_v35 = vpop.eup %9728 }
 0x322   :  { %v725_v36 = vsel %vm516_vm3, %v9729_v35, 0.0  ;;  %v9731_v37 = vpop.eup %9730 }
 0x323   :  { %726 = vadd.xlane.f32.xlu0 %v725_v36  ;;  %v719_v41 = vsel %vm516_vm3, %v9731_v37, 0.0 }
 0x325   :  { %v9733_v40 = vpop.eup %9732 }
 0x326   :  { %v728_v42 = vsel %vm516_vm3, %v9733_v40, 0.0  ;;  %v9735_v43 = vpop.eup %9734 }
 0x327   :  { %720 = vadd.xlane.f32.xlu0 %v719_v41  ;;  %729 = vadd.xlane.f32.xlu1 %v728_v42  ;;  %v722_v44 = vsel %vm516_vm3, %v9735_v43, 0.0 }
 0x32b   :  { %723 = vadd.xlane.f32.xlu1 %v722_v44 }
 0x3ac   :  { %v727_v47 = vpop.xlane.xlu0 %726 }
 0x3ad   :  { %9736 = vrcp.f32 %v727_v47 }
 0x3b0   :  { %v730_v48 = vpop.xlane.xlu1 %729  ;;  %v721_v49 = vpop.xlane.xlu0 %720 }
 0x3b1   :  { %9738 = vrcp.f32 %v730_v48 }
 0x3b2   :  { %9740 = vrcp.f32 %v721_v49 }
 0x3b4   :  { %v724_v50 = vpop.xlane.xlu1 %723 }
 0x3b5   :  { %9742 = vrcp.f32 %v724_v50 }
 0x3ba   :  { %v9737_v51 = vpop.eup %9736 }
 0x3bb   :  { %v737_v52 = vmul.f32 %v9737_v51, %v9729_v35 }
 0x3bd   :  { %8799 = vmatprep.mubr.msk.f32.mxu1 %vm516_vm3, %v737_v52 }
 0x3be   :  { %v9739_v53 = vpop.eup %9738 }
 0x3bf   :  { %v9741_v54 = vpop.eup %9740  ;;  %v738_v55 = vmul.f32 %v9739_v53, %v9733_v40 }
 0x3c0   :  { %v735_v56 = vmul.f32 %v9741_v54, %v9731_v37 }
 0x3c1   :  { %8800 = vmatmul.mubr.msk.f32.vlgmr.msra.gmra.mxu1 %vm516_vm3, %v738_v55 }
 0x3c2   :  { %v9743_v58 = vpop.eup %9742  ;;  %8792 = vmatprep.mubr.msk.f32.mxu0 %vm516_vm3, %v735_v56  ;;  %8825 = vmatpush3.msra.mxu1 %v7676_v45 }
 0x3c3   :  { %8826 = vmatprep.subr.mxu1 %v7675_v57  ;;  %8840 = vmatprep.mubr.msk.f32.mxu1 %vm218_vm2, %v10122_v30  ;;  %v736_v60 = vmul.f32 %v9743_v58, %v9735_v43  ;;  %v7692_v43 = vld [vmem:[%s11766_s6 + $0x1] ss:$0 sm:$0xff] }
 0x3c4   :  { %8827 = vmatpush3.msra.mxu1 %v7675_v57 }
 0x3c5   :  { %8828 = vmatprep.subr.mxu1 %v7674_v59  ;;  %8793 = vmatmul.mubr.msk.f32.vlgmr.msra.gmra.mxu0 %vm516_vm3, %v736_v60 }
 0x3c6   :  { %8803 = vmatpush3.msra.mxu0 %v7662_v46  ;;  %8829 = vmatpush3.msra.mxu1 %v7674_v59 }
 0x3c7   :  { %8804 = vmatprep.subr.mxu0 %v7661_v61  ;;  %8818 = vmatprep.mubr.msk.f32.mxu0 %vm218_vm2, %v10122_v30 }
 0x3c8   :  { %8830 = vmatprep.subr.mxu1 %v7673_v62  ;;  %8805 = vmatpush3.msra.mxu0 %v7661_v61 }
 0x3c9   :  { %8831 = vmatpush3.msra.mxu1 %v7673_v62  ;;  %8806 = vmatprep.subr.mxu0 %v7660_v63 }
 0x3ca   :  { %8832 = vmatprep.subr.mxu1 %v7672_v0  ;;  %8807 = vmatpush3.msra.mxu0 %v7660_v63 }
 0x3cb   :  { %8833 = vmatpush3.msra.mxu1 %v7672_v0  ;;  %8808 = vmatprep.subr.mxu0 %v7659_v1 }
 0x3cc   :  { %8834 = vmatprep.subr.mxu1 %v7671_v2  ;;  %8809 = vmatpush3.msra.mxu0 %v7659_v1 }
 0x3cd   :  { %8835 = vmatpush3.msra.mxu1 %v7671_v2  ;;  %8810 = vmatprep.subr.mxu0 %v7658_v3 }
 0x3ce   :  { %8836 = vmatprep.subr.mxu1 %v7670_v4  ;;  %8811 = vmatpush3.msra.mxu0 %v7658_v3 }
 0x3cf   :  { %8837 = vmatpush3.msra.mxu1 %v7670_v4  ;;  %8812 = vmatprep.subr.mxu0 %v7657_v5 }
 0x3d0   :  { %8838 = vmatprep.subr.mxu1 %v7669_v6  ;;  %8813 = vmatpush3.msra.mxu0 %v7657_v5 }
 0x3d1   :  { %8839 = vmatpush3.msra.mxu1 %v7669_v6  ;;  %8814 = vmatprep.subr.mxu0 %v7656_v7 }
 0x3d2   :  { %8841 = vmatmul.mubr.msk.f32.vlgmr.msra.gmra.mxu1 %vm218_vm2, %v10127_v33  ;;  %8815 = vmatpush3.msra.mxu0 %v7656_v7 }
 0x3d3   :  { %8843 = vmatprep.mubr.msk.f32.mxu1 %vm218_vm2, %v10145_v39  ;;  %8816 = vmatprep.subr.mxu0 %v7655_v8 }
 0x3d4   :  { %8817 = vmatpush3.msra.mxu0 %v7655_v8 }
 0x3d5   :  { %8819 = vmatmul.mubr.msk.f32.vlgmr.msra.gmra.mxu0 %vm218_vm2, %v10127_v33  ;;  %8846 = vmatprep.subr.mxu0 %v7690_v9 }
 0x3d6   :  { %8844 = vmatmul.mubr.msk.f32.gmra.mxu1 %vm218_vm2, %v10139_v38  ;;  %8821 = vmatprep.mubr.msk.f32.mxu0 %vm218_vm2, %v10145_v39 }
 0x3d7   :  { %8847 = vmatpush3.msra.mxu0 %v7690_v9 }
 0x3d8   :  { %8848 = vmatprep.subr.mxu0 %v7689_v10 }
 0x3d9   :  { %8849 = vmatpush3.msra.mxu0 %v7689_v10 }
 0x3da   :  { %8822 = vmatmul.mubr.msk.f32.gmra.mxu0 %vm218_vm2, %v10139_v38  ;;  %8850 = vmatprep.subr.mxu0 %v7688_v11 }
 0x3db   :  { %8851 = vmatpush3.msra.mxu0 %v7688_v11  ;;  %8862 = vmatprep.mubr.msk.f32.mxu0 %vm218_vm2, %v10122_v30 }
 0x3dc   :  { %8852 = vmatprep.subr.mxu0 %v7687_v12 }
 0x3dd   :  { %8853 = vmatpush3.msra.mxu0 %v7687_v12 }
 0x3de   :  { %8854 = vmatprep.subr.mxu0 %v7686_v13 }
 0x3df   :  { %8855 = vmatpush3.msra.mxu0 %v7686_v13 }
 0x3e0   :  { %8856 = vmatprep.subr.mxu0 %v7685_v14 }
 0x3e1   :  { %8857 = vmatpush3.msra.mxu0 %v7685_v14 }
 0x3e2   :  { %8858 = vmatprep.subr.mxu0 %v7684_v15 }
 0x3e3   :  { %8859 = vmatpush3.msra.mxu0 %v7684_v15 }
 0x3e4   :  { %8860 = vmatprep.subr.mxu0 %v7683_v16 }
 0x3e5   :  { %8861 = vmatpush3.msra.mxu0 %v7683_v16 }
 0x3e6   :  { %8863 = vmatmul.mubr.msk.f32.vlgmr.msra.gmra.mxu0 %vm218_vm2, %v10127_v33 }
 0x3e7   :  { %8865 = vmatprep.mubr.msk.f32.mxu0 %vm218_vm2, %v10145_v39 }
 0x3ea   :  { %8866 = vmatmul.mubr.msk.f32.gmra.mxu0 %vm218_vm2, %v10139_v38 }
 0x481   :  { %v10310_v17 = vpop.f32.mrf.mxu1 }
 0x483   :  { %v10314_v19 = vpop.f32.mrf.mxu1 }
 0x485   :  { %v10312_v18 = vpop.f32.mrf.mxu0 }
 0x487   :  { %v10319_v22 = vpop.f32.mrf.mxu0 }
 0x492   :  { %v8842_v21 = vpop.f32.mrf.mxu1 }
 0x493   :  { %v1094_v23 = vadd.f32 %v8842_v21, %v7678_v20 }
 0x494   :  { %v1088_v24 = vpop.f32.mrf.mxu1 }
 0x495   :  { %v1089_v25 = vadd.f32 %v7678_v20, %v1088_v24  ;;  %8868 = vmatprep.subr.msk.mxu1 %vm516_vm3, %v1094_v23  ;;  %v8820_v26 = vpop.f32.mrf.mxu0  ;;  %v902_v24 = vld [vmem:[%s11724_s10 + $0x8] sm:$0xff] }
 0x496   :  { %v8845_v27 = vpop.f32.mrf.mxu1  ;;  %8869 = vmatpush3.xpose.msk.msra.mxu1 %vm516_vm3, %v1094_v23  ;;  %v992_v36 = vadd.f32 %v8820_v26, %v7664_v28 }
 0x497   :  { %8870 = vmatprep.subr.msk.mxu1 %vm516_vm3, %v1089_v25  ;;  %v986_v29 = vpop.f32.mrf.mxu0  ;;  %v1104_v32 = vadd.f32 %v8845_v27, %v7678_v20 }
 0x498   :  { %v987_v31 = vadd.f32 %v7664_v28, %v986_v29  ;;  %v1098_v34 = vpop.f32.mrf.mxu1 }
 0x499   :  { %v1099_v40 = vadd.f32 %v7678_v20, %v1098_v34 }
 0x49a   :  { %v8823_v35 = vpop.f32.mrf.mxu0  ;;  %8871 = vmatpush3.xpose.msk.msra.mxu1 %vm516_vm3, %v1089_v25  ;;  %8872 = vmatprep.mubr.msk.f32.mxu1 %vm516_vm3, %v987_v31  ;;  %v7710_v25 = vld [vmem:[%s11724_s10 + $0x18] sm:$0xff] }
 0x49b   :  { %8875 = vmatprep.subr.msk.mxu1 %vm516_vm3, %v1104_v32  ;;  %v1002_v42 = vadd.f32 %v8823_v35, %v7664_v28 }
 0x49c   :  { %v996_v37 = vpop.f32.mrf.mxu0 }
 0x49d   :  { %v997_v41 = vadd.f32 %v7664_v28, %v996_v37  ;;  %8873 = vmatmul.mubr.msk.f32.vlgmr.msra.gmra.mxu1 %vm516_vm3, %v992_v36 }
 0x49e   :  { %8876 = vmatpush3.xpose.msk.msra.mxu1 %vm516_vm3, %v1104_v32 }
 0x49f   :  { %8877 = vmatprep.subr.msk.mxu1 %vm516_vm3, %v1099_v40  ;;  %8879 = vmatprep.mubr.msk.f32.mxu1 %vm516_vm3, %v997_v41 }
 0x4a2   :  { %8878 = vmatpush3.xpose.msk.msra.mxu1 %vm516_vm3, %v1099_v40 }
 0x4a5   :  { %8880 = vmatmul.mubr.msk.f32.vlgmr.msra.gmra.mxu1 %vm516_vm3, %v1002_v42  ;;  %v901_v42 = vld [vmem:[%s11724_s10] sm:$0xff] }
 0x4a6   :  { %v8864_v44 = vpop.f32.mrf.mxu0 }
 0x4a7   :  { %v1196_v45 = vadd.f32 %v8864_v44, %v7692_v43  ;;  %v7739_v44 = vld [vmem:[%s11762_s8 + $0xb0] sm:$0xff] }
 0x4a8   :  { %v1190_v46 = vpop.f32.mrf.mxu0 }
 0x4a9   :  { %v1191_v47 = vadd.f32 %v7692_v43, %v1190_v46  ;;  %8882 = vmatprep.subr.mxu1 %v1196_v45  ;;  %v7733_v46 = vld [vmem:[%s11762_s8 + $0x80] sm:$0xff] }
 0x4aa   :  { %v8867_v48 = vpop.f32.mrf.mxu0  ;;  %8883 = vmatpush3.msra.mxu1 %v1196_v45  ;;  %v7737_v45 = vld [vmem:[%s11762_s8 + $0xa0] sm:$0xff] }
 0x4ab   :  { %v1206_v49 = vadd.f32 %v8867_v48, %v7692_v43  ;;  %8884 = vmatprep.subr.mxu1 %v1191_v47  ;;  %v7726_v48 = vld [vmem:[%s11760_s9 + $0xb8] sm:$0xff] }
 0x4ac   :  { %v1200_v50 = vpop.f32.mrf.mxu0  ;;  %8885 = vmatpush3.msra.mxu1 %v1191_v47  ;;  %v7709_v47 = vld [vmem:[%s11724_s10 + $0x10] sm:$0xff] }
 0x4ad   :  { %v1201_v51 = vadd.f32 %v7692_v43, %v1200_v50  ;;  %8889 = vmatprep.subr.mxu0 %v1206_v49  ;;  %8896 = vmatprep.subr.mxu1 %v7710_v25  ;;  %v7740_v43 = vld [vmem:[%s11762_s8 + $0xb8] sm:$0xff] }
 0x4ae   :  { %8890 = vmatpush3.msra.mxu0 %v1206_v49 }
 0x4af   :  { %8891 = vmatprep.subr.mxu0 %v1201_v51 }
 0x4b0   :  { %8892 = vmatpush3.msra.mxu0 %v1201_v51  ;;  %v7725_v51 = vld [vmem:[%s11760_s9 + $0xb0] sm:$0xff] }
 0x4b1   :  { %8906 = vmatprep.subr.mxu0 %v902_v24 }
 0x55d   :  { %v8874_v52 = vpop.f32.mrf.mxu1 }
 0x55e   :  { %v1384_v53 = vmul.f32 0.25, %v8874_v52  ;;  %v7724_v52 = vld [vmem:[%s11760_s9 + $0xa8] sm:$0xff] }
 0x55f   :  { %v1287_v54 = vpop.f32.mrf.mxu1 }
 0x560   :  { %v1383_v55 = vmul.f32 0.25, %v1287_v54  ;;  %v1390_v56 = vsel %vm516_vm3, %v1384_v53, -inf }
 0x561   :  { %1391 = vmax.xlane.f32.xlu1 %v1390_v56 }
 0x562   :  { %v1387_v57 = vsel %vm516_vm3, %v1383_v55, -inf }
 0x563   :  { %1388 = vmax.xlane.f32.xlu0 %v1387_v57  ;;  %v7721_v57 = vld [vmem:[%s11760_s9 + $0x90] sm:$0xff] }
 0x565   :  { %v8881_v58 = vpop.f32.mrf.mxu1 }
 0x566   :  { %v1386_v59 = vmul.f32 0.25, %v8881_v58  ;;  %v7720_v58 = vld [vmem:[%s11760_s9 + $0x88] sm:$0xff] }
 0x567   :  { %v1374_v60 = vpop.f32.mrf.mxu1 }
 0x568   :  { %v1385_v61 = vmul.f32 0.25, %v1374_v60  ;;  %v1396_v62 = vsel %vm516_vm3, %v1386_v59, -inf  ;;  %v7719_v60 = vld [vmem:[%s11760_s9 + $0x80] sm:$0xff] }
 0x569   :  { %1397 = vmax.xlane.f32.xlu1 %v1396_v62 }
 0x56a   :  { %v1393_v63 = vsel %vm516_vm3, %v1385_v61, -inf }
 0x56b   :  { %1394 = vmax.xlane.f32.xlu0 %v1393_v63  ;;  %v7753_v63 = vld [vmem:[%s11761_s29 + $0xb0] sm:$0xff] }
 0x5ea   :  { %v1392_v0 = vpop.xlane.xlu1 %1391 }
 0x5eb   :  { %v1400_v1 = vsub.f32 %v1384_v53, %v1392_v0  ;;  %v7723_v53 = vld [vmem:[%s11760_s9 + $0xa0] sm:$0xff]  ;;  %v7752_v0 = vld [vmem:[%s11761_s29 + $0xa8] sm:$0xff] }
 0x5ec   :  { %v1389_v2 = vpop.xlane.xlu0 %1388 }
 0x5ed   :  { %v1405_v3 = vmul.f32 1.442695, %v1400_v1  ;;  %v1399_v4 = vsub.f32 %v1383_v55, %v1389_v2  ;;  %v7722_v55 = vld [vmem:[%s11760_s9 + $0x98] sm:$0xff]  ;;  %v7751_v2 = vld [vmem:[%s11761_s29 + $0xa0] sm:$0xff] }
 0x5ef   :  { %9744 = vpow2.f32 %v1405_v3  ;;  %v1403_v5 = vmul.f32 1.442695, %v1399_v4  ;;  %v7750_v3 = vld [vmem:[%s11761_s29 + $0x98] sm:$0xff] }
 0x5f1   :  { %9746 = vpow2.f32 %v1403_v5  ;;  %v7742_v5 = vld [vmem:[%s11767_s26 + $0x2] ss:$0 sm:$0xff] }
 0x5f2   :  { %v1398_v6 = vpop.xlane.xlu1 %1397 }
 0x5f3   :  { %v1402_v7 = vsub.f32 %v1386_v59, %v1398_v6  ;;  %v7749_v6 = vld [vmem:[%s11761_s29 + $0x90] sm:$0xff] }
 0x5f4   :  { %v1395_v8 = vpop.xlane.xlu0 %1394 }
 0x5f5   :  { %v1409_v9 = vmul.f32 1.442695, %v1402_v7  ;;  %v1401_v10 = vsub.f32 %v1385_v61, %v1395_v8  ;;  %v7754_v61 = vld [vmem:[%s11761_s29 + $0xb8] sm:$0xff] }
 0x5f7   :  { %9748 = vpow2.f32 %v1409_v9  ;;  %v1407_v11 = vmul.f32 1.442695, %v1401_v10  ;;  %v7748_v9 = vld [vmem:[%s11761_s29 + $0x88] sm:$0xff] }
 0x5f9   :  { %9750 = vpow2.f32 %v1407_v11 }
 0x5fc   :  { %v9745_v12 = vpop.eup %9744 }
 0x5fd   :  { %v1414_v13 = vsel %vm516_vm3, %v9745_v12, 0.0 }
 0x5fe   :  { %v9747_v14 = vpop.eup %9746  ;;  %1415 = vadd.xlane.f32.xlu1 %v1414_v13 }
 0x5ff   :  { %v1411_v15 = vsel %vm516_vm3, %v9747_v14, 0.0 }
 0x600   :  { %1412 = vadd.xlane.f32.xlu0 %v1411_v15 }
 0x604   :  { %v9749_v16 = vpop.eup %9748 }
 0x605   :  { %v1420_v20 = vsel %vm516_vm3, %v9749_v16, 0.0 }
 0x606   :  { %v9751_v21 = vpop.eup %9750  ;;  %1421 = vadd.xlane.f32.xlu1 %v1420_v20 }
 0x607   :  { %v1417_v23 = vsel %vm516_vm3, %v9751_v21, 0.0 }
 0x608   :  { %1418 = vadd.xlane.f32.xlu0 %v1417_v23 }
 0x687   :  { %v1416_v26 = vpop.xlane.xlu1 %1415 }
 0x688   :  { %9752 = vrcp.f32 %v1416_v26 }
 0x689   :  { %v1413_v27 = vpop.xlane.xlu0 %1412 }
 0x68a   :  { %9754 = vrcp.f32 %v1413_v27 }
 0x68f   :  { %v1422_v28 = vpop.xlane.xlu1 %1421 }
 0x690   :  { %9756 = vrcp.f32 %v1422_v28 }
 0x691   :  { %v1419_v29 = vpop.xlane.xlu0 %1418 }
 0x692   :  { %9758 = vrcp.f32 %v1419_v29 }
 0x695   :  { %v9753_v31 = vpop.eup %9752 }
 0x696   :  { %v1428_v35 = vmul.f32 %v9753_v31, %v9745_v12  ;;  %v7747_v12 = vld [vmem:[%s11761_s29 + $0x80] sm:$0xff] }
 0x697   :  { %v9755_v32 = vpop.eup %9754 }
 0x698   :  { %v1427_v34 = vmul.f32 %v9755_v32, %v9747_v14 }
 0x69a   :  { %8886 = vmatprep.mubr.msk.f32.mxu1 %vm516_vm3, %v1427_v34 }
 0x69b   :  { %8887 = vmatmul.mubr.msk.f32.vlgmr.msra.gmra.mxu1 %vm516_vm3, %v1428_v35 }
 0x69c   :  { %8897 = vmatpush3.msra.mxu1 %v7710_v25 }
 0x69d   :  { %v9757_v36 = vpop.eup %9756  ;;  %8898 = vmatprep.subr.mxu1 %v7709_v47 }
 0x69e   :  { %v1430_v41 = vmul.f32 %v9757_v36, %v9749_v16  ;;  %8899 = vmatpush3.msra.mxu1 %v7709_v47  ;;  %v7756_v36 = vld [vmem:[%s11766_s6 + $0x2] ss:$0 sm:$0xff] }
 0x69f   :  { %v9759_v37 = vpop.eup %9758  ;;  %8916 = vmatprep.subr.mxu1 %v7726_v48 }
 0x6a0   :  { %v1429_v40 = vmul.f32 %v9759_v37, %v9751_v21 }
 0x6a2   :  { %8893 = vmatprep.mubr.msk.f32.mxu0 %vm516_vm3, %v1429_v40 }
 0x6a3   :  { %8894 = vmatmul.mubr.msk.f32.vlgmr.msra.gmra.mxu0 %vm516_vm3, %v1430_v41 }
 0x6a4   :  { %8907 = vmatpush3.msra.mxu0 %v902_v24  ;;  %8910 = vmatprep.mubr.msk.f32.mxu0 %vm516_vm3, %v10319_v22  ;;  %v7738_v22 = vld [vmem:[%s11762_s8 + $0xa8] sm:$0xff]  ;;  %v7728_v24 = vld [vmem:[%s11765_s0 + $0x2] ss:$0 sm:$0xff] }
 0x6a5   :  { %8908 = vmatprep.subr.mxu0 %v901_v42 }
 0x6a6   :  { %8909 = vmatpush3.msra.mxu0 %v901_v42 }
 0x6a7   :  { %8938 = vmatprep.subr.mxu0 %v7740_v43  ;;  %8911 = vmatmul.mubr.msk.f32.vlgmr.msra.gmra.mxu0 %vm516_vm3, %v10312_v18  ;;  %v7736_v18 = vld [vmem:[%s11762_s8 + $0x98] sm:$0xff] }
 0x6a8   :  { %8939 = vmatpush3.msra.mxu0 %v7740_v43  ;;  %8913 = vmatprep.mubr.msk.f32.mxu0 %vm516_vm3, %v10314_v19  ;;  %v7735_v19 = vld [vmem:[%s11762_s8 + $0x90] sm:$0xff] }
 0x6a9   :  { %8940 = vmatprep.subr.mxu0 %v7739_v44 }
 0x6aa   :  { %8941 = vmatpush3.msra.mxu0 %v7739_v44 }
 0x6ab   :  { %8942 = vmatprep.subr.mxu0 %v7738_v22  ;;  %8914 = vmatmul.mubr.msk.f32.gmra.mxu0 %vm516_vm3, %v10310_v17  ;;  %v7734_v17 = vld [vmem:[%s11762_s8 + $0x88] sm:$0xff] }
 0x6ac   :  { %8943 = vmatpush3.msra.mxu0 %v7738_v22  ;;  %8954 = vmatprep.mubr.msk.f32.mxu0 %vm218_vm2, %v10122_v30 }
 0x6ad   :  { %8944 = vmatprep.subr.mxu0 %v7737_v45 }
 0x6ae   :  { %8945 = vmatpush3.msra.mxu0 %v7737_v45 }
 0x6af   :  { %8946 = vmatprep.subr.mxu0 %v7736_v18 }
 0x6b0   :  { %8947 = vmatpush3.msra.mxu0 %v7736_v18 }
 0x6b1   :  { %8948 = vmatprep.subr.mxu0 %v7735_v19 }
 0x6b2   :  { %8949 = vmatpush3.msra.mxu0 %v7735_v19 }
 0x6b3   :  { %8950 = vmatprep.subr.mxu0 %v7734_v17 }
 0x6b4   :  { %8951 = vmatpush3.msra.mxu0 %v7734_v17 }
 0x6b5   :  { %8952 = vmatprep.subr.mxu0 %v7733_v46 }
 0x6b6   :  { %8953 = vmatpush3.msra.mxu0 %v7733_v46 }
 0x6b7   :  { %8955 = vmatmul.mubr.msk.f32.vlgmr.msra.gmra.mxu0 %vm218_vm2, %v10127_v33 }
 0x6b8   :  { %8957 = vmatprep.mubr.msk.f32.mxu0 %vm218_vm2, %v10145_v39 }
 0x6bb   :  { %8958 = vmatmul.mubr.msk.f32.gmra.mxu0 %vm218_vm2, %v10139_v38 }
 0x75b   :  { %v8888_v49 = vpop.f32.mrf.mxu1 }
 0x75d   :  { %v1503_v50 = vpop.f32.mrf.mxu1 }
 0x75e   :  { %8900 = vmatprep.mubr.msk.f32.mxu1 %vm516_vm3, %v1503_v50 }
 0x75f   :  { %8901 = vmatmul.mubr.msk.f32.vlgmr.msra.gmra.mxu1 %vm516_vm3, %v8888_v49 }
 0x760   :  { %8917 = vmatpush3.msra.mxu1 %v7726_v48 }
 0x761   :  { %8918 = vmatprep.subr.mxu1 %v7725_v51 }
 0x762   :  { %8919 = vmatpush3.msra.mxu1 %v7725_v51 }
 0x763   :  { %8920 = vmatprep.subr.mxu1 %v7724_v52  ;;  %v8895_v54 = vpop.f32.mrf.mxu0 }
 0x764   :  { %8921 = vmatpush3.msra.mxu1 %v7724_v52 }
 0x765   :  { %8922 = vmatprep.subr.mxu1 %v7723_v53  ;;  %v1584_v56 = vpop.f32.mrf.mxu0 }
 0x766   :  { %8923 = vmatpush3.msra.mxu1 %v7723_v53  ;;  %8903 = vmatprep.mubr.msk.f32.mxu1 %vm516_vm3, %v1584_v56 }
 0x767   :  { %8924 = vmatprep.subr.mxu1 %v7722_v55  ;;  %8904 = vmatmul.mubr.msk.f32.gmra.mxu1 %vm516_vm3, %v8895_v54  ;;  %v10430_v59 = vpop.f32.mrf.mxu0 }
 0x768   :  { %8925 = vmatpush3.msra.mxu1 %v7722_v55  ;;  %8932 = vmatprep.mubr.msk.f32.mxu1 %vm218_vm2, %v10122_v30 }
 0x769   :  { %8926 = vmatprep.subr.mxu1 %v7721_v57  ;;  %v10438_v62 = vpop.f32.mrf.mxu0 }
 0x76a   :  { %8927 = vmatpush3.msra.mxu1 %v7721_v57 }
 0x76b   :  { %8928 = vmatprep.subr.mxu1 %v7720_v58  ;;  %v10450_v1 = vpop.f32.mrf.mxu0 }
 0x76c   :  { %8929 = vmatpush3.msra.mxu1 %v7720_v58 }
 0x76d   :  { %8930 = vmatprep.subr.mxu1 %v7719_v60  ;;  %v10462_v4 = vpop.f32.mrf.mxu0 }
 0x76e   :  { %8931 = vmatpush3.msra.mxu1 %v7719_v60 }
 0x76f   :  { %8933 = vmatmul.mubr.msk.f32.vlgmr.msra.gmra.mxu1 %vm218_vm2, %v10127_v33  ;;  %8960 = vmatprep.subr.mxu1 %v7754_v61 }
 0x770   :  { %8935 = vmatprep.mubr.msk.f32.mxu1 %vm218_vm2, %v10145_v39  ;;  %8961 = vmatpush3.msra.mxu1 %v7754_v61 }
 0x771   :  { %8962 = vmatprep.subr.mxu1 %v7753_v63 }
 0x772   :  { %8963 = vmatpush3.msra.mxu1 %v7753_v63 }
 0x773   :  { %8936 = vmatmul.mubr.msk.f32.gmra.mxu1 %vm218_vm2, %v10139_v38  ;;  %8964 = vmatprep.subr.mxu1 %v7752_v0 }
 0x774   :  { %8965 = vmatpush3.msra.mxu1 %v7752_v0  ;;  %8976 = vmatprep.mubr.msk.f32.mxu1 %vm218_vm2, %v10122_v30 }
 0x775   :  { %8966 = vmatprep.subr.mxu1 %v7751_v2 }
 0x776   :  { %8967 = vmatpush3.msra.mxu1 %v7751_v2 }
 0x777   :  { %v8956_v7 = vpop.f32.mrf.mxu0  ;;  %8968 = vmatprep.subr.mxu1 %v7750_v3 }
 0x778   :  { %v1981_v8 = vadd.f32 %v8956_v7, %v7742_v5  ;;  %8969 = vmatpush3.msra.mxu1 %v7750_v3 }
 0x779   :  { %v1975_v10 = vpop.f32.mrf.mxu0  ;;  %8970 = vmatprep.subr.mxu1 %v7749_v6 }
 0x77a   :  { %v1976_v11 = vadd.f32 %v7742_v5, %v1975_v10  ;;  %8971 = vmatpush3.msra.mxu1 %v7749_v6  ;;  %8982 = vmatprep.subr.msk.mxu0 %vm516_vm3, %v1981_v8 }
 0x77b   :  { %v8959_v13 = vpop.f32.mrf.mxu0  ;;  %8972 = vmatprep.subr.mxu1 %v7748_v9  ;;  %8983 = vmatpush3.xpose.msk.msra.mxu0 %vm516_vm3, %v1981_v8 }
 0x77c   :  { %8973 = vmatpush3.msra.mxu1 %v7748_v9  ;;  %8984 = vmatprep.subr.msk.mxu0 %vm516_vm3, %v1976_v11  ;;  %v1991_v14 = vadd.f32 %v8959_v13, %v7742_v5 }
 0x77d   :  { %8974 = vmatprep.subr.mxu1 %v7747_v12  ;;  %v1985_v26 = vpop.f32.mrf.mxu0 }
 0x77e   :  { %8975 = vmatpush3.msra.mxu1 %v7747_v12  ;;  %v1986_v31 = vadd.f32 %v7742_v5, %v1985_v26 }
 0x77f   :  { %8977 = vmatmul.mubr.msk.f32.vlgmr.msra.gmra.mxu1 %vm218_vm2, %v10127_v33  ;;  %8985 = vmatpush3.xpose.msk.msra.mxu0 %vm516_vm3, %v1976_v11 }
 0x780   :  { %8979 = vmatprep.mubr.msk.f32.mxu1 %vm218_vm2, %v10145_v39  ;;  %8989 = vmatprep.subr.msk.mxu0 %vm516_vm3, %v1991_v14 }
 0x783   :  { %8980 = vmatmul.mubr.msk.f32.gmra.mxu1 %vm218_vm2, %v10139_v38 }
 0x81f   :  { %v10487_v15 = vpop.f32.mrf.mxu1 }
 0x821   :  { %v10489_v16 = vpop.f32.mrf.mxu1 }
 0x827   :  { %v10491_v20 = vpop.f32.mrf.mxu1 }
 0x829   :  { %v10493_v21 = vpop.f32.mrf.mxu1 }
 0x82f   :  { %v8934_v23 = vpop.f32.mrf.mxu1 }
 0x830   :  { %v1879_v28 = vadd.f32 %v8934_v23, %v7728_v24  ;;  %v7786_v23 = vld [vmem:[%s11760_s9 + $0xf8] sm:$0xff] }
 0x831   :  { %v1873_v25 = vpop.f32.mrf.mxu1 }
 0x832   :  { %v1874_v27 = vadd.f32 %v7728_v24, %v1873_v25 }
 0x833   :  { %v8937_v29 = vpop.f32.mrf.mxu1 }
 0x834   :  { %8986 = vmatprep.mubr.msk.f32.mxu0 %vm516_vm3, %v1874_v27  ;;  %v1889_v35 = vadd.f32 %v8937_v29, %v7728_v24 }
 0x835   :  { %v1883_v32 = vpop.f32.mrf.mxu1  ;;  %8987 = vmatmul.mubr.msk.f32.vlgmr.msra.gmra.mxu0 %vm516_vm3, %v1879_v28 }
 0x836   :  { %v1884_v34 = vadd.f32 %v7728_v24, %v1883_v32  ;;  %8990 = vmatpush3.xpose.msk.msra.mxu0 %vm516_vm3, %v1991_v14  ;;  %v7774_v24 = vld [vmem:[%s11724_s10 + $0x28] sm:$0xff] }
 0x837   :  { %8991 = vmatprep.subr.msk.mxu0 %vm516_vm3, %v1986_v31 }
 0x838   :  { %8993 = vmatprep.mubr.msk.f32.mxu0 %vm516_vm3, %v1884_v34 }
 0x83a   :  { %8992 = vmatpush3.xpose.msk.msra.mxu0 %vm516_vm3, %v1986_v31 }
 0x83d   :  { %8994 = vmatmul.mubr.msk.f32.vlgmr.msra.gmra.mxu0 %vm516_vm3, %v1889_v35 }
 0x83f   :  { %v8978_v37 = vpop.f32.mrf.mxu1 }
 0x840   :  { %v2083_v40 = vadd.f32 %v8978_v37, %v7756_v36 }
 0x841   :  { %v2077_v41 = vpop.f32.mrf.mxu1 }
 0x842   :  { %v2078_v42 = vadd.f32 %v7756_v36, %v2077_v41  ;;  %8996 = vmatprep.subr.mxu0 %v2083_v40  ;;  %v7785_v41 = vld [vmem:[%s11760_s9 + $0xf0] sm:$0xff] }
 0x843   :  { %v8981_v43 = vpop.f32.mrf.mxu1  ;;  %8997 = vmatpush3.msra.mxu0 %v2083_v40 }
 0x844   :  { %v2093_v44 = vadd.f32 %v8981_v43, %v7756_v36  ;;  %8998 = vmatprep.subr.mxu0 %v2078_v42  ;;  %v7783_v43 = vld [vmem:[%s11760_s9 + $0xe0] sm:$0xff] }
 0x845   :  { %v2087_v22 = vpop.f32.mrf.mxu1  ;;  %8999 = vmatpush3.msra.mxu0 %v2078_v42  ;;  %v7784_v42 = vld [vmem:[%s11760_s9 + $0xe8] sm:$0xff] }
 0x846   :  { %v2088_v45 = vadd.f32 %v7756_v36, %v2087_v22  ;;  %9003 = vmatprep.subr.mxu1 %v2093_v44  ;;  %9010 = vmatprep.subr.mxu0 %v7774_v24  ;;  %v7781_v22 = vld [vmem:[%s11760_s9 + $0xd0] sm:$0xff] }
 0x847   :  { %9004 = vmatpush3.msra.mxu1 %v2093_v44  ;;  %v7782_v44 = vld [vmem:[%s11760_s9 + $0xd8] sm:$0xff] }
 0x848   :  { %9005 = vmatprep.subr.mxu1 %v2088_v45 }
 0x849   :  { %9006 = vmatpush3.msra.mxu1 %v2088_v45  ;;  %v7780_v45 = vld [vmem:[%s11760_s9 + $0xc8] sm:$0xff] }
 0x84a   :  { %9020 = vmatprep.subr.mxu1 %v7786_v23 }
 0x8f5   :  { %v8988_v18 = vpop.f32.mrf.mxu0 }
 0x8f6   :  { %v2271_v19 = vmul.f32 0.25, %v8988_v18  ;;  %v7779_v18 = vld [vmem:[%s11760_s9 + $0xc0] sm:$0xff] }
 0x8f7   :  { %v2174_v17 = vpop.f32.mrf.mxu0 }
 0x8f8   :  { %v2270_v46 = vmul.f32 0.25, %v2174_v17  ;;  %v2277_v47 = vsel %vm516_vm3, %v2271_v19, -inf  ;;  %v7813_v17 = vld [vmem:[%s11761_s29 + $0xf0] sm:$0xff] }
 0x8f9   :  { %2278 = vmax.xlane.f32.xlu1 %v2277_v47  ;;  %v7811_v47 = vld [vmem:[%s11761_s29 + $0xe0] sm:$0xff] }
 0x8fa   :  { %v2274_v48 = vsel %vm516_vm3, %v2270_v46, -inf }
 0x8fb   :  { %2275 = vmax.xlane.f32.xlu0 %v2274_v48  ;;  %v7810_v48 = vld [vmem:[%s11761_s29 + $0xd8] sm:$0xff] }
 0x8fd   :  { %v8995_v49 = vpop.f32.mrf.mxu0 }
 0x8fe   :  { %v2273_v50 = vmul.f32 0.25, %v8995_v49  ;;  %v7809_v49 = vld [vmem:[%s11761_s29 + $0xd0] sm:$0xff] }
 0x8ff   :  { %v2261_v51 = vpop.f32.mrf.mxu0 }
 0x900   :  { %v2272_v52 = vmul.f32 0.25, %v2261_v51  ;;  %v2283_v53 = vsel %vm516_vm3, %v2273_v50, -inf  ;;  %v7807_v51 = vld [vmem:[%s11761_s29 + $0xc0] sm:$0xff] }
 0x901   :  { %2284 = vmax.xlane.f32.xlu1 %v2283_v53  ;;  %v7800_v53 = vld [vmem:[%s11762_s8 + $0xf8] sm:$0xff] }
 0x902   :  { %v2280_v54 = vsel %vm516_vm3, %v2272_v52, -inf }
 0x903   :  { %2281 = vmax.xlane.f32.xlu0 %v2280_v54 }
 0x982   :  { %v2279_v55 = vpop.xlane.xlu1 %2278 }
 0x983   :  { %v2287_v56 = vsub.f32 %v2271_v19, %v2279_v55  ;;  %v7814_v19 = vld [vmem:[%s11761_s29 + $0xf8] sm:$0xff] }
 0x984   :  { %v2276_v57 = vpop.xlane.xlu0 %2275 }
 0x985   :  { %v2292_v58 = vmul.f32 1.442695, %v2287_v56  ;;  %v2286_v60 = vsub.f32 %v2270_v46, %v2276_v57  ;;  %v7812_v46 = vld [vmem:[%s11761_s29 + $0xe8] sm:$0xff]  ;;  %v7799_v56 = vld [vmem:[%s11762_s8 + $0xf0] sm:$0xff] }
 0x986   :  { %v7798_v57 = vld [vmem:[%s11762_s8 + $0xe8] sm:$0xff] }
 0x987   :  { %9760 = vpow2.f32 %v2292_v58  ;;  %v2290_v61 = vmul.f32 1.442695, %v2286_v60  ;;  %v7797_v58 = vld [vmem:[%s11762_s8 + $0xe0] sm:$0xff] }
 0x989   :  { %9762 = vpow2.f32 %v2290_v61  ;;  %v7796_v61 = vld [vmem:[%s11762_s8 + $0xd8] sm:$0xff] }
 0x98a   :  { %v2285_v63 = vpop.xlane.xlu1 %2284 }
 0x98b   :  { %v2289_v0 = vsub.f32 %v2273_v50, %v2285_v63  ;;  %v7808_v50 = vld [vmem:[%s11761_s29 + $0xc8] sm:$0xff] }
 0x98c   :  { %v2282_v2 = vpop.xlane.xlu0 %2281 }
 0x98d   :  { %v2296_v3 = vmul.f32 1.442695, %v2289_v0  ;;  %v2288_v5 = vsub.f32 %v2272_v52, %v2282_v2  ;;  %v7773_v52 = vld [vmem:[%s11724_s10 + $0x20] sm:$0xff]  ;;  %v7795_v0 = vld [vmem:[%s11762_s8 + $0xd0] sm:$0xff]  ;;  %v7794_v2 = vld [vmem:[%s11762_s8 + $0xc8] sm:$0xff] }
 0x98f   :  { %9764 = vpow2.f32 %v2296_v3  ;;  %v2294_v6 = vmul.f32 1.442695, %v2288_v5  ;;  %v7793_v3 = vld [vmem:[%s11762_s8 + $0xc0] sm:$0xff] }
 0x990   :  { %v7788_v5 = vld [vmem:[%s11765_s0 + $0x3] ss:$0 sm:$0xff] }
 0x991   :  { %9766 = vpow2.f32 %v2294_v6 }
 0x994   :  { %v9761_v7 = vpop.eup %9760 }
 0x995   :  { %v2301_v8 = vsel %vm516_vm3, %v9761_v7, 0.0 }
 0x996   :  { %v9763_v9 = vpop.eup %9762  ;;  %2302 = vadd.xlane.f32.xlu1 %v2301_v8 }
 0x997   :  { %v2298_v10 = vsel %vm516_vm3, %v9763_v9, 0.0 }
 0x998   :  { %2299 = vadd.xlane.f32.xlu0 %v2298_v10 }
 0x99c   :  { %v9765_v11 = vpop.eup %9764 }
 0x99d   :  { %v2307_v12 = vsel %vm516_vm3, %v9765_v11, 0.0 }
 0x99e   :  { %v9767_v13 = vpop.eup %9766  ;;  %2308 = vadd.xlane.f32.xlu1 %v2307_v12 }
 0x99f   :  { %v2304_v14 = vsel %vm516_vm3, %v9767_v13, 0.0 }
 0x9a0   :  { %2305 = vadd.xlane.f32.xlu0 %v2304_v14  ;;  %v7816_v14 = vld [vmem:[%s11766_s6 + $0x3] ss:$0 sm:$0xff] }
 0xa1f   :  { %v2303_v25 = vpop.xlane.xlu1 %2302 }
 0xa20   :  { %9768 = vrcp.f32 %v2303_v25 }
 0xa21   :  { %v2300_v26 = vpop.xlane.xlu0 %2299 }
 0xa22   :  { %9770 = vrcp.f32 %v2300_v26 }
 0xa27   :  { %v2309_v27 = vpop.xlane.xlu1 %2308 }
 0xa28   :  { %9772 = vrcp.f32 %v2309_v27 }
 0xa29   :  { %v2306_v28 = vpop.xlane.xlu0 %2305 }
 0xa2a   :  { %9774 = vrcp.f32 %v2306_v28 }
 0xa2d   :  { %v9769_v29 = vpop.eup %9768 }
 0xa2e   :  { %v2315_v34 = vmul.f32 %v9769_v29, %v9761_v7 }
 0xa2f   :  { %v9771_v31 = vpop.eup %9770 }
 0xa30   :  { %v2314_v32 = vmul.f32 %v9771_v31, %v9763_v9 }
 0xa32   :  { %9000 = vmatprep.mubr.msk.f32.mxu0 %vm516_vm3, %v2314_v32  ;;  %v1777_v32 = vadd.f32 %v10430_v59, %v10487_v15 }
 0xa33   :  { %9001 = vmatmul.mubr.msk.f32.vlgmr.msra.gmra.mxu0 %vm516_vm3, %v2315_v34 }
 0xa34   :  { %9011 = vmatpush3.msra.mxu0 %v7774_v24 }
 0xa35   :  { %v9773_v35 = vpop.eup %9772  ;;  %9012 = vmatprep.subr.mxu0 %v7773_v52 }
 0xa36   :  { %v2317_v40 = vmul.f32 %v9773_v35, %v9765_v11  ;;  %9013 = vmatpush3.msra.mxu0 %v7773_v52  ;;  %v1772_v35 = vadd.f32 %v10438_v62, %v10489_v16  ;;  %v7802_v62 = vld [vmem:[%s11767_s26 + $0x3] ss:$0 sm:$0xff] }
 0xa37   :  { %v9775_v36 = vpop.eup %9774  ;;  %9042 = vmatprep.subr.mxu0 %v7800_v53 }
 0xa38   :  { %v2316_v37 = vmul.f32 %v9775_v36, %v9767_v13 }
 0xa3a   :  { %9007 = vmatprep.mubr.msk.f32.mxu1 %vm516_vm3, %v2316_v37 }
 0xa3b   :  { %9008 = vmatmul.mubr.msk.f32.vlgmr.msra.gmra.mxu1 %vm516_vm3, %v2317_v40 }
 0xa3c   :  { %9021 = vmatpush3.msra.mxu1 %v7786_v23  ;;  %9036 = vmatprep.mubr.msk.f32.mxu1 %vm218_vm2, %v10122_v30 }
 0xa3d   :  { %9022 = vmatprep.subr.mxu1 %v7785_v41 }
 0xa3e   :  { %9023 = vmatpush3.msra.mxu1 %v7785_v41  ;;  %v1787_v41 = vadd.f32 %v10450_v1, %v10491_v20 }
 0xa3f   :  { %9024 = vmatprep.subr.mxu1 %v7784_v42 }
 0xa40   :  { %9025 = vmatpush3.msra.mxu1 %v7784_v42 }
 0xa41   :  { %9026 = vmatprep.subr.mxu1 %v7783_v43 }
 0xa42   :  { %9027 = vmatpush3.msra.mxu1 %v7783_v43  ;;  %v1782_v43 = vadd.f32 %v10462_v4, %v10493_v21 }
 0xa43   :  { %9028 = vmatprep.subr.mxu1 %v7782_v44 }
 0xa44   :  { %9029 = vmatpush3.msra.mxu1 %v7782_v44 }
 0xa45   :  { %9030 = vmatprep.subr.mxu1 %v7781_v22 }
 0xa46   :  { %9031 = vmatpush3.msra.mxu1 %v7781_v22 }
 0xa47   :  { %9032 = vmatprep.subr.mxu1 %v7780_v45 }
 0xa48   :  { %9033 = vmatpush3.msra.mxu1 %v7780_v45 }
 0xa49   :  { %9034 = vmatprep.subr.mxu1 %v7779_v18 }
 0xa4a   :  { %9035 = vmatpush3.msra.mxu1 %v7779_v18 }
 0xa4b   :  { %9037 = vmatmul.mubr.msk.f32.vlgmr.msra.gmra.mxu1 %vm218_vm2, %v10127_v33  ;;  %9064 = vmatprep.subr.mxu1 %v7814_v19 }
 0xa4c   :  { %9039 = vmatprep.mubr.msk.f32.mxu1 %vm218_vm2, %v10145_v39  ;;  %9065 = vmatpush3.msra.mxu1 %v7814_v19 }
 0xa4d   :  { %9066 = vmatprep.subr.mxu1 %v7813_v17 }
 0xa4e   :  { %9067 = vmatpush3.msra.mxu1 %v7813_v17 }
 0xa4f   :  { %9040 = vmatmul.mubr.msk.f32.gmra.mxu1 %vm218_vm2, %v10139_v38  ;;  %9068 = vmatprep.subr.mxu1 %v7812_v46 }
 0xa50   :  { %9069 = vmatpush3.msra.mxu1 %v7812_v46  ;;  %9080 = vmatprep.mubr.msk.f32.mxu1 %vm218_vm2, %v10122_v30 }
 0xa51   :  { %9070 = vmatprep.subr.mxu1 %v7811_v47 }
 0xa52   :  { %9071 = vmatpush3.msra.mxu1 %v7811_v47 }
 0xa53   :  { %9072 = vmatprep.subr.mxu1 %v7810_v48 }
 0xa54   :  { %9073 = vmatpush3.msra.mxu1 %v7810_v48 }
 0xa55   :  { %9074 = vmatprep.subr.mxu1 %v7809_v49 }
 0xa56   :  { %9075 = vmatpush3.msra.mxu1 %v7809_v49 }
 0xa57   :  { %9076 = vmatprep.subr.mxu1 %v7808_v50 }
 0xa58   :  { %9077 = vmatpush3.msra.mxu1 %v7808_v50 }
 0xa59   :  { %9078 = vmatprep.subr.mxu1 %v7807_v51 }
 0xa5a   :  { %9079 = vmatpush3.msra.mxu1 %v7807_v51 }
 0xa5b   :  { %9081 = vmatmul.mubr.msk.f32.vlgmr.msra.gmra.mxu1 %vm218_vm2, %v10127_v33 }
 0xa5c   :  { %9083 = vmatprep.mubr.msk.f32.mxu1 %vm218_vm2, %v10145_v39 }
 0xa5f   :  { %9084 = vmatmul.mubr.msk.f32.gmra.mxu1 %vm218_vm2, %v10139_v38 }
 0xaf3   :  { %v9002_v54 = vpop.f32.mrf.mxu0 }
 0xaf5   :  { %v2390_v55 = vpop.f32.mrf.mxu0 }
 0xaf6   :  { %9014 = vmatprep.mubr.msk.f32.mxu0 %vm516_vm3, %v2390_v55 }
 0xaf7   :  { %9015 = vmatmul.mubr.msk.f32.vlgmr.msra.gmra.mxu0 %vm516_vm3, %v9002_v54 }
 0xaf8   :  { %9043 = vmatpush3.msra.mxu0 %v7800_v53 }
 0xaf9   :  { %9044 = vmatprep.subr.mxu0 %v7799_v56 }
 0xafa   :  { %9045 = vmatpush3.msra.mxu0 %v7799_v56 }
 0xafb   :  { %v9009_v60 = vpop.f32.mrf.mxu1  ;;  %9046 = vmatprep.subr.mxu0 %v7798_v57 }
 0xafc   :  { %9047 = vmatpush3.msra.mxu0 %v7798_v57 }
 0xafd   :  { %v2471_v63 = vpop.f32.mrf.mxu1  ;;  %9048 = vmatprep.subr.mxu0 %v7797_v58 }
 0xafe   :  { %9017 = vmatprep.mubr.msk.f32.mxu0 %vm516_vm3, %v2471_v63  ;;  %9049 = vmatpush3.msra.mxu0 %v7797_v58 }
 0xaff   :  { %9018 = vmatmul.mubr.msk.f32.gmra.mxu0 %vm516_vm3, %v9009_v60  ;;  %9050 = vmatprep.subr.mxu0 %v7796_v61 }
 0xb00   :  { %9051 = vmatpush3.msra.mxu0 %v7796_v61  ;;  %9058 = vmatprep.mubr.msk.f32.mxu0 %vm218_vm2, %v10122_v30 }
 0xb01   :  { %9052 = vmatprep.subr.mxu0 %v7795_v0 }
 0xb02   :  { %9053 = vmatpush3.msra.mxu0 %v7795_v0 }
 0xb03   :  { %9054 = vmatprep.subr.mxu0 %v7794_v2 }
 0xb04   :  { %9055 = vmatpush3.msra.mxu0 %v7794_v2 }
 0xb05   :  { %9056 = vmatprep.subr.mxu0 %v7793_v3 }
 0xb06   :  { %9057 = vmatpush3.msra.mxu0 %v7793_v3 }
 0xb07   :  { %9059 = vmatmul.mubr.msk.f32.vlgmr.msra.gmra.mxu0 %vm218_vm2, %v10127_v33 }
 0xb08   :  { %9061 = vmatprep.mubr.msk.f32.mxu0 %vm218_vm2, %v10145_v39 }
 0xb0b   :  { %v9038_v6 = vpop.f32.mrf.mxu1  ;;  %9062 = vmatmul.mubr.msk.f32.gmra.mxu0 %vm218_vm2, %v10139_v38 }
 0xb0c   :  { %v2673_v7 = vadd.f32 %v9038_v6, %v7788_v5 }
 0xb0d   :  { %v2667_v8 = vpop.f32.mrf.mxu1 }
 0xb0e   :  { %v2668_v9 = vadd.f32 %v7788_v5, %v2667_v8 }
 0xb0f   :  { %v9041_v10 = vpop.f32.mrf.mxu1 }
 0xb10   :  { %v2683_v11 = vadd.f32 %v9041_v10, %v7788_v5  ;;  %9090 = vmatprep.mubr.msk.f32.mxu0 %vm516_vm3, %v2668_v9 }
 0xb11   :  { %v2677_v12 = vpop.f32.mrf.mxu1 }
 0xb12   :  { %v2678_v13 = vadd.f32 %v7788_v5, %v2677_v12 }
 0xb1b   :  { %v9082_v23 = vpop.f32.mrf.mxu1 }
 0xb1c   :  { %v2877_v24 = vadd.f32 %v9082_v23, %v7816_v14 }
 0xb1d   :  { %v2871_v25 = vpop.f32.mrf.mxu1 }
 0xb1e   :  { %v2872_v26 = vadd.f32 %v7816_v14, %v2871_v25 }
 0xb1f   :  { %v9085_v27 = vpop.f32.mrf.mxu1 }
 0xb20   :  { %v2887_v28 = vadd.f32 %v9085_v27, %v7816_v14 }
 0xb21   :  { %v2881_v29 = vpop.f32.mrf.mxu1 }
 0xb22   :  { %v2882_v31 = vadd.f32 %v7816_v14, %v2881_v29  ;;  %9107 = vmatprep.subr.mxu1 %v2887_v28 }
 0xb23   :  { %9108 = vmatpush3.msra.mxu1 %v2887_v28 }
 0xb24   :  { %9109 = vmatprep.subr.mxu1 %v2882_v31 }
 0xb25   :  { %9110 = vmatpush3.msra.mxu1 %v2882_v31 }
 0xbb7   :  { %v9016_v34 = vpop.f32.mrf.mxu0 }
 0xbb8   :  { %v10637_v36 = vadd.f32 %v9016_v34, %v1777_v32 }
 0xbb9   :  { %v2561_v37 = vpop.f32.mrf.mxu0 }
 0xbba   :  { %v10639_v40 = vadd.f32 %v2561_v37, %v1772_v35 }
 0xbbf   :  { %v9019_v42 = vpop.f32.mrf.mxu0 }
 0xbc0   :  { %v10645_v44 = vadd.f32 %v9019_v42, %v1787_v41  ;;  %v7834_v42 = vld [vmem:[%s11724_s10 + $0x38] sm:$0xff] }
 0xbc1   :  { %v2571_v22 = vpop.f32.mrf.mxu0 }
 0xbc2   :  { %v10647_v59 = vadd.f32 %v2571_v22, %v1782_v43  ;;  %v7833_v43 = vld [vmem:[%s11724_s10 + $0x30] sm:$0xff] }
 0xbc7   :  { %v9060_v15 = vpop.f32.mrf.mxu0 }
 0xbc8   :  { %v2775_v16 = vadd.f32 %v9060_v15, %v7802_v62 }
 0xbc9   :  { %v2769_v45 = vpop.f32.mrf.mxu0 }
 0xbca   :  { %v2770_v18 = vadd.f32 %v7802_v62, %v2769_v45  ;;  %9086 = vmatprep.subr.msk.mxu0 %vm516_vm3, %v2775_v16 }
 0xbcb   :  { %v9063_v1 = vpop.f32.mrf.mxu0  ;;  %9087 = vmatpush3.xpose.msk.msra.mxu0 %vm516_vm3, %v2775_v16 }
 0xbcc   :  { %9088 = vmatprep.subr.msk.mxu0 %vm516_vm3, %v2770_v18  ;;  %v2785_v4 = vadd.f32 %v9063_v1, %v7802_v62 }
 0xbcd   :  { %v2779_v20 = vpop.f32.mrf.mxu0 }
 0xbce   :  { %v2780_v21 = vadd.f32 %v7802_v62, %v2779_v20 }
 0xbcf   :  { %9089 = vmatpush3.xpose.msk.msra.mxu0 %vm516_vm3, %v2770_v18  ;;  %v7839_v18 = vld [vmem:[%s11725_s11] ss:$0 sm:$0xff] }
 0xbd0   :  { %9093 = vmatprep.subr.msk.mxu0 %vm516_vm3, %v2785_v4 }
 0xbd2   :  { %9091 = vmatmul.mubr.msk.f32.vlgmr.msra.gmra.mxu0 %vm516_vm3, %v2673_v7 }
 0xbd3   :  { %9094 = vmatpush3.xpose.msk.msra.mxu0 %vm516_vm3, %v2785_v4  ;;  %9097 = vmatprep.mubr.msk.f32.mxu0 %vm516_vm3, %v2678_v13 }
 0xbd4   :  { %9095 = vmatprep.subr.msk.mxu0 %vm516_vm3, %v2780_v21 }
 0xbd7   :  { %9096 = vmatpush3.xpose.msk.msra.mxu0 %vm516_vm3, %v2780_v21 }
 0xbd8   :  { %9100 = vmatprep.subr.mxu0 %v2877_v24 }
 0xbda   :  { %9098 = vmatmul.mubr.msk.f32.vlgmr.msra.gmra.mxu0 %vm516_vm3, %v2683_v11 }
 0xbdb   :  { %9101 = vmatpush3.msra.mxu0 %v2877_v24 }
 0xbdc   :  { %9102 = vmatprep.subr.mxu0 %v2872_v26 }
 0xbdd   :  { %9103 = vmatpush3.msra.mxu0 %v2872_v26 }
 0xbde   :  { %9114 = vmatprep.subr.mxu0 %v7834_v42 }
 0xc92   :  { %v9092_v19 = vpop.f32.mrf.mxu0 }
 0xc93   :  { %v3065_v17 = vmul.f32 0.25, %v9092_v19 }
 0xc94   :  { %v2968_v46 = vpop.f32.mrf.mxu0 }
 0xc95   :  { %v3064_v47 = vmul.f32 0.25, %v2968_v46  ;;  %v3071_v48 = vsel %vm516_vm3, %v3065_v17, -inf }
 0xc96   :  { %3072 = vmax.xlane.f32.xlu1 %v3071_v48 }
 0xc97   :  { %v3068_v49 = vsel %vm516_vm3, %v3064_v47, -inf }
 0xc98   :  { %3069 = vmax.xlane.f32.xlu0 %v3068_v49 }
 0xc9a   :  { %v9099_v50 = vpop.f32.mrf.mxu0 }
 0xc9b   :  { %v3067_v51 = vmul.f32 0.25, %v9099_v50 }
 0xc9c   :  { %v3055_v52 = vpop.f32.mrf.mxu0 }
 0xc9d   :  { %v3066_v53 = vmul.f32 0.25, %v3055_v52  ;;  %v3077_v54 = vsel %vm516_vm3, %v3067_v51, -inf }
 0xc9e   :  { %3078 = vmax.xlane.f32.xlu1 %v3077_v54 }
 0xc9f   :  { %v3074_v55 = vsel %vm516_vm3, %v3066_v53, -inf }
 0xca0   :  { %3075 = vmax.xlane.f32.xlu0 %v3074_v55 }
 0xd1f   :  { %v3073_v56 = vpop.xlane.xlu1 %3072 }
 0xd20   :  { %v3081_v57 = vsub.f32 %v3065_v17, %v3073_v56 }
 0xd21   :  { %v3070_v58 = vpop.xlane.xlu0 %3069 }
 0xd22   :  { %v3086_v60 = vmul.f32 1.442695, %v3081_v57  ;;  %v3080_v61 = vsub.f32 %v3064_v47, %v3070_v58 }
 0xd24   :  { %9776 = vpow2.f32 %v3086_v60  ;;  %v3084_v63 = vmul.f32 1.442695, %v3080_v61 }
 0xd26   :  { %9778 = vpow2.f32 %v3084_v63 }
 0xd27   :  { %v3079_v0 = vpop.xlane.xlu1 %3078 }
 0xd28   :  { %v3083_v2 = vsub.f32 %v3067_v51, %v3079_v0 }
 0xd29   :  { %v3076_v3 = vpop.xlane.xlu0 %3075 }
 0xd2a   :  { %v3090_v5 = vmul.f32 1.442695, %v3083_v2  ;;  %v3082_v6 = vsub.f32 %v3066_v53, %v3076_v3 }
 0xd2c   :  { %9780 = vpow2.f32 %v3090_v5  ;;  %v3088_v7 = vmul.f32 1.442695, %v3082_v6 }
 0xd2e   :  { %9782 = vpow2.f32 %v3088_v7 }
 0xd31   :  { %v9777_v8 = vpop.eup %9776 }
 0xd32   :  { %v3095_v9 = vsel %vm516_vm3, %v9777_v8, 0.0 }
 0xd33   :  { %v9779_v10 = vpop.eup %9778  ;;  %3096 = vadd.xlane.f32.xlu1 %v3095_v9 }
 0xd34   :  { %v3092_v11 = vsel %vm516_vm3, %v9779_v10, 0.0 }
 0xd35   :  { %3093 = vadd.xlane.f32.xlu0 %v3092_v11  ;;  %v3475_v11 = vld [vmem:[%s11728_s14 + $0x38] sm:$0xff] }
 0xd36   :  { %9124 = vmatprep.subr.mxu1 %v3475_v11 }
 0xd39   :  { %v9781_v12 = vpop.eup %9780 }
 0xd3a   :  { %v3101_v13 = vsel %vm516_vm3, %v9781_v12, 0.0 }
 0xd3b   :  { %v9783_v14 = vpop.eup %9782  ;;  %3102 = vadd.xlane.f32.xlu1 %v3101_v13  ;;  %v3473_v13 = vld [vmem:[%s11728_s14 + $0x28] sm:$0xff] }
 0xd3c   :  { %v3098_v23 = vsel %vm516_vm3, %v9783_v14, 0.0 }
 0xd3d   :  { %3099 = vadd.xlane.f32.xlu0 %v3098_v23  ;;  %v3471_v23 = vld [vmem:[%s11728_s14 + $0x18] sm:$0xff] }
 0xdbc   :  { %v3097_v24 = vpop.xlane.xlu1 %3096 }
 0xdbd   :  { %9784 = vrcp.f32 %v3097_v24  ;;  %v3470_v24 = vld [vmem:[%s11728_s14 + $0x10] sm:$0xff] }
 0xdbe   :  { %v3094_v25 = vpop.xlane.xlu0 %3093 }
 0xdbf   :  { %9786 = vrcp.f32 %v3094_v25  ;;  %v3469_v25 = vld [vmem:[%s11728_s14 + $0x8] sm:$0xff] }
 0xdc4   :  { %v3103_v26 = vpop.xlane.xlu1 %3102 }
 0xdc5   :  { %9788 = vrcp.f32 %v3103_v26  ;;  %v3468_v26 = vld [vmem:[%s11728_s14] sm:$0xff] }
 0xdc6   :  { %v3100_v27 = vpop.xlane.xlu0 %3099 }
 0xdc7   :  { %9790 = vrcp.f32 %v3100_v27  ;;  %v3599_v27 = vld [vmem:[%s11730_s16 + $0x78] sm:$0xff] }
 0xdca   :  { %v9785_v28 = vpop.eup %9784 }
 0xdcb   :  { %v3109_v32 = vmul.f32 %v9785_v28, %v9777_v8  ;;  %v3598_v28 = vld [vmem:[%s11730_s16 + $0x70] sm:$0xff] }
 0xdcc   :  { %v9787_v29 = vpop.eup %9786 }
 0xdcd   :  { %v3108_v31 = vmul.f32 %v9787_v29, %v9779_v10  ;;  %v3597_v29 = vld [vmem:[%s11730_s16 + $0x68] sm:$0xff] }
 0xdcf   :  { %9104 = vmatprep.mubr.msk.f32.mxu0 %vm516_vm3, %v3108_v31  ;;  %v3596_v31 = vld [vmem:[%s11730_s16 + $0x60] sm:$0xff] }
 0xdd0   :  { %9105 = vmatmul.mubr.msk.f32.vlgmr.msra.gmra.mxu0 %vm516_vm3, %v3109_v32  ;;  %v3595_v32 = vld [vmem:[%s11730_s16 + $0x58] sm:$0xff] }
 0xdd1   :  { %9115 = vmatpush3.msra.mxu0 %v7834_v42  ;;  %v3590_v42 = vld [vmem:[%s11730_s16 + $0x30] sm:$0xff] }
 0xdd2   :  { %v9789_v34 = vpop.eup %9788  ;;  %9116 = vmatprep.subr.mxu0 %v7833_v43 }
 0xdd3   :  { %v3111_v41 = vmul.f32 %v9789_v34, %v9781_v12  ;;  %9117 = vmatpush3.msra.mxu0 %v7833_v43  ;;  %v3474_v12 = vld [vmem:[%s11728_s14 + $0x30] sm:$0xff]  ;;  %v3589_v43 = vld [vmem:[%s11730_s16 + $0x28] sm:$0xff] }
 0xdd4   :  { %v9791_v35 = vpop.eup %9790  ;;  %9146 = vmatprep.subr.mxu0 %v3599_v27  ;;  %v3594_v34 = vld [vmem:[%s11730_s16 + $0x50] sm:$0xff] }
 0xdd5   :  { %v3110_v37 = vmul.f32 %v9791_v35, %v9783_v14  ;;  %v3472_v14 = vld [vmem:[%s11728_s14 + $0x20] sm:$0xff]  ;;  %v3593_v35 = vld [vmem:[%s11730_s16 + $0x48] sm:$0xff] }
 0xdd7   :  { %9111 = vmatprep.mubr.msk.f32.mxu1 %vm516_vm3, %v3110_v37  ;;  %v3592_v37 = vld [vmem:[%s11730_s16 + $0x40] sm:$0xff] }
 0xdd8   :  { %9112 = vmatmul.mubr.msk.f32.vlgmr.msra.gmra.mxu1 %vm516_vm3, %v3111_v41  ;;  %v3591_v41 = vld [vmem:[%s11730_s16 + $0x38] sm:$0xff] }
 0xdd9   :  { %9125 = vmatpush3.msra.mxu1 %v3475_v11 }
 0xdda   :  { %9126 = vmatprep.subr.mxu1 %v3474_v12 }
 0xddb   :  { %9127 = vmatpush3.msra.mxu1 %v3474_v12 }
 0xddc   :  { %9128 = vmatprep.subr.mxu1 %v3473_v13 }
 0xddd   :  { %9129 = vmatpush3.msra.mxu1 %v3473_v13 }
 0xdde   :  { %9130 = vmatprep.subr.mxu1 %v3472_v14 }
 0xddf   :  { %9131 = vmatpush3.msra.mxu1 %v3472_v14  ;;  %v7847_v14 = vld [vmem:[%s11731_s17] ss:$0 sm:$0xff] }
 0xde0   :  { %9132 = vmatprep.subr.mxu1 %v3471_v23 }
 0xde1   :  { %9133 = vmatpush3.msra.mxu1 %v3471_v23 }
 0xde2   :  { %9134 = vmatprep.subr.mxu1 %v3470_v24 }
 0xde3   :  { %9135 = vmatpush3.msra.mxu1 %v3470_v24 }
 0xde4   :  { %9136 = vmatprep.subr.mxu1 %v3469_v25 }
 0xde5   :  { %9137 = vmatpush3.msra.mxu1 %v3469_v25 }
 0xde6   :  { %9138 = vmatprep.subr.mxu1 %v3468_v26 }
 0xde7   :  { %9139 = vmatpush3.msra.mxu1 %v3468_v26 }
 0xe90   :  { %v9106_v22 = vpop.f32.mrf.mxu0 }
 0xe92   :  { %v3184_v62 = vpop.f32.mrf.mxu0 }
 0xe93   :  { %9118 = vmatprep.mubr.msk.f32.mxu0 %vm516_vm3, %v3184_v62 }
 0xe94   :  { %9119 = vmatmul.mubr.msk.f32.vlgmr.msra.gmra.mxu0 %vm516_vm3, %v9106_v22  ;;  %v3588_v22 = vld [vmem:[%s11730_s16 + $0x20] sm:$0xff] }
 0xe95   :  { %9147 = vmatpush3.msra.mxu0 %v3599_v27 }
 0xe96   :  { %9148 = vmatprep.subr.mxu0 %v3598_v28 }
 0xe97   :  { %9149 = vmatpush3.msra.mxu0 %v3598_v28 }
 0xe98   :  { %v9113_v15 = vpop.f32.mrf.mxu1  ;;  %9150 = vmatprep.subr.mxu0 %v3597_v29 }
 0xe99   :  { %9151 = vmatpush3.msra.mxu0 %v3597_v29 }
 0xe9a   :  { %v3265_v16 = vpop.f32.mrf.mxu1  ;;  %9152 = vmatprep.subr.mxu0 %v3596_v31 }
 0xe9b   :  { %9121 = vmatprep.mubr.msk.f32.mxu0 %vm516_vm3, %v3265_v16  ;;  %9153 = vmatpush3.msra.mxu0 %v3596_v31 }
 0xe9c   :  { %9122 = vmatmul.mubr.msk.f32.gmra.mxu0 %vm516_vm3, %v9113_v15  ;;  %9154 = vmatprep.subr.mxu0 %v3595_v32 }
 0xe9d   :  { %9155 = vmatpush3.msra.mxu0 %v3595_v32 }
 0xe9e   :  { %9156 = vmatprep.subr.mxu0 %v3594_v34 }
 0xe9f   :  { %9157 = vmatpush3.msra.mxu0 %v3594_v34 }
 0xea0   :  { %9158 = vmatprep.subr.mxu0 %v3593_v35 }
 0xea1   :  { %9159 = vmatpush3.msra.mxu0 %v3593_v35 }
 0xea2   :  { %9160 = vmatprep.subr.mxu0 %v3592_v37 }
 0xea3   :  { %9161 = vmatpush3.msra.mxu0 %v3592_v37 }
 0xea4   :  { %9162 = vmatprep.subr.mxu0 %v3591_v41 }
 0xea5   :  { %9163 = vmatpush3.msra.mxu0 %v3591_v41 }
 0xea6   :  { %9164 = vmatprep.subr.mxu0 %v3590_v42 }
 0xea7   :  { %9165 = vmatpush3.msra.mxu0 %v3590_v42 }
 0xea8   :  { %9166 = vmatprep.subr.mxu0 %v3589_v43 }
 0xea9   :  { %9167 = vmatpush3.msra.mxu0 %v3589_v43 }
 0xeaa   :  { %9168 = vmatprep.subr.mxu0 %v3588_v22 }
 0xeab   :  { %9169 = vmatpush3.msra.mxu0 %v3588_v22 }
 0xf54   :  { %v9120_v45 = vpop.f32.mrf.mxu0 }
 0xf55   :  { %v3375_v1 = vadd.f32 %v9120_v45, %v10637_v36 }
 0xf56   :  { %v3355_v4 = vpop.f32.mrf.mxu0 }
 0xf57   :  { %v3386_v20 = vadd.f32 %v7839_v18, %v3375_v1  ;;  %v3374_v21 = vadd.f32 %v3355_v4, %v10639_v40 }
 0xf59   :  { %v3385_v19 = vadd.f32 %v7839_v18, %v3374_v21  ;;  %v3390_v17 = vadd.f32 %v3386_v20, %v10127_v33 }
 0xf5b   :  { %v3398_v46 = vsel %vm218_vm2, %v3390_v17, 0.0  ;;  %v3389_v47 = vadd.f32 %v3385_v19, %v10122_v30 }
 0xf5c   :  { %3399 = vadd.xlane.f32.xlu1 %v3398_v46  ;;  %v9123_v48 = vpop.f32.mrf.mxu0 }
 0xf5d   :  { %v3377_v49 = vadd.f32 %v9123_v48, %v10645_v44  ;;  %v3395_v50 = vsel %vm218_vm2, %v3389_v47, 0.0 }
 0xf5e   :  { %3396 = vadd.xlane.f32.xlu0 %v3395_v50  ;;  %v3365_v51 = vpop.f32.mrf.mxu0 }
 0xf5f   :  { %v3388_v36 = vadd.f32 %v7839_v18, %v3377_v49  ;;  %v3376_v52 = vadd.f32 %v3365_v51, %v10647_v59  ;;  %v7840_v49 = vld [vmem:[%s11726_s12] ss:$0 sm:$0xff] }
 0xf61   :  { %v3387_v53 = vadd.f32 %v7839_v18, %v3376_v52  ;;  %v3392_v40 = vadd.f32 %v3388_v36, %v10139_v38  ;;  %v7841_v52 = vld [vmem:[%s11727_s13] ss:$0 sm:$0xff] }
 0xf63   :  { %v3404_v33 = vsel %vm218_vm2, %v3392_v40, 0.0  ;;  %v3391_v54 = vadd.f32 %v3387_v53, %v10145_v39 }
 0xf64   :  { %3405 = vadd.xlane.f32.xlu1 %v3404_v33 }
 0xf65   :  { %v3401_v30 = vsel %vm218_vm2, %v3391_v54, 0.0 }
 0xf66   :  { %3402 = vadd.xlane.f32.xlu0 %v3401_v30 }
 0xfe5   :  { %v3400_v55 = vpop.xlane.xlu1 %3399 }
 0xfe6   :  { %v3409_v44 = vmul.f32 0.015625, %v3400_v55 }
 0xfe7   :  { %v3397_v56 = vpop.xlane.xlu0 %3396 }
 0xfe8   :  { %v10700_v57 = vsub.f32 %v3390_v17, %v3409_v44  ;;  %v3408_v58 = vmul.f32 0.015625, %v3397_v56 }
 0xfea   :  { %v10702_v60 = vsub.f32 %v3389_v47, %v3408_v58  ;;  %v3417_v59 = vmul.f32 %v10700_v57, %v10700_v57 }
 0xfec   :  { %v3423_v38 = vsel %vm218_vm2, %v3417_v59, 0.0  ;;  %v3416_v39 = vmul.f32 %v10702_v60, %v10702_v60  ;;  %v3587_v59 = vld [vmem:[%s11730_s16 + $0x18] sm:$0xff] }
 0xfed   :  { %3424 = vadd.xlane.f32.xlu1 %v3423_v38  ;;  %v3406_v61 = vpop.xlane.xlu1 %3405  ;;  %9170 = vmatprep.subr.mxu0 %v3587_v59  ;;  %v3586_v38 = vld [vmem:[%s11730_s16 + $0x10] sm:$0xff] }
 0xfee   :  { %v3411_v63 = vmul.f32 0.015625, %v3406_v61  ;;  %v3420_v0 = vsel %vm218_vm2, %v3416_v39, 0.0  ;;  %9171 = vmatpush3.msra.mxu0 %v3587_v59  ;;  %v3585_v39 = vld [vmem:[%s11730_s16 + $0x8] sm:$0xff]  ;;  %v3584_v61 = vld [vmem:[%s11730_s16] sm:$0xff]  ;;  %v7852_v59 = vld [vmem:[%s11760_s9 + $0x110] sm:$0xff] }
 0xfef   :  { %3421 = vadd.xlane.f32.xlu0 %v3420_v0  ;;  %v3403_v2 = vpop.xlane.xlu0 %3402  ;;  %9172 = vmatprep.subr.mxu0 %v3586_v38 }
 0xff0   :  { %v10710_v3 = vsub.f32 %v3392_v40, %v3411_v63  ;;  %v3410_v5 = vmul.f32 0.015625, %v3403_v2  ;;  %9173 = vmatpush3.msra.mxu0 %v3586_v38  ;;  %v7842_v63 = vld [vmem:[%s11729_s15] ss:$0 sm:$0xff]  ;;  %v7880_v38 = vld [vmem:[%s11761_s29 + $0x110] sm:$0xff] }
 0xff1   :  { %9174 = vmatprep.subr.mxu0 %v3585_v39 }
 0xff2   :  { %v10712_v6 = vsub.f32 %v3391_v54, %v3410_v5  ;;  %v3419_v7 = vmul.f32 %v10710_v3, %v10710_v3  ;;  %9175 = vmatpush3.msra.mxu0 %v3585_v39  ;;  %v7851_v39 = vld [vmem:[%s11760_s9 + $0x108] sm:$0xff] }
 0xff3   :  { %9176 = vmatprep.subr.mxu0 %v3584_v61 }
 0xff4   :  { %v3429_v8 = vsel %vm218_vm2, %v3419_v7, 0.0  ;;  %v3418_v9 = vmul.f32 %v10712_v6, %v10712_v6  ;;  %9177 = vmatpush3.msra.mxu0 %v3584_v61  ;;  %v7879_v61 = vld [vmem:[%s11761_s29 + $0x108] sm:$0xff] }
 0xff5   :  { %3430 = vadd.xlane.f32.xlu1 %v3429_v8 }
 0xff6   :  { %v3426_v10 = vsel %vm218_vm2, %v3418_v9, 0.0 }
 0xff7   :  { %3427 = vadd.xlane.f32.xlu0 %v3426_v10 }
0x1076   :  { %v3425_v62 = vpop.xlane.xlu1 %3424 }
0x1077   :  { %v3433_v15 = vmul.f32 0.015625, %v3425_v62 }
0x1078   :  { %v3422_v16 = vpop.xlane.xlu0 %3421 }
0x1079   :  { %v3437_v45 = vadd.f32 1e-05, %v3433_v15  ;;  %v3432_v18 = vmul.f32 0.015625, %v3422_v16 }
0x107b   :  { %9792 = vrsqrt.f32 %v3437_v45  ;;  %v3436_v1 = vadd.f32 1e-05, %v3432_v18 }
0x107d   :  { %9794 = vrsqrt.f32 %v3436_v1 }
0x107e   :  { %v3431_v4 = vpop.xlane.xlu1 %3430 }
0x107f   :  { %v3435_v20 = vmul.f32 0.015625, %v3431_v4 }
0x1080   :  { %v3428_v21 = vpop.xlane.xlu0 %3427 }
0x1081   :  { %v3439_v19 = vadd.f32 1e-05, %v3435_v20  ;;  %v3434_v17 = vmul.f32 0.015625, %v3428_v21 }
0x1083   :  { %9796 = vrsqrt.f32 %v3439_v19  ;;  %v3438_v46 = vadd.f32 1e-05, %v3434_v17 }
0x1085   :  { %9798 = vrsqrt.f32 %v3438_v46 }
0x1088   :  { %v9793_v47 = vpop.eup %9792 }
0x1089   :  { %v3445_v48 = vmul.f32 %v9793_v47, %v10700_v57 }
0x108a   :  { %v9795_v50 = vpop.eup %9794 }
0x108b   :  { %v3444_v51 = vmul.f32 %v9795_v50, %v10702_v60  ;;  %v3455_v36 = vmul.f32 %v7840_v49, %v3445_v48 }
0x108d   :  { %v3454_v53 = vmul.f32 %v7840_v49, %v3444_v51  ;;  %v3465_v54 = vadd.f32 %v7841_v52, %v3455_v36 }
0x108f   :  { %v3464_v40 = vadd.f32 %v7841_v52, %v3454_v53 }
0x1090   :  { %v9797_v33 = vpop.eup %9796 }
0x1091   :  { %9140 = vmatprep.mubr.msk.f32.mxu1 %vm218_vm2, %v3464_v40  ;;  %v3447_v30 = vmul.f32 %v9797_v33, %v10710_v3  ;;  %v7885_v33 = vld [vmem:[%s11761_s29 + $0x138] sm:$0xff] }
0x1092   :  { %v9799_v55 = vpop.eup %9798  ;;  %9141 = vmatmul.mubr.msk.f32.vlgmr.msra.gmra.mxu1 %vm218_vm2, %v3465_v54  ;;  %9228 = vmatprep.subr.mxu0 %v7885_v33 }
0x1093   :  { %v3446_v44 = vmul.f32 %v9799_v55, %v10712_v6  ;;  %v3457_v56 = vmul.f32 %v7840_v49, %v3447_v30  ;;  %v7884_v30 = vld [vmem:[%s11761_s29 + $0x130] sm:$0xff]  ;;  %v7855_v55 = vld [vmem:[%s11760_s9 + $0x128] sm:$0xff] }
0x1095   :  { %v3456_v57 = vmul.f32 %v7840_v49, %v3446_v44  ;;  %v3467_v60 = vadd.f32 %v7841_v52, %v3457_v56  ;;  %v7883_v44 = vld [vmem:[%s11761_s29 + $0x128] sm:$0xff]  ;;  %v7854_v56 = vld [vmem:[%s11760_s9 + $0x120] sm:$0xff] }
0x1097   :  { %v3466_v58 = vadd.f32 %v7841_v52, %v3456_v57  ;;  %v7882_v57 = vld [vmem:[%s11761_s29 + $0x120] sm:$0xff] }
0x1099   :  { %9143 = vmatprep.mubr.msk.f32.mxu1 %vm218_vm2, %v3466_v58 }
0x109a   :  { %9144 = vmatmul.mubr.msk.f32.gmra.mxu1 %vm218_vm2, %v3467_v60 }
0x1152   :  { %v9142_v0 = vpop.f32.mrf.mxu1 }
0x1153   :  { %v3567_v2 = vadd.f32 %v9142_v0, %v7842_v63  ;;  %v7878_v0 = vld [vmem:[%s11761_s29 + $0x100] sm:$0xff] }
0x1154   :  { %v3561_v3 = vpop.f32.mrf.mxu1 }
0x1155   :  { %v3562_v5 = vadd.f32 %v7842_v63, %v3561_v3  ;;  %v3581_v7 = vmax.f32 %v3567_v2, 0.0  ;;  %v7871_v2 = vld [vmem:[%s11762_s8 + $0x138] sm:$0xff] }
0x1157   :  { %v3580_v6 = vmax.f32 %v3562_v5, 0.0 }
0x1159   :  { %9178 = vmatprep.mubr.f32.mxu0 %v3580_v6 }
0x115a   :  { %v9145_v8 = vpop.f32.mrf.mxu1  ;;  %9179 = vmatmul.mubr.f32.vlgmr.msra.gmra.mxu0 %v3581_v7 }
0x115b   :  { %v3577_v9 = vadd.f32 %v9145_v8, %v7842_v63  ;;  %9229 = vmatpush3.msra.mxu0 %v7885_v33 }
0x115c   :  { %v3571_v10 = vpop.f32.mrf.mxu1  ;;  %9230 = vmatprep.subr.mxu0 %v7884_v30 }
0x115d   :  { %v3572_v11 = vadd.f32 %v7842_v63, %v3571_v10  ;;  %v3583_v13 = vmax.f32 %v3577_v9, 0.0  ;;  %9231 = vmatpush3.msra.mxu0 %v7884_v30  ;;  %v7850_v63 = vld [vmem:[%s11760_s9 + $0x100] sm:$0xff] }
0x115e   :  { %9232 = vmatprep.subr.mxu0 %v7883_v44  ;;  %v7887_v30 = vld [vmem:[%s11766_s6 + $0x4] ss:$0 sm:$0xff] }
0x115f   :  { %v3582_v12 = vmax.f32 %v3572_v11, 0.0  ;;  %9233 = vmatpush3.msra.mxu0 %v7883_v44 }
0x1160   :  { %9234 = vmatprep.subr.mxu0 %v7882_v57 }
0x1161   :  { %9181 = vmatprep.mubr.f32.mxu0 %v3582_v12  ;;  %9235 = vmatpush3.msra.mxu0 %v7882_v57 }
0x1162   :  { %9182 = vmatmul.mubr.f32.gmra.mxu0 %v3583_v13 }
0x121a   :  { %v9180_v23 = vpop.f32.mrf.mxu0 }
0x121b   :  { %v3679_v24 = vadd.f32 %v9180_v23, %v7847_v14 }
0x121c   :  { %v3673_v25 = vpop.f32.mrf.mxu0 }
0x121d   :  { %v3674_v26 = vadd.f32 %v7847_v14, %v3673_v25  ;;  %v3693_v27 = vadd.f32 %v3679_v24, %v3465_v54  ;;  %v7856_v54 = vld [vmem:[%s11760_s9 + $0x130] sm:$0xff]  ;;  %v7848_v25 = vld [vmem:[%s11732_s18] ss:$0 sm:$0xff] }
0x121f   :  { %v3701_v28 = vsel %vm218_vm2, %v3693_v27, 0.0  ;;  %v3692_v29 = vadd.f32 %v3674_v26, %v3464_v40  ;;  %v7857_v40 = vld [vmem:[%s11760_s9 + $0x138] sm:$0xff] }
0x1220   :  { %3702 = vadd.xlane.f32.xlu1 %v3701_v28  ;;  %9184 = vmatprep.subr.mxu1 %v7857_v40 }
0x1221   :  { %v3698_v31 = vsel %vm218_vm2, %v3692_v29, 0.0  ;;  %9185 = vmatpush3.msra.mxu1 %v7857_v40 }
0x1222   :  { %3699 = vadd.xlane.f32.xlu0 %v3698_v31  ;;  %v9183_v32 = vpop.f32.mrf.mxu0  ;;  %9186 = vmatprep.subr.mxu1 %v7856_v54  ;;  %v7849_v31 = vld [vmem:[%s11733_s19] ss:$0 sm:$0xff] }
0x1223   :  { %v3689_v34 = vadd.f32 %v9183_v32, %v7847_v14  ;;  %9187 = vmatpush3.msra.mxu1 %v7856_v54 }
0x1224   :  { %v3683_v35 = vpop.f32.mrf.mxu0  ;;  %9188 = vmatprep.subr.mxu1 %v7855_v55 }
0x1225   :  { %v3684_v37 = vadd.f32 %v7847_v14, %v3683_v35  ;;  %v3695_v41 = vadd.f32 %v3689_v34, %v3467_v60  ;;  %9189 = vmatpush3.msra.mxu1 %v7855_v55  ;;  %v7881_v60 = vld [vmem:[%s11761_s29 + $0x118] sm:$0xff] }
0x1226   :  { %9190 = vmatprep.subr.mxu1 %v7854_v56  ;;  %9236 = vmatprep.subr.mxu0 %v7881_v60 }
0x1227   :  { %v3707_v42 = vsel %vm218_vm2, %v3695_v41, 0.0  ;;  %v3694_v43 = vadd.f32 %v3684_v37, %v3466_v58  ;;  %9191 = vmatpush3.msra.mxu1 %v7854_v56  ;;  %v7853_v58 = vld [vmem:[%s11760_s9 + $0x118] sm:$0xff]  ;;  %9237 = vmatpush3.msra.mxu0 %v7881_v60 }
0x1228   :  { %3708 = vadd.xlane.f32.xlu1 %v3707_v42  ;;  %9192 = vmatprep.subr.mxu1 %v7853_v58  ;;  %v7870_v42 = vld [vmem:[%s11762_s8 + $0x130] sm:$0xff] }
0x1229   :  { %v3704_v22 = vsel %vm218_vm2, %v3694_v43, 0.0  ;;  %9193 = vmatpush3.msra.mxu1 %v7853_v58  ;;  %9238 = vmatprep.subr.mxu0 %v7880_v38 }
0x122a   :  { %3705 = vadd.xlane.f32.xlu0 %v3704_v22  ;;  %9194 = vmatprep.subr.mxu1 %v7852_v59 }
0x122b   :  { %9195 = vmatpush3.msra.mxu1 %v7852_v59  ;;  %9239 = vmatpush3.msra.mxu0 %v7880_v38 }
0x122c   :  { %9196 = vmatprep.subr.mxu1 %v7851_v39  ;;  %9240 = vmatprep.subr.mxu0 %v7879_v61 }
0x122d   :  { %9197 = vmatpush3.msra.mxu1 %v7851_v39  ;;  %9241 = vmatpush3.msra.mxu0 %v7879_v61 }
0x122e   :  { %9198 = vmatprep.subr.mxu1 %v7850_v63  ;;  %9242 = vmatprep.subr.mxu0 %v7878_v0 }
0x122f   :  { %9199 = vmatpush3.msra.mxu1 %v7850_v63  ;;  %9243 = vmatpush3.msra.mxu0 %v7878_v0 }
0x1230   :  { %9206 = vmatprep.subr.mxu1 %v7871_v2 }
0x12a9   :  { %v3703_v62 = vpop.xlane.xlu1 %3702 }
0x12aa   :  { %v3711_v15 = vmul.f32 0.015625, %v3703_v62  ;;  %v7869_v62 = vld [vmem:[%s11762_s8 + $0x128] sm:$0xff] }
0x12ab   :  { %v3700_v16 = vpop.xlane.xlu0 %3699 }
0x12ac   :  { %v10816_v45 = vsub.f32 %v3693_v27, %v3711_v15  ;;  %v3710_v18 = vmul.f32 0.015625, %v3700_v16 }
0x12ae   :  { %v10818_v1 = vsub.f32 %v3692_v29, %v3710_v18  ;;  %v3719_v4 = vmul.f32 %v10816_v45, %v10816_v45 }
0x12b0   :  { %v3725_v20 = vsel %vm218_vm2, %v3719_v4, 0.0  ;;  %v3718_v21 = vmul.f32 %v10818_v1, %v10818_v1 }
0x12b1   :  { %3726 = vadd.xlane.f32.xlu1 %v3725_v20  ;;  %v3709_v19 = vpop.xlane.xlu1 %3708  ;;  %v7866_v20 = vld [vmem:[%s11762_s8 + $0x110] sm:$0xff] }
0x12b2   :  { %v3713_v17 = vmul.f32 0.015625, %v3709_v19  ;;  %v3722_v46 = vsel %vm218_vm2, %v3718_v21, 0.0  ;;  %v7865_v21 = vld [vmem:[%s11762_s8 + $0x108] sm:$0xff]  ;;  %v7864_v19 = vld [vmem:[%s11762_s8 + $0x100] sm:$0xff] }
0x12b3   :  { %3723 = vadd.xlane.f32.xlu0 %v3722_v46  ;;  %v3706_v47 = vpop.xlane.xlu0 %3705  ;;  %v7859_v46 = vld [vmem:[%s11765_s0 + $0x4] ss:$0 sm:$0xff] }
0x12b4   :  { %v10826_v48 = vsub.f32 %v3695_v41, %v3713_v17  ;;  %v3712_v49 = vmul.f32 0.015625, %v3706_v47 }
0x12b6   :  { %v10828_v50 = vsub.f32 %v3694_v43, %v3712_v49  ;;  %v3721_v51 = vmul.f32 %v10826_v48, %v10826_v48 }
0x12b8   :  { %v3731_v36 = vsel %vm218_vm2, %v3721_v51, 0.0  ;;  %v3720_v52 = vmul.f32 %v10828_v50, %v10828_v50 }
0x12b9   :  { %3732 = vadd.xlane.f32.xlu1 %v3731_v36  ;;  %v7873_v36 = vld [vmem:[%s11767_s26 + $0x4] ss:$0 sm:$0xff] }
0x12ba   :  { %v3728_v53 = vsel %vm218_vm2, %v3720_v52, 0.0 }
0x12bb   :  { %3729 = vadd.xlane.f32.xlu0 %v3728_v53 }
0x133a   :  { %v3727_v3 = vpop.xlane.xlu1 %3726 }
0x133b   :  { %v3735_v5 = vmul.f32 0.015625, %v3727_v3 }
0x133c   :  { %v3724_v6 = vpop.xlane.xlu0 %3723 }
0x133d   :  { %v3739_v7 = vadd.f32 1e-05, %v3735_v5  ;;  %v3734_v8 = vmul.f32 0.015625, %v3724_v6 }
0x133f   :  { %9800 = vrsqrt.f32 %v3739_v7  ;;  %v3738_v9 = vadd.f32 1e-05, %v3734_v8 }
0x1341   :  { %9802 = vrsqrt.f32 %v3738_v9 }
0x1342   :  { %v3733_v10 = vpop.xlane.xlu1 %3732 }
0x1343   :  { %v3737_v11 = vmul.f32 0.015625, %v3733_v10 }
0x1344   :  { %v3730_v12 = vpop.xlane.xlu0 %3729 }
0x1345   :  { %v3741_v13 = vadd.f32 1e-05, %v3737_v11  ;;  %v3736_v14 = vmul.f32 0.015625, %v3730_v12 }
0x1347   :  { %9804 = vrsqrt.f32 %v3741_v13  ;;  %v3740_v23 = vadd.f32 1e-05, %v3736_v14 }
0x1349   :  { %9806 = vrsqrt.f32 %v3740_v23 }
0x134c   :  { %v9801_v24 = vpop.eup %9800 }
0x134d   :  { %v3747_v26 = vmul.f32 %v9801_v24, %v10816_v45  ;;  %v7868_v45 = vld [vmem:[%s11762_s8 + $0x120] sm:$0xff] }
0x134e   :  { %v9803_v27 = vpop.eup %9802 }
0x134f   :  { %v3746_v28 = vmul.f32 %v9803_v27, %v10818_v1  ;;  %v3757_v29 = vmul.f32 %v7848_v25, %v3747_v26  ;;  %v7867_v1 = vld [vmem:[%s11762_s8 + $0x118] sm:$0xff] }
0x1351   :  { %v3756_v32 = vmul.f32 %v7848_v25, %v3746_v28  ;;  %v10897_v37 = vadd.f32 %v7849_v31, %v3757_v29 }
0x1353   :  { %v10895_v34 = vadd.f32 %v7849_v31, %v3756_v32 }
0x1354   :  { %v9805_v35 = vpop.eup %9804 }
0x1355   :  { %v3749_v41 = vmul.f32 %v9805_v35, %v10826_v48  ;;  %9200 = vmatprep.mubr.msk.f32.mxu1 %vm218_vm2, %v10895_v34  ;;  %9244 = vmatprep.mubr.msk.f32.mxu0 %vm218_vm2, %v10895_v34 }
0x1356   :  { %v9807_v43 = vpop.eup %9806  ;;  %9201 = vmatmul.mubr.msk.f32.vlgmr.msra.gmra.mxu1 %vm218_vm2, %v10897_v37  ;;  %9245 = vmatmul.mubr.msk.f32.vlgmr.msra.gmra.mxu0 %vm218_vm2, %v10897_v37 }
0x1357   :  { %v3748_v22 = vmul.f32 %v9807_v43, %v10828_v50  ;;  %9207 = vmatpush3.msra.mxu1 %v7871_v2  ;;  %v3759_v15 = vmul.f32 %v7848_v25, %v3749_v41 }
0x1358   :  { %9208 = vmatprep.subr.mxu1 %v7870_v42 }
0x1359   :  { %v3758_v16 = vmul.f32 %v7848_v25, %v3748_v22  ;;  %9209 = vmatpush3.msra.mxu1 %v7870_v42  ;;  %v10923_v4 = vadd.f32 %v7849_v31, %v3759_v15 }
0x135a   :  { %9210 = vmatprep.subr.mxu1 %v7869_v62 }
0x135b   :  { %v10918_v18 = vadd.f32 %v7849_v31, %v3758_v16  ;;  %9211 = vmatpush3.msra.mxu1 %v7869_v62 }
0x135c   :  { %9212 = vmatprep.subr.mxu1 %v7868_v45 }
0x135d   :  { %9213 = vmatpush3.msra.mxu1 %v7868_v45  ;;  %9203 = vmatprep.mubr.msk.f32.mxu1 %vm218_vm2, %v10918_v18 }
0x135e   :  { %9214 = vmatprep.subr.mxu1 %v7867_v1  ;;  %9247 = vmatprep.mubr.msk.f32.mxu0 %vm218_vm2, %v10918_v18 }
0x135f   :  { %9204 = vmatmul.mubr.msk.f32.gmra.mxu1 %vm218_vm2, %v10923_v4  ;;  %9248 = vmatmul.mubr.msk.f32.gmra.mxu0 %vm218_vm2, %v10923_v4 }
0x1360   :  { %9215 = vmatpush3.msra.mxu1 %v7867_v1  ;;  %9222 = vmatprep.mubr.msk.f32.mxu1 %vm218_vm2, %v10895_v34 }
0x1361   :  { %9216 = vmatprep.subr.mxu1 %v7866_v20 }
0x1362   :  { %9217 = vmatpush3.msra.mxu1 %v7866_v20 }
0x1363   :  { %9218 = vmatprep.subr.mxu1 %v7865_v21 }
0x1364   :  { %9219 = vmatpush3.msra.mxu1 %v7865_v21 }
0x1365   :  { %9220 = vmatprep.subr.mxu1 %v7864_v19 }
0x1366   :  { %9221 = vmatpush3.msra.mxu1 %v7864_v19  ;;  %v7927_v19 = vld [vmem:[%s11762_s8 + $0x178] sm:$0xff] }
0x1367   :  { %9223 = vmatmul.mubr.msk.f32.vlgmr.msra.gmra.mxu1 %vm218_vm2, %v10897_v37 }
0x1368   :  { %9225 = vmatprep.mubr.msk.f32.mxu1 %vm218_vm2, %v10918_v18 }
0x136b   :  { %9226 = vmatmul.mubr.msk.f32.gmra.mxu1 %vm218_vm2, %v10923_v4 }
0x1416   :  { %v9202_v17 = vpop.f32.mrf.mxu1  ;;  %v9246_v40 = vpop.f32.mrf.mxu0 }
0x1417   :  { %v4075_v58 = vadd.f32 %v9246_v40, %v7887_v30  ;;  %v3871_v38 = vadd.f32 %v9202_v17, %v7859_v46  ;;  %v7913_v17 = vld [vmem:[%s11760_s9 + $0x178] sm:$0xff]  ;;  %v7926_v40 = vld [vmem:[%s11762_s8 + $0x170] sm:$0xff] }
0x1418   :  { %v3865_v47 = vpop.f32.mrf.mxu1  ;;  %v4069_v56 = vpop.f32.mrf.mxu0 }
0x1419   :  { %v3866_v48 = vadd.f32 %v7859_v46, %v3865_v47  ;;  %v4070_v39 = vadd.f32 %v7887_v30, %v4069_v56  ;;  %v7924_v56 = vld [vmem:[%s11762_s8 + $0x160] sm:$0xff] }
0x141b   :  { %9254 = vmatprep.mubr.msk.f32.mxu1 %vm516_vm3, %v3866_v48 }
0x141f   :  { %v9205_v49 = vpop.f32.mrf.mxu1  ;;  %v9249_v59 = vpop.f32.mrf.mxu0 }
0x1420   :  { %v4085_v61 = vadd.f32 %v9249_v59, %v7887_v30  ;;  %v3881_v0 = vadd.f32 %v9205_v49, %v7859_v46  ;;  %v7922_v59 = vld [vmem:[%s11762_s8 + $0x150] sm:$0xff] }
0x1421   :  { %v3875_v50 = vpop.f32.mrf.mxu1  ;;  %v4079_v63 = vpop.f32.mrf.mxu0 }
0x1422   :  { %v3876_v51 = vadd.f32 %v7859_v46, %v3875_v50  ;;  %v4080_v2 = vadd.f32 %v7887_v30, %v4079_v63  ;;  %v7925_v30 = vld [vmem:[%s11762_s8 + $0x168] sm:$0xff]  ;;  %v7920_v63 = vld [vmem:[%s11762_s8 + $0x140] sm:$0xff] }
0x1424   :  { %9261 = vmatprep.mubr.msk.f32.mxu0 %vm516_vm3, %v3876_v51 }
0x1427   :  { %v9224_v52 = vpop.f32.mrf.mxu1 }
0x1428   :  { %v3973_v53 = vadd.f32 %v9224_v52, %v7873_v36 }
0x1429   :  { %v3967_v33 = vpop.f32.mrf.mxu1 }
0x142a   :  { %v3968_v54 = vadd.f32 %v7873_v36, %v3967_v33  ;;  %9250 = vmatprep.subr.msk.mxu1 %vm516_vm3, %v3973_v53 }
0x142b   :  { %v9227_v55 = vpop.f32.mrf.mxu1  ;;  %9251 = vmatpush3.xpose.msk.msra.mxu1 %vm516_vm3, %v3973_v53 }
0x142c   :  { %v3983_v44 = vadd.f32 %v9227_v55, %v7873_v36  ;;  %9252 = vmatprep.subr.msk.mxu1 %vm516_vm3, %v3968_v54 }
0x142d   :  { %v3977_v57 = vpop.f32.mrf.mxu1 }
0x142e   :  { %v3978_v60 = vadd.f32 %v7873_v36, %v3977_v57  ;;  %9257 = vmatprep.subr.msk.mxu0 %vm516_vm3, %v3983_v44  ;;  %v7911_v57 = vld [vmem:[%s11760_s9 + $0x168] sm:$0xff] }
0x142f   :  { %9253 = vmatpush3.xpose.msk.msra.mxu1 %vm516_vm3, %v3968_v54  ;;  %9258 = vmatpush3.xpose.msk.msra.mxu0 %vm516_vm3, %v3983_v44  ;;  %v7912_v44 = vld [vmem:[%s11760_s9 + $0x170] sm:$0xff] }
0x1430   :  { %9259 = vmatprep.subr.msk.mxu0 %vm516_vm3, %v3978_v60  ;;  %9264 = vmatprep.subr.mxu1 %v4075_v58 }
0x1432   :  { %9255 = vmatmul.mubr.msk.f32.vlgmr.msra.gmra.mxu1 %vm516_vm3, %v3871_v38  ;;  %v7909_v38 = vld [vmem:[%s11760_s9 + $0x158] sm:$0xff] }
0x1433   :  { %9260 = vmatpush3.xpose.msk.msra.mxu0 %vm516_vm3, %v3978_v60  ;;  %9265 = vmatpush3.msra.mxu1 %v4075_v58  ;;  %v7923_v58 = vld [vmem:[%s11762_s8 + $0x158] sm:$0xff]  ;;  %v7910_v60 = vld [vmem:[%s11760_s9 + $0x160] sm:$0xff] }
0x1434   :  { %9266 = vmatprep.subr.mxu1 %v4070_v39  ;;  %9271 = vmatprep.subr.mxu0 %v4085_v61 }
0x1435   :  { %9267 = vmatpush3.msra.mxu1 %v4070_v39  ;;  %v7921_v39 = vld [vmem:[%s11762_s8 + $0x148] sm:$0xff] }
0x1436   :  { %9262 = vmatmul.mubr.msk.f32.vlgmr.msra.gmra.mxu0 %vm516_vm3, %v3881_v0  ;;  %9278 = vmatprep.subr.mxu1 %v7913_v17  ;;  %v7907_v0 = vld [vmem:[%s11760_s9 + $0x148] sm:$0xff] }
0x1437   :  { %9272 = vmatpush3.msra.mxu0 %v4085_v61  ;;  %v7908_v61 = vld [vmem:[%s11760_s9 + $0x150] sm:$0xff] }
0x1438   :  { %9273 = vmatprep.subr.mxu0 %v4080_v2 }
0x1439   :  { %9274 = vmatpush3.msra.mxu0 %v4080_v2  ;;  %v7906_v2 = vld [vmem:[%s11760_s9 + $0x140] sm:$0xff] }
0x143a   :  { %9300 = vmatprep.subr.mxu0 %v7927_v19 }
0x14f2   :  { %v9256_v3 = vpop.f32.mrf.mxu1 }
0x14f3   :  { %v4263_v9 = vmul.f32 0.25, %v9256_v3  ;;  %v7941_v3 = vld [vmem:[%s11761_s29 + $0x178] sm:$0xff] }
0x14f4   :  { %v4166_v7 = vpop.f32.mrf.mxu1 }
0x14f5   :  { %v4262_v12 = vmul.f32 0.25, %v4166_v7  ;;  %v4269_v14 = vsel %vm516_vm3, %v4263_v9, -inf  ;;  %v7938_v7 = vld [vmem:[%s11761_s29 + $0x160] sm:$0xff] }
0x14f6   :  { %v9263_v5 = vpop.f32.mrf.mxu0 }
0x14f7   :  { %v4265_v6 = vmul.f32 0.25, %v9263_v5  ;;  %v4266_v23 = vsel %vm516_vm3, %v4262_v12, -inf  ;;  %v7940_v5 = vld [vmem:[%s11761_s29 + $0x170] sm:$0xff] }
0x14f8   :  { %v4253_v8 = vpop.f32.mrf.mxu0 }
0x14f9   :  { %v4264_v10 = vmul.f32 0.25, %v4253_v8  ;;  %v4275_v11 = vsel %vm516_vm3, %v4265_v6, -inf  ;;  %v7937_v8 = vld [vmem:[%s11761_s29 + $0x158] sm:$0xff] }
0x14fa   :  { %4276 = vmax.xlane.f32.xlu1 %v4275_v11  ;;  %v7934_v11 = vld [vmem:[%s11761_s29 + $0x140] sm:$0xff] }
0x14fb   :  { %v4272_v13 = vsel %vm516_vm3, %v4264_v10, -inf }
0x14fc   :  { %4273 = vmax.xlane.f32.xlu0 %v4272_v13 }
0x14fe   :  { %4270 = vmax.xlane.f32.xlu1 %v4269_v14 }
0x1500   :  { %4267 = vmax.xlane.f32.xlu0 %v4266_v23  ;;  %v7929_v23 = vld [vmem:[%s11767_s26 + $0x5] ss:$0 sm:$0xff] }
0x1583   :  { %v4277_v24 = vpop.xlane.xlu1 %4276 }
0x1584   :  { %v4281_v25 = vsub.f32 %v4265_v6, %v4277_v24  ;;  %v7939_v6 = vld [vmem:[%s11761_s29 + $0x168] sm:$0xff] }
0x1585   :  { %v4274_v26 = vpop.xlane.xlu0 %4273 }
0x1586   :  { %v4288_v27 = vmul.f32 1.442695, %v4281_v25  ;;  %v4280_v28 = vsub.f32 %v4264_v10, %v4274_v26  ;;  %v7935_v10 = vld [vmem:[%s11761_s29 + $0x148] sm:$0xff] }
0x1587   :  { %v4271_v29 = vpop.xlane.xlu1 %4270 }
0x1588   :  { %9808 = vpow2.f32 %v4288_v27  ;;  %v4286_v31 = vmul.f32 1.442695, %v4280_v28  ;;  %v4279_v32 = vsub.f32 %v4263_v9, %v4271_v29  ;;  %v7936_v9 = vld [vmem:[%s11761_s29 + $0x150] sm:$0xff] }
0x1589   :  { %v4268_v35 = vpop.xlane.xlu0 %4267 }
0x158a   :  { %9810 = vpow2.f32 %v4286_v31  ;;  %v4284_v41 = vmul.f32 1.442695, %v4279_v32  ;;  %v4278_v42 = vsub.f32 %v4262_v12, %v4268_v35  ;;  %v7915_v32 = vld [vmem:[%s11765_s0 + $0x5] ss:$0 sm:$0xff] }
0x158c   :  { %9812 = vpow2.f32 %v4284_v41  ;;  %v4282_v43 = vmul.f32 1.442695, %v4278_v42 }
0x158e   :  { %9814 = vpow2.f32 %v4282_v43 }
0x1595   :  { %v9809_v22 = vpop.eup %9808 }
0x1596   :  { %v4299_v62 = vsel %vm516_vm3, %v9809_v22, 0.0 }
0x1597   :  { %v9811_v15 = vpop.eup %9810  ;;  %4300 = vadd.xlane.f32.xlu1 %v4299_v62 }
0x1598   :  { %v4296_v16 = vsel %vm516_vm3, %v9811_v15, 0.0 }
0x1599   :  { %v9813_v45 = vpop.eup %9812  ;;  %4297 = vadd.xlane.f32.xlu0 %v4296_v16 }
0x159a   :  { %v4293_v1 = vsel %vm516_vm3, %v9813_v45, 0.0 }
0x159b   :  { %v9815_v20 = vpop.eup %9814  ;;  %4294 = vadd.xlane.f32.xlu1 %v4293_v1 }
0x159c   :  { %v4290_v21 = vsel %vm516_vm3, %v9815_v20, 0.0 }
0x159d   :  { %4291 = vadd.xlane.f32.xlu0 %v4290_v21 }
0x1620   :  { %v4301_v46 = vpop.xlane.xlu1 %4300 }
0x1621   :  { %9816 = vrcp.f32 %v4301_v46 }
0x1622   :  { %v4298_v47 = vpop.xlane.xlu0 %4297 }
0x1623   :  { %9818 = vrcp.f32 %v4298_v47 }
0x1624   :  { %v4295_v48 = vpop.xlane.xlu1 %4294 }
0x1625   :  { %9820 = vrcp.f32 %v4295_v48 }
0x1626   :  { %v4292_v49 = vpop.xlane.xlu0 %4291 }
0x1627   :  { %9822 = vrcp.f32 %v4292_v49 }
0x162e   :  { %v9817_v50 = vpop.eup %9816 }
0x162f   :  { %v4309_v52 = vmul.f32 %v9817_v50, %v9809_v22 }
0x1630   :  { %v9819_v51 = vpop.eup %9818 }
0x1631   :  { %v4308_v36 = vmul.f32 %v9819_v51, %v9811_v15 }
0x1632   :  { %v9821_v53 = vpop.eup %9820 }
0x1633   :  { %9275 = vmatprep.mubr.msk.f32.mxu0 %vm516_vm3, %v4308_v36  ;;  %v4307_v55 = vmul.f32 %v9821_v53, %v9813_v45 }
0x1634   :  { %v9823_v33 = vpop.eup %9822  ;;  %9276 = vmatmul.mubr.msk.f32.vlgmr.msra.gmra.mxu0 %vm516_vm3, %v4309_v52 }
0x1635   :  { %9301 = vmatpush3.msra.mxu0 %v7927_v19  ;;  %9316 = vmatprep.mubr.msk.f32.mxu0 %vm218_vm2, %v10895_v34  ;;  %v4306_v54 = vmul.f32 %v9823_v33, %v9815_v20  ;;  %v7943_v20 = vld [vmem:[%s11766_s6 + $0x5] ss:$0 sm:$0xff] }
0x1636   :  { %9302 = vmatprep.subr.mxu0 %v7926_v40 }
0x1637   :  { %9303 = vmatpush3.msra.mxu0 %v7926_v40  ;;  %9268 = vmatprep.mubr.msk.f32.mxu1 %vm516_vm3, %v4306_v54 }
0x1638   :  { %9304 = vmatprep.subr.mxu0 %v7925_v30  ;;  %9269 = vmatmul.mubr.msk.f32.vlgmr.msra.gmra.mxu1 %vm516_vm3, %v4307_v55 }
0x1639   :  { %9279 = vmatpush3.msra.mxu1 %v7913_v17  ;;  %9305 = vmatpush3.msra.mxu0 %v7925_v30 }
0x163a   :  { %9280 = vmatprep.subr.mxu1 %v7912_v44  ;;  %9294 = vmatprep.mubr.msk.f32.mxu1 %vm218_vm2, %v10895_v34 }
0x163b   :  { %9306 = vmatprep.subr.mxu0 %v7924_v56  ;;  %9281 = vmatpush3.msra.mxu1 %v7912_v44 }
0x163c   :  { %9307 = vmatpush3.msra.mxu0 %v7924_v56  ;;  %9282 = vmatprep.subr.mxu1 %v7911_v57 }
0x163d   :  { %9308 = vmatprep.subr.mxu0 %v7923_v58  ;;  %9283 = vmatpush3.msra.mxu1 %v7911_v57 }
0x163e   :  { %9309 = vmatpush3.msra.mxu0 %v7923_v58  ;;  %9284 = vmatprep.subr.mxu1 %v7910_v60 }
0x163f   :  { %9310 = vmatprep.subr.mxu0 %v7922_v59  ;;  %9285 = vmatpush3.msra.mxu1 %v7910_v60 }
0x1640   :  { %9311 = vmatpush3.msra.mxu0 %v7922_v59  ;;  %9286 = vmatprep.subr.mxu1 %v7909_v38 }
0x1641   :  { %9312 = vmatprep.subr.mxu0 %v7921_v39  ;;  %9287 = vmatpush3.msra.mxu1 %v7909_v38 }
0x1642   :  { %9313 = vmatpush3.msra.mxu0 %v7921_v39  ;;  %9288 = vmatprep.subr.mxu1 %v7908_v61 }
0x1643   :  { %9314 = vmatprep.subr.mxu0 %v7920_v63  ;;  %9289 = vmatpush3.msra.mxu1 %v7908_v61 }
0x1644   :  { %9315 = vmatpush3.msra.mxu0 %v7920_v63  ;;  %9290 = vmatprep.subr.mxu1 %v7907_v0 }
0x1645   :  { %9317 = vmatmul.mubr.msk.f32.vlgmr.msra.gmra.mxu0 %vm218_vm2, %v10897_v37  ;;  %9291 = vmatpush3.msra.mxu1 %v7907_v0 }
0x1646   :  { %9319 = vmatprep.mubr.msk.f32.mxu0 %vm218_vm2, %v10918_v18  ;;  %9292 = vmatprep.subr.mxu1 %v7906_v2 }
0x1647   :  { %9293 = vmatpush3.msra.mxu1 %v7906_v2 }
0x1648   :  { %9295 = vmatmul.mubr.msk.f32.vlgmr.msra.gmra.mxu1 %vm218_vm2, %v10897_v37  ;;  %9322 = vmatprep.subr.mxu1 %v7941_v3 }
0x1649   :  { %9320 = vmatmul.mubr.msk.f32.gmra.mxu0 %vm218_vm2, %v10923_v4  ;;  %9297 = vmatprep.mubr.msk.f32.mxu1 %vm218_vm2, %v10918_v18 }
0x164a   :  { %9323 = vmatpush3.msra.mxu1 %v7941_v3 }
0x164b   :  { %9324 = vmatprep.subr.mxu1 %v7940_v5 }
0x164c   :  { %9325 = vmatpush3.msra.mxu1 %v7940_v5 }
0x164d   :  { %9298 = vmatmul.mubr.msk.f32.gmra.mxu1 %vm218_vm2, %v10923_v4  ;;  %9326 = vmatprep.subr.mxu1 %v7939_v6 }
0x164e   :  { %9327 = vmatpush3.msra.mxu1 %v7939_v6  ;;  %9338 = vmatprep.mubr.msk.f32.mxu1 %vm218_vm2, %v10895_v34 }
0x164f   :  { %9328 = vmatprep.subr.mxu1 %v7938_v7 }
0x1650   :  { %9329 = vmatpush3.msra.mxu1 %v7938_v7 }
0x1651   :  { %9330 = vmatprep.subr.mxu1 %v7937_v8 }
0x1652   :  { %9331 = vmatpush3.msra.mxu1 %v7937_v8 }
0x1653   :  { %9332 = vmatprep.subr.mxu1 %v7936_v9 }
0x1654   :  { %9333 = vmatpush3.msra.mxu1 %v7936_v9 }
0x1655   :  { %9334 = vmatprep.subr.mxu1 %v7935_v10 }
0x1656   :  { %9335 = vmatpush3.msra.mxu1 %v7935_v10 }
0x1657   :  { %9336 = vmatprep.subr.mxu1 %v7934_v11 }
0x1658   :  { %9337 = vmatpush3.msra.mxu1 %v7934_v11 }
0x1659   :  { %9339 = vmatmul.mubr.msk.f32.vlgmr.msra.gmra.mxu1 %vm218_vm2, %v10897_v37 }
0x165a   :  { %9341 = vmatprep.mubr.msk.f32.mxu1 %vm218_vm2, %v10918_v18 }
0x165d   :  { %9342 = vmatmul.mubr.msk.f32.gmra.mxu1 %vm218_vm2, %v10923_v4 }
0x16f4   :  { %v11079_v12 = vpop.f32.mrf.mxu0 }
0x16f6   :  { %v11083_v14 = vpop.f32.mrf.mxu0 }
0x16f8   :  { %v11081_v13 = vpop.f32.mrf.mxu1 }
0x16fa   :  { %v11088_v25 = vpop.f32.mrf.mxu1 }
0x1705   :  { %v9318_v24 = vpop.f32.mrf.mxu0 }
0x1706   :  { %v4666_v26 = vadd.f32 %v9318_v24, %v7929_v23 }
0x1707   :  { %v4660_v27 = vpop.f32.mrf.mxu0 }
0x1708   :  { %v4661_v28 = vadd.f32 %v7929_v23, %v4660_v27  ;;  %9344 = vmatprep.subr.msk.mxu0 %vm516_vm3, %v4666_v26  ;;  %v9296_v29 = vpop.f32.mrf.mxu1  ;;  %v7905_v27 = vld [vmem:[%s11724_s10 + $0x48] sm:$0xff] }
0x1709   :  { %v9321_v31 = vpop.f32.mrf.mxu0  ;;  %9345 = vmatpush3.xpose.msk.msra.mxu0 %vm516_vm3, %v4666_v26  ;;  %v4564_v62 = vadd.f32 %v9296_v29, %v7915_v32 }
0x170a   :  { %9346 = vmatprep.subr.msk.mxu0 %vm516_vm3, %v4661_v28  ;;  %v4558_v35 = vpop.f32.mrf.mxu1  ;;  %v4676_v42 = vadd.f32 %v9321_v31, %v7929_v23 }
0x170b   :  { %v4559_v41 = vadd.f32 %v7915_v32, %v4558_v35  ;;  %v4670_v43 = vpop.f32.mrf.mxu0 }
0x170c   :  { %v4671_v16 = vadd.f32 %v7929_v23, %v4670_v43 }
0x170d   :  { %v9299_v22 = vpop.f32.mrf.mxu1  ;;  %9347 = vmatpush3.xpose.msk.msra.mxu0 %vm516_vm3, %v4661_v28  ;;  %9348 = vmatprep.mubr.msk.f32.mxu0 %vm516_vm3, %v4559_v41  ;;  %v7961_v28 = vld [vmem:[%s11724_s10 + $0x58] sm:$0xff] }
0x170e   :  { %9351 = vmatprep.subr.msk.mxu0 %vm516_vm3, %v4676_v42  ;;  %v4574_v1 = vadd.f32 %v9299_v22, %v7915_v32 }
0x170f   :  { %v4568_v15 = vpop.f32.mrf.mxu1 }
0x1710   :  { %v4569_v45 = vadd.f32 %v7915_v32, %v4568_v15  ;;  %9349 = vmatmul.mubr.msk.f32.vlgmr.msra.gmra.mxu0 %vm516_vm3, %v4564_v62 }
0x1711   :  { %9352 = vmatpush3.xpose.msk.msra.mxu0 %vm516_vm3, %v4676_v42 }
0x1712   :  { %9353 = vmatprep.subr.msk.mxu0 %vm516_vm3, %v4671_v16  ;;  %9355 = vmatprep.mubr.msk.f32.mxu0 %vm516_vm3, %v4569_v45 }
0x1715   :  { %9354 = vmatpush3.xpose.msk.msra.mxu0 %vm516_vm3, %v4671_v16 }
0x1718   :  { %9356 = vmatmul.mubr.msk.f32.vlgmr.msra.gmra.mxu0 %vm516_vm3, %v4574_v1  ;;  %v7904_v1 = vld [vmem:[%s11724_s10 + $0x40] sm:$0xff] }
0x1719   :  { %v9340_v21 = vpop.f32.mrf.mxu1 }
0x171a   :  { %v4768_v19 = vadd.f32 %v9340_v21, %v7943_v20  ;;  %v7990_v21 = vld [vmem:[%s11762_s8 + $0x1b0] sm:$0xff] }
0x171b   :  { %v4762_v17 = vpop.f32.mrf.mxu1 }
0x171c   :  { %v4763_v46 = vadd.f32 %v7943_v20, %v4762_v17  ;;  %9358 = vmatprep.subr.mxu0 %v4768_v19  ;;  %v7984_v17 = vld [vmem:[%s11762_s8 + $0x180] sm:$0xff] }
0x171d   :  { %v9343_v47 = vpop.f32.mrf.mxu1  ;;  %9359 = vmatpush3.msra.mxu0 %v4768_v19  ;;  %v7988_v19 = vld [vmem:[%s11762_s8 + $0x1a0] sm:$0xff] }
0x171e   :  { %v4778_v48 = vadd.f32 %v9343_v47, %v7943_v20  ;;  %9360 = vmatprep.subr.mxu0 %v4763_v46  ;;  %v7977_v47 = vld [vmem:[%s11760_s9 + $0x1b8] sm:$0xff] }
0x171f   :  { %v4772_v49 = vpop.f32.mrf.mxu1  ;;  %9361 = vmatpush3.msra.mxu0 %v4763_v46  ;;  %v7960_v46 = vld [vmem:[%s11724_s10 + $0x50] sm:$0xff] }
0x1720   :  { %v4773_v50 = vadd.f32 %v7943_v20, %v4772_v49  ;;  %9365 = vmatprep.subr.mxu1 %v4778_v48  ;;  %9372 = vmatprep.subr.mxu0 %v7961_v28  ;;  %v7991_v20 = vld [vmem:[%s11762_s8 + $0x1b8] sm:$0xff] }
0x1721   :  { %9366 = vmatpush3.msra.mxu1 %v4778_v48 }
0x1722   :  { %9367 = vmatprep.subr.mxu1 %v4773_v50 }
0x1723   :  { %9368 = vmatpush3.msra.mxu1 %v4773_v50  ;;  %v7976_v50 = vld [vmem:[%s11760_s9 + $0x1b0] sm:$0xff] }
0x1724   :  { %9382 = vmatprep.subr.mxu1 %v7905_v27 }
0x17d0   :  { %v9350_v51 = vpop.f32.mrf.mxu0 }
0x17d1   :  { %v4956_v36 = vmul.f32 0.25, %v9350_v51  ;;  %v7975_v51 = vld [vmem:[%s11760_s9 + $0x1a8] sm:$0xff] }
0x17d2   :  { %v4859_v52 = vpop.f32.mrf.mxu0 }
0x17d3   :  { %v4955_v53 = vmul.f32 0.25, %v4859_v52  ;;  %v4962_v40 = vsel %vm516_vm3, %v4956_v36, -inf }
0x17d4   :  { %4963 = vmax.xlane.f32.xlu1 %v4962_v40 }
0x17d5   :  { %v4959_v33 = vsel %vm516_vm3, %v4955_v53, -inf }
0x17d6   :  { %4960 = vmax.xlane.f32.xlu0 %v4959_v33  ;;  %v7972_v33 = vld [vmem:[%s11760_s9 + $0x190] sm:$0xff] }
0x17d8   :  { %v9357_v54 = vpop.f32.mrf.mxu0 }
0x17d9   :  { %v4958_v30 = vmul.f32 0.25, %v9357_v54  ;;  %v7971_v54 = vld [vmem:[%s11760_s9 + $0x188] sm:$0xff] }
0x17da   :  { %v4946_v55 = vpop.f32.mrf.mxu0 }
0x17db   :  { %v4957_v44 = vmul.f32 0.25, %v4946_v55  ;;  %v4968_v56 = vsel %vm516_vm3, %v4958_v30, -inf  ;;  %v7970_v55 = vld [vmem:[%s11760_s9 + $0x180] sm:$0xff] }
0x17dc   :  { %4969 = vmax.xlane.f32.xlu1 %v4968_v56 }
0x17dd   :  { %v4965_v57 = vsel %vm516_vm3, %v4957_v44, -inf }
0x17de   :  { %4966 = vmax.xlane.f32.xlu0 %v4965_v57  ;;  %v8004_v57 = vld [vmem:[%s11761_s29 + $0x1b0] sm:$0xff] }
0x185d   :  { %v4964_v58 = vpop.xlane.xlu1 %4963 }
0x185e   :  { %v4972_v60 = vsub.f32 %v4956_v36, %v4964_v58  ;;  %v7974_v36 = vld [vmem:[%s11760_s9 + $0x1a0] sm:$0xff]  ;;  %v8003_v58 = vld [vmem:[%s11761_s29 + $0x1a8] sm:$0xff] }
0x185f   :  { %v4961_v59 = vpop.xlane.xlu0 %4960 }
0x1860   :  { %v4977_v38 = vmul.f32 1.442695, %v4972_v60  ;;  %v4971_v39 = vsub.f32 %v4955_v53, %v4961_v59  ;;  %v7973_v53 = vld [vmem:[%s11760_s9 + $0x198] sm:$0xff]  ;;  %v8002_v59 = vld [vmem:[%s11761_s29 + $0x1a0] sm:$0xff] }
0x1862   :  { %9824 = vpow2.f32 %v4977_v38  ;;  %v4975_v61 = vmul.f32 1.442695, %v4971_v39  ;;  %v8001_v38 = vld [vmem:[%s11761_s29 + $0x198] sm:$0xff] }
0x1864   :  { %9826 = vpow2.f32 %v4975_v61  ;;  %v7993_v61 = vld [vmem:[%s11767_s26 + $0x6] ss:$0 sm:$0xff] }
0x1865   :  { %v4970_v63 = vpop.xlane.xlu1 %4969 }
0x1866   :  { %v4974_v0 = vsub.f32 %v4958_v30, %v4970_v63  ;;  %v8000_v63 = vld [vmem:[%s11761_s29 + $0x190] sm:$0xff] }
0x1867   :  { %v4967_v2 = vpop.xlane.xlu0 %4966 }
0x1868   :  { %v4981_v3 = vmul.f32 1.442695, %v4974_v0  ;;  %v4973_v5 = vsub.f32 %v4957_v44, %v4967_v2  ;;  %v8005_v44 = vld [vmem:[%s11761_s29 + $0x1b8] sm:$0xff] }
0x186a   :  { %9828 = vpow2.f32 %v4981_v3  ;;  %v4979_v6 = vmul.f32 1.442695, %v4973_v5  ;;  %v7999_v3 = vld [vmem:[%s11761_s29 + $0x188] sm:$0xff] }
0x186c   :  { %9830 = vpow2.f32 %v4979_v6 }
0x186f   :  { %v9825_v7 = vpop.eup %9824 }
0x1870   :  { %v4986_v8 = vsel %vm516_vm3, %v9825_v7, 0.0 }
0x1871   :  { %v9827_v9 = vpop.eup %9826  ;;  %4987 = vadd.xlane.f32.xlu1 %v4986_v8 }
0x1872   :  { %v4983_v10 = vsel %vm516_vm3, %v9827_v9, 0.0 }
0x1873   :  { %4984 = vadd.xlane.f32.xlu0 %v4983_v10 }
0x1877   :  { %v9829_v11 = vpop.eup %9828 }
0x1878   :  { %v4992_v23 = vsel %vm516_vm3, %v9829_v11, 0.0 }
0x1879   :  { %v9831_v24 = vpop.eup %9830  ;;  %4993 = vadd.xlane.f32.xlu1 %v4992_v23 }
0x187a   :  { %v4989_v26 = vsel %vm516_vm3, %v9831_v24, 0.0 }
0x187b   :  { %4990 = vadd.xlane.f32.xlu0 %v4989_v26 }
0x18fa   :  { %v4988_v29 = vpop.xlane.xlu1 %4987 }
0x18fb   :  { %9832 = vrcp.f32 %v4988_v29 }
0x18fc   :  { %v4985_v31 = vpop.xlane.xlu0 %4984 }
0x18fd   :  { %9834 = vrcp.f32 %v4985_v31 }
0x1902   :  { %v4994_v32 = vpop.xlane.xlu1 %4993 }
0x1903   :  { %9836 = vrcp.f32 %v4994_v32 }
0x1904   :  { %v4991_v35 = vpop.xlane.xlu0 %4990 }
0x1905   :  { %9838 = vrcp.f32 %v4991_v35 }
0x1908   :  { %v9833_v41 = vpop.eup %9832 }
0x1909   :  { %v5000_v22 = vmul.f32 %v9833_v41, %v9825_v7  ;;  %v7998_v7 = vld [vmem:[%s11761_s29 + $0x180] sm:$0xff] }
0x190a   :  { %v9835_v42 = vpop.eup %9834 }
0x190b   :  { %v4999_v43 = vmul.f32 %v9835_v42, %v9827_v9 }
0x190d   :  { %9362 = vmatprep.mubr.msk.f32.mxu0 %vm516_vm3, %v4999_v43 }
0x190e   :  { %9363 = vmatmul.mubr.msk.f32.vlgmr.msra.gmra.mxu0 %vm516_vm3, %v5000_v22 }
0x190f   :  { %9373 = vmatpush3.msra.mxu0 %v7961_v28 }
0x1910   :  { %v9837_v62 = vpop.eup %9836  ;;  %9374 = vmatprep.subr.mxu0 %v7960_v46 }
0x1911   :  { %v5002_v45 = vmul.f32 %v9837_v62, %v9829_v11  ;;  %9375 = vmatpush3.msra.mxu0 %v7960_v46  ;;  %v8007_v62 = vld [vmem:[%s11766_s6 + $0x6] ss:$0 sm:$0xff] }
0x1912   :  { %v9839_v15 = vpop.eup %9838  ;;  %9392 = vmatprep.subr.mxu0 %v7977_v47 }
0x1913   :  { %v5001_v16 = vmul.f32 %v9839_v15, %v9831_v24 }
0x1915   :  { %9369 = vmatprep.mubr.msk.f32.mxu1 %vm516_vm3, %v5001_v16 }
0x1916   :  { %9370 = vmatmul.mubr.msk.f32.vlgmr.msra.gmra.mxu1 %vm516_vm3, %v5002_v45 }
0x1917   :  { %9383 = vmatpush3.msra.mxu1 %v7905_v27  ;;  %9386 = vmatprep.mubr.msk.f32.mxu1 %vm516_vm3, %v11088_v25  ;;  %v7989_v25 = vld [vmem:[%s11762_s8 + $0x1a8] sm:$0xff]  ;;  %v7979_v27 = vld [vmem:[%s11765_s0 + $0x6] ss:$0 sm:$0xff] }
0x1918   :  { %9384 = vmatprep.subr.mxu1 %v7904_v1 }
0x1919   :  { %9385 = vmatpush3.msra.mxu1 %v7904_v1 }
0x191a   :  { %9414 = vmatprep.subr.mxu1 %v7991_v20  ;;  %9387 = vmatmul.mubr.msk.f32.vlgmr.msra.gmra.mxu1 %vm516_vm3, %v11081_v13  ;;  %v7987_v13 = vld [vmem:[%s11762_s8 + $0x198] sm:$0xff] }
0x191b   :  { %9415 = vmatpush3.msra.mxu1 %v7991_v20  ;;  %9389 = vmatprep.mubr.msk.f32.mxu1 %vm516_vm3, %v11083_v14  ;;  %v7986_v14 = vld [vmem:[%s11762_s8 + $0x190] sm:$0xff] }
0x191c   :  { %9416 = vmatprep.subr.mxu1 %v7990_v21 }
0x191d   :  { %9417 = vmatpush3.msra.mxu1 %v7990_v21 }
0x191e   :  { %9418 = vmatprep.subr.mxu1 %v7989_v25  ;;  %9390 = vmatmul.mubr.msk.f32.gmra.mxu1 %vm516_vm3, %v11079_v12  ;;  %v7985_v12 = vld [vmem:[%s11762_s8 + $0x188] sm:$0xff] }
0x191f   :  { %9419 = vmatpush3.msra.mxu1 %v7989_v25  ;;  %9430 = vmatprep.mubr.msk.f32.mxu1 %vm218_vm2, %v10895_v34 }
0x1920   :  { %9420 = vmatprep.subr.mxu1 %v7988_v19 }
0x1921   :  { %9421 = vmatpush3.msra.mxu1 %v7988_v19 }
0x1922   :  { %9422 = vmatprep.subr.mxu1 %v7987_v13 }
0x1923   :  { %9423 = vmatpush3.msra.mxu1 %v7987_v13 }
0x1924   :  { %9424 = vmatprep.subr.mxu1 %v7986_v14 }
0x1925   :  { %9425 = vmatpush3.msra.mxu1 %v7986_v14 }
0x1926   :  { %9426 = vmatprep.subr.mxu1 %v7985_v12 }
0x1927   :  { %9427 = vmatpush3.msra.mxu1 %v7985_v12 }
0x1928   :  { %9428 = vmatprep.subr.mxu1 %v7984_v17 }
0x1929   :  { %9429 = vmatpush3.msra.mxu1 %v7984_v17 }
0x192a   :  { %9431 = vmatmul.mubr.msk.f32.vlgmr.msra.gmra.mxu1 %vm218_vm2, %v10897_v37 }
0x192b   :  { %9433 = vmatprep.mubr.msk.f32.mxu1 %vm218_vm2, %v10918_v18 }
0x192e   :  { %9434 = vmatmul.mubr.msk.f32.gmra.mxu1 %vm218_vm2, %v10923_v4 }
0x19ce   :  { %v9364_v48 = vpop.f32.mrf.mxu0 }
0x19d0   :  { %v5075_v49 = vpop.f32.mrf.mxu0 }
0x19d1   :  { %9376 = vmatprep.mubr.msk.f32.mxu0 %vm516_vm3, %v5075_v49 }
0x19d2   :  { %9377 = vmatmul.mubr.msk.f32.vlgmr.msra.gmra.mxu0 %vm516_vm3, %v9364_v48 }
0x19d3   :  { %9393 = vmatpush3.msra.mxu0 %v7977_v47 }
0x19d4   :  { %9394 = vmatprep.subr.mxu0 %v7976_v50 }
0x19d5   :  { %9395 = vmatpush3.msra.mxu0 %v7976_v50 }
0x19d6   :  { %9396 = vmatprep.subr.mxu0 %v7975_v51  ;;  %v9371_v52 = vpop.f32.mrf.mxu1 }
0x19d7   :  { %9397 = vmatpush3.msra.mxu0 %v7975_v51 }
0x19d8   :  { %9398 = vmatprep.subr.mxu0 %v7974_v36  ;;  %v5156_v40 = vpop.f32.mrf.mxu1 }
0x19d9   :  { %9399 = vmatpush3.msra.mxu0 %v7974_v36  ;;  %9379 = vmatprep.mubr.msk.f32.mxu0 %vm516_vm3, %v5156_v40 }
0x19da   :  { %9400 = vmatprep.subr.mxu0 %v7973_v53  ;;  %9380 = vmatmul.mubr.msk.f32.gmra.mxu0 %vm516_vm3, %v9371_v52  ;;  %v11199_v30 = vpop.f32.mrf.mxu1 }
0x19db   :  { %9401 = vmatpush3.msra.mxu0 %v7973_v53  ;;  %9408 = vmatprep.mubr.msk.f32.mxu0 %vm218_vm2, %v10895_v34 }
0x19dc   :  { %9402 = vmatprep.subr.mxu0 %v7972_v33  ;;  %v11207_v56 = vpop.f32.mrf.mxu1 }
0x19dd   :  { %9403 = vmatpush3.msra.mxu0 %v7972_v33 }
0x19de   :  { %9404 = vmatprep.subr.mxu0 %v7971_v54  ;;  %v11219_v60 = vpop.f32.mrf.mxu1 }
0x19df   :  { %9405 = vmatpush3.msra.mxu0 %v7971_v54 }
0x19e0   :  { %9406 = vmatprep.subr.mxu0 %v7970_v55  ;;  %v11231_v39 = vpop.f32.mrf.mxu1 }
0x19e1   :  { %9407 = vmatpush3.msra.mxu0 %v7970_v55 }
0x19e2   :  { %9409 = vmatmul.mubr.msk.f32.vlgmr.msra.gmra.mxu0 %vm218_vm2, %v10897_v37  ;;  %9436 = vmatprep.subr.mxu0 %v8005_v44 }
0x19e3   :  { %9411 = vmatprep.mubr.msk.f32.mxu0 %vm218_vm2, %v10918_v18  ;;  %9437 = vmatpush3.msra.mxu0 %v8005_v44 }
0x19e4   :  { %9438 = vmatprep.subr.mxu0 %v8004_v57 }
0x19e5   :  { %9439 = vmatpush3.msra.mxu0 %v8004_v57 }
0x19e6   :  { %9412 = vmatmul.mubr.msk.f32.gmra.mxu0 %vm218_vm2, %v10923_v4  ;;  %9440 = vmatprep.subr.mxu0 %v8003_v58 }
0x19e7   :  { %9441 = vmatpush3.msra.mxu0 %v8003_v58  ;;  %9452 = vmatprep.mubr.msk.f32.mxu0 %vm218_vm2, %v10895_v34 }
0x19e8   :  { %9442 = vmatprep.subr.mxu0 %v8002_v59 }
0x19e9   :  { %9443 = vmatpush3.msra.mxu0 %v8002_v59 }
0x19ea   :  { %v9432_v0 = vpop.f32.mrf.mxu1  ;;  %9444 = vmatprep.subr.mxu0 %v8001_v38 }
0x19eb   :  { %v5553_v2 = vadd.f32 %v9432_v0, %v7993_v61  ;;  %9445 = vmatpush3.msra.mxu0 %v8001_v38 }
0x19ec   :  { %v5547_v5 = vpop.f32.mrf.mxu1  ;;  %9446 = vmatprep.subr.mxu0 %v8000_v63 }
0x19ed   :  { %v5548_v6 = vadd.f32 %v7993_v61, %v5547_v5  ;;  %9447 = vmatpush3.msra.mxu0 %v8000_v63  ;;  %9458 = vmatprep.subr.msk.mxu1 %vm516_vm3, %v5553_v2 }
0x19ee   :  { %v9435_v8 = vpop.f32.mrf.mxu1  ;;  %9448 = vmatprep.subr.mxu0 %v7999_v3  ;;  %9459 = vmatpush3.xpose.msk.msra.mxu1 %vm516_vm3, %v5553_v2 }
0x19ef   :  { %9449 = vmatpush3.msra.mxu0 %v7999_v3  ;;  %9460 = vmatprep.subr.msk.mxu1 %vm516_vm3, %v5548_v6  ;;  %v5563_v9 = vadd.f32 %v9435_v8, %v7993_v61 }
0x19f0   :  { %9450 = vmatprep.subr.mxu0 %v7998_v7  ;;  %v5557_v29 = vpop.f32.mrf.mxu1 }
0x19f1   :  { %9451 = vmatpush3.msra.mxu0 %v7998_v7  ;;  %v5558_v41 = vadd.f32 %v7993_v61, %v5557_v29 }
0x19f2   :  { %9453 = vmatmul.mubr.msk.f32.vlgmr.msra.gmra.mxu0 %vm218_vm2, %v10897_v37  ;;  %9461 = vmatpush3.xpose.msk.msra.mxu1 %vm516_vm3, %v5548_v6 }
0x19f3   :  { %9455 = vmatprep.mubr.msk.f32.mxu0 %vm218_vm2, %v10918_v18  ;;  %9465 = vmatprep.subr.msk.mxu1 %vm516_vm3, %v5563_v9 }
0x19f6   :  { %9456 = vmatmul.mubr.msk.f32.gmra.mxu0 %vm218_vm2, %v10923_v4 }
0x1a92   :  { %v11256_v10 = vpop.f32.mrf.mxu0 }
0x1a94   :  { %v11258_v11 = vpop.f32.mrf.mxu0 }
0x1a9a   :  { %v11260_v23 = vpop.f32.mrf.mxu0 }
0x1a9c   :  { %v11262_v24 = vpop.f32.mrf.mxu0 }
0x1aa2   :  { %v9410_v26 = vpop.f32.mrf.mxu0 }
0x1aa3   :  { %v5451_v32 = vadd.f32 %v9410_v26, %v7979_v27  ;;  %v8037_v26 = vld [vmem:[%s11760_s9 + $0x1f8] sm:$0xff] }
0x1aa4   :  { %v5445_v28 = vpop.f32.mrf.mxu0 }
0x1aa5   :  { %v5446_v31 = vadd.f32 %v7979_v27, %v5445_v28 }
0x1aa6   :  { %v9413_v35 = vpop.f32.mrf.mxu0 }
0x1aa7   :  { %9462 = vmatprep.mubr.msk.f32.mxu1 %vm516_vm3, %v5446_v31  ;;  %v5461_v22 = vadd.f32 %v9413_v35, %v7979_v27 }
0x1aa8   :  { %v5455_v42 = vpop.f32.mrf.mxu0  ;;  %9463 = vmatmul.mubr.msk.f32.vlgmr.msra.gmra.mxu1 %vm516_vm3, %v5451_v32 }
0x1aa9   :  { %v5456_v43 = vadd.f32 %v7979_v27, %v5455_v42  ;;  %9466 = vmatpush3.xpose.msk.msra.mxu1 %vm516_vm3, %v5563_v9  ;;  %v8025_v27 = vld [vmem:[%s11724_s10 + $0x68] sm:$0xff] }
0x1aaa   :  { %9467 = vmatprep.subr.msk.mxu1 %vm516_vm3, %v5558_v41 }
0x1aab   :  { %9469 = vmatprep.mubr.msk.f32.mxu1 %vm516_vm3, %v5456_v43 }
0x1aad   :  { %9468 = vmatpush3.xpose.msk.msra.mxu1 %vm516_vm3, %v5558_v41 }
0x1ab0   :  { %9470 = vmatmul.mubr.msk.f32.vlgmr.msra.gmra.mxu1 %vm516_vm3, %v5461_v22 }
0x1ab2   :  { %v9454_v15 = vpop.f32.mrf.mxu0 }
0x1ab3   :  { %v5655_v16 = vadd.f32 %v9454_v15, %v8007_v62 }
0x1ab4   :  { %v5649_v45 = vpop.f32.mrf.mxu0 }
0x1ab5   :  { %v5650_v1 = vadd.f32 %v8007_v62, %v5649_v45  ;;  %9472 = vmatprep.subr.mxu1 %v5655_v16  ;;  %v8036_v45 = vld [vmem:[%s11760_s9 + $0x1f0] sm:$0xff] }
0x1ab6   :  { %v9457_v20 = vpop.f32.mrf.mxu0  ;;  %9473 = vmatpush3.msra.mxu1 %v5655_v16 }
0x1ab7   :  { %v5665_v21 = vadd.f32 %v9457_v20, %v8007_v62  ;;  %9474 = vmatprep.subr.mxu1 %v5650_v1  ;;  %v8034_v20 = vld [vmem:[%s11760_s9 + $0x1e0] sm:$0xff] }
0x1ab8   :  { %v5659_v25 = vpop.f32.mrf.mxu0  ;;  %9475 = vmatpush3.msra.mxu1 %v5650_v1  ;;  %v8035_v1 = vld [vmem:[%s11760_s9 + $0x1e8] sm:$0xff] }
0x1ab9   :  { %v5660_v19 = vadd.f32 %v8007_v62, %v5659_v25  ;;  %9479 = vmatprep.subr.mxu0 %v5665_v21  ;;  %9486 = vmatprep.subr.mxu1 %v8025_v27  ;;  %v8032_v25 = vld [vmem:[%s11760_s9 + $0x1d0] sm:$0xff] }
0x1aba   :  { %9480 = vmatpush3.msra.mxu0 %v5665_v21  ;;  %v8033_v21 = vld [vmem:[%s11760_s9 + $0x1d8] sm:$0xff] }
0x1abb   :  { %9481 = vmatprep.subr.mxu0 %v5660_v19 }
0x1abc   :  { %9482 = vmatpush3.msra.mxu0 %v5660_v19  ;;  %v8031_v19 = vld [vmem:[%s11760_s9 + $0x1c8] sm:$0xff] }
0x1abd   :  { %9496 = vmatprep.subr.mxu0 %v8037_v26 }
0x1b68   :  { %v9464_v13 = vpop.f32.mrf.mxu1 }
0x1b69   :  { %v5843_v14 = vmul.f32 0.25, %v9464_v13  ;;  %v8030_v13 = vld [vmem:[%s11760_s9 + $0x1c0] sm:$0xff] }
0x1b6a   :  { %v5746_v12 = vpop.f32.mrf.mxu1 }
0x1b6b   :  { %v5842_v17 = vmul.f32 0.25, %v5746_v12  ;;  %v5849_v46 = vsel %vm516_vm3, %v5843_v14, -inf  ;;  %v8064_v12 = vld [vmem:[%s11761_s29 + $0x1f0] sm:$0xff] }
0x1b6c   :  { %5850 = vmax.xlane.f32.xlu1 %v5849_v46  ;;  %v8062_v46 = vld [vmem:[%s11761_s29 + $0x1e0] sm:$0xff] }
0x1b6d   :  { %v5846_v47 = vsel %vm516_vm3, %v5842_v17, -inf }
0x1b6e   :  { %5847 = vmax.xlane.f32.xlu0 %v5846_v47  ;;  %v8061_v47 = vld [vmem:[%s11761_s29 + $0x1d8] sm:$0xff] }
0x1b70   :  { %v9471_v48 = vpop.f32.mrf.mxu1 }
0x1b71   :  { %v5845_v49 = vmul.f32 0.25, %v9471_v48  ;;  %v8060_v48 = vld [vmem:[%s11761_s29 + $0x1d0] sm:$0xff] }
0x1b72   :  { %v5833_v50 = vpop.f32.mrf.mxu1 }
0x1b73   :  { %v5844_v51 = vmul.f32 0.25, %v5833_v50  ;;  %v5855_v36 = vsel %vm516_vm3, %v5845_v49, -inf  ;;  %v8058_v50 = vld [vmem:[%s11761_s29 + $0x1c0] sm:$0xff] }
0x1b74   :  { %5856 = vmax.xlane.f32.xlu1 %v5855_v36  ;;  %v8051_v36 = vld [vmem:[%s11762_s8 + $0x1f8] sm:$0xff] }
0x1b75   :  { %v5852_v52 = vsel %vm516_vm3, %v5844_v51, -inf }
0x1b76   :  { %5853 = vmax.xlane.f32.xlu0 %v5852_v52 }
0x1bf5   :  { %v5851_v53 = vpop.xlane.xlu1 %5850 }
0x1bf6   :  { %v5859_v40 = vsub.f32 %v5843_v14, %v5851_v53  ;;  %v8065_v14 = vld [vmem:[%s11761_s29 + $0x1f8] sm:$0xff] }
0x1bf7   :  { %v5848_v33 = vpop.xlane.xlu0 %5847 }
0x1bf8   :  { %v5864_v54 = vmul.f32 1.442695, %v5859_v40  ;;  %v5858_v55 = vsub.f32 %v5842_v17, %v5848_v33  ;;  %v8063_v17 = vld [vmem:[%s11761_s29 + $0x1e8] sm:$0xff]  ;;  %v8050_v40 = vld [vmem:[%s11762_s8 + $0x1f0] sm:$0xff] }
0x1bf9   :  { %v8049_v33 = vld [vmem:[%s11762_s8 + $0x1e8] sm:$0xff] }
0x1bfa   :  { %9840 = vpow2.f32 %v5864_v54  ;;  %v5862_v44 = vmul.f32 1.442695, %v5858_v55  ;;  %v8048_v54 = vld [vmem:[%s11762_s8 + $0x1e0] sm:$0xff] }
0x1bfc   :  { %9842 = vpow2.f32 %v5862_v44  ;;  %v8047_v44 = vld [vmem:[%s11762_s8 + $0x1d8] sm:$0xff] }
0x1bfd   :  { %v5857_v57 = vpop.xlane.xlu1 %5856 }
0x1bfe   :  { %v5861_v58 = vsub.f32 %v5845_v49, %v5857_v57  ;;  %v8059_v49 = vld [vmem:[%s11761_s29 + $0x1c8] sm:$0xff] }
0x1bff   :  { %v5854_v59 = vpop.xlane.xlu0 %5853 }
0x1c00   :  { %v5868_v38 = vmul.f32 1.442695, %v5861_v58  ;;  %v5860_v61 = vsub.f32 %v5844_v51, %v5854_v59  ;;  %v8024_v51 = vld [vmem:[%s11724_s10 + $0x60] sm:$0xff]  ;;  %v8046_v58 = vld [vmem:[%s11762_s8 + $0x1d0] sm:$0xff]  ;;  %v8045_v59 = vld [vmem:[%s11762_s8 + $0x1c8] sm:$0xff] }
0x1c02   :  { %9844 = vpow2.f32 %v5868_v38  ;;  %v5866_v63 = vmul.f32 1.442695, %v5860_v61  ;;  %v8044_v38 = vld [vmem:[%s11762_s8 + $0x1c0] sm:$0xff] }
0x1c03   :  { %v8039_v61 = vld [vmem:[%s11765_s0 + $0x7] ss:$0 sm:$0xff] }
0x1c04   :  { %9846 = vpow2.f32 %v5866_v63 }
0x1c07   :  { %v9841_v0 = vpop.eup %9840 }
0x1c08   :  { %v5873_v2 = vsel %vm516_vm3, %v9841_v0, 0.0 }
0x1c09   :  { %v9843_v3 = vpop.eup %9842  ;;  %5874 = vadd.xlane.f32.xlu1 %v5873_v2 }
0x1c0a   :  { %v5870_v5 = vsel %vm516_vm3, %v9843_v3, 0.0 }
0x1c0b   :  { %5871 = vadd.xlane.f32.xlu0 %v5870_v5 }
0x1c0f   :  { %v9845_v6 = vpop.eup %9844 }
0x1c10   :  { %v5879_v7 = vsel %vm516_vm3, %v9845_v6, 0.0 }
0x1c11   :  { %v9847_v8 = vpop.eup %9846  ;;  %5880 = vadd.xlane.f32.xlu1 %v5879_v7 }
0x1c12   :  { %v5876_v9 = vsel %vm516_vm3, %v9847_v8, 0.0 }
0x1c13   :  { %5877 = vadd.xlane.f32.xlu0 %v5876_v9  ;;  %v8067_v9 = vld [vmem:[%s11766_s6 + $0x7] ss:$0 sm:$0xff] }
0x1c92   :  { %v5875_v28 = vpop.xlane.xlu1 %5874 }
0x1c93   :  { %9848 = vrcp.f32 %v5875_v28 }
0x1c94   :  { %v5872_v29 = vpop.xlane.xlu0 %5871 }
0x1c95   :  { %9850 = vrcp.f32 %v5872_v29 }
0x1c9a   :  { %v5881_v31 = vpop.xlane.xlu1 %5880 }
0x1c9b   :  { %9852 = vrcp.f32 %v5881_v31 }
0x1c9c   :  { %v5878_v32 = vpop.xlane.xlu0 %5877 }
0x1c9d   :  { %9854 = vrcp.f32 %v5878_v32 }
0x1ca0   :  { %v9849_v35 = vpop.eup %9848 }
0x1ca1   :  { %v5887_v43 = vmul.f32 %v9849_v35, %v9841_v0 }
0x1ca2   :  { %v9851_v41 = vpop.eup %9850 }
0x1ca3   :  { %v5886_v42 = vmul.f32 %v9851_v41, %v9843_v3 }
0x1ca5   :  { %9476 = vmatprep.mubr.msk.f32.mxu1 %vm516_vm3, %v5886_v42  ;;  %v5349_v42 = vadd.f32 %v11199_v30, %v11256_v10 }
0x1ca6   :  { %9477 = vmatmul.mubr.msk.f32.vlgmr.msra.gmra.mxu1 %vm516_vm3, %v5887_v43 }
0x1ca7   :  { %9487 = vmatpush3.msra.mxu1 %v8025_v27 }
0x1ca8   :  { %v9853_v22 = vpop.eup %9852  ;;  %9488 = vmatprep.subr.mxu1 %v8024_v51 }
0x1ca9   :  { %v5889_v16 = vmul.f32 %v9853_v22, %v9845_v6  ;;  %9489 = vmatpush3.msra.mxu1 %v8024_v51  ;;  %v5344_v22 = vadd.f32 %v11207_v56, %v11258_v11  ;;  %v8053_v56 = vld [vmem:[%s11767_s26 + $0x7] ss:$0 sm:$0xff] }
0x1caa   :  { %v9855_v62 = vpop.eup %9854  ;;  %9518 = vmatprep.subr.mxu1 %v8051_v36 }
0x1cab   :  { %v5888_v15 = vmul.f32 %v9855_v62, %v9847_v8 }
0x1cad   :  { %9483 = vmatprep.mubr.msk.f32.mxu0 %vm516_vm3, %v5888_v15 }
0x1cae   :  { %9484 = vmatmul.mubr.msk.f32.vlgmr.msra.gmra.mxu0 %vm516_vm3, %v5889_v16 }
0x1caf   :  { %9497 = vmatpush3.msra.mxu0 %v8037_v26  ;;  %9512 = vmatprep.mubr.msk.f32.mxu0 %vm218_vm2, %v10895_v34 }
0x1cb0   :  { %9498 = vmatprep.subr.mxu0 %v8036_v45 }
0x1cb1   :  { %9499 = vmatpush3.msra.mxu0 %v8036_v45  ;;  %v5359_v45 = vadd.f32 %v11219_v60, %v11260_v23 }
0x1cb2   :  { %9500 = vmatprep.subr.mxu0 %v8035_v1 }
0x1cb3   :  { %9501 = vmatpush3.msra.mxu0 %v8035_v1 }
0x1cb4   :  { %9502 = vmatprep.subr.mxu0 %v8034_v20 }
0x1cb5   :  { %9503 = vmatpush3.msra.mxu0 %v8034_v20  ;;  %v5354_v20 = vadd.f32 %v11231_v39, %v11262_v24 }
0x1cb6   :  { %9504 = vmatprep.subr.mxu0 %v8033_v21 }
0x1cb7   :  { %9505 = vmatpush3.msra.mxu0 %v8033_v21 }
0x1cb8   :  { %9506 = vmatprep.subr.mxu0 %v8032_v25 }
0x1cb9   :  { %9507 = vmatpush3.msra.mxu0 %v8032_v25 }
0x1cba   :  { %9508 = vmatprep.subr.mxu0 %v8031_v19 }
0x1cbb   :  { %9509 = vmatpush3.msra.mxu0 %v8031_v19 }
0x1cbc   :  { %9510 = vmatprep.subr.mxu0 %v8030_v13 }
0x1cbd   :  { %9511 = vmatpush3.msra.mxu0 %v8030_v13 }
0x1cbe   :  { %9513 = vmatmul.mubr.msk.f32.vlgmr.msra.gmra.mxu0 %vm218_vm2, %v10897_v37  ;;  %9540 = vmatprep.subr.mxu0 %v8065_v14 }
0x1cbf   :  { %9515 = vmatprep.mubr.msk.f32.mxu0 %vm218_vm2, %v10918_v18  ;;  %9541 = vmatpush3.msra.mxu0 %v8065_v14 }
0x1cc0   :  { %9542 = vmatprep.subr.mxu0 %v8064_v12 }
0x1cc1   :  { %9543 = vmatpush3.msra.mxu0 %v8064_v12 }
0x1cc2   :  { %9516 = vmatmul.mubr.msk.f32.gmra.mxu0 %vm218_vm2, %v10923_v4  ;;  %9544 = vmatprep.subr.mxu0 %v8063_v17 }
0x1cc3   :  { %9545 = vmatpush3.msra.mxu0 %v8063_v17  ;;  %9556 = vmatprep.mubr.msk.f32.mxu0 %vm218_vm2, %v10895_v34 }
0x1cc4   :  { %9546 = vmatprep.subr.mxu0 %v8062_v46 }
0x1cc5   :  { %9547 = vmatpush3.msra.mxu0 %v8062_v46 }
0x1cc6   :  { %9548 = vmatprep.subr.mxu0 %v8061_v47 }
0x1cc7   :  { %9549 = vmatpush3.msra.mxu0 %v8061_v47 }
0x1cc8   :  { %9550 = vmatprep.subr.mxu0 %v8060_v48 }
0x1cc9   :  { %9551 = vmatpush3.msra.mxu0 %v8060_v48 }
0x1cca   :  { %9552 = vmatprep.subr.mxu0 %v8059_v49 }
0x1ccb   :  { %9553 = vmatpush3.msra.mxu0 %v8059_v49 }
0x1ccc   :  { %9554 = vmatprep.subr.mxu0 %v8058_v50 }
0x1ccd   :  { %9555 = vmatpush3.msra.mxu0 %v8058_v50 }
0x1cce   :  { %9557 = vmatmul.mubr.msk.f32.vlgmr.msra.gmra.mxu0 %vm218_vm2, %v10897_v37 }
0x1ccf   :  { %9559 = vmatprep.mubr.msk.f32.mxu0 %vm218_vm2, %v10918_v18 }
0x1cd2   :  { %9560 = vmatmul.mubr.msk.f32.gmra.mxu0 %vm218_vm2, %v10923_v4 }
0x1d66   :  { %v9478_v52 = vpop.f32.mrf.mxu1 }
0x1d68   :  { %v5962_v53 = vpop.f32.mrf.mxu1 }
0x1d69   :  { %9490 = vmatprep.mubr.msk.f32.mxu1 %vm516_vm3, %v5962_v53 }
0x1d6a   :  { %9491 = vmatmul.mubr.msk.f32.vlgmr.msra.gmra.mxu1 %vm516_vm3, %v9478_v52 }
0x1d6b   :  { %9519 = vmatpush3.msra.mxu1 %v8051_v36 }
0x1d6c   :  { %9520 = vmatprep.subr.mxu1 %v8050_v40 }
0x1d6d   :  { %9521 = vmatpush3.msra.mxu1 %v8050_v40 }
0x1d6e   :  { %v9485_v55 = vpop.f32.mrf.mxu0  ;;  %9522 = vmatprep.subr.mxu1 %v8049_v33 }
0x1d6f   :  { %9523 = vmatpush3.msra.mxu1 %v8049_v33 }
0x1d70   :  { %v6043_v57 = vpop.f32.mrf.mxu0  ;;  %9524 = vmatprep.subr.mxu1 %v8048_v54 }
0x1d71   :  { %9493 = vmatprep.mubr.msk.f32.mxu1 %vm516_vm3, %v6043_v57  ;;  %9525 = vmatpush3.msra.mxu1 %v8048_v54 }
0x1d72   :  { %9494 = vmatmul.mubr.msk.f32.gmra.mxu1 %vm516_vm3, %v9485_v55  ;;  %9526 = vmatprep.subr.mxu1 %v8047_v44 }
0x1d73   :  { %9527 = vmatpush3.msra.mxu1 %v8047_v44  ;;  %9534 = vmatprep.mubr.msk.f32.mxu1 %vm218_vm2, %v10895_v34 }
0x1d74   :  { %9528 = vmatprep.subr.mxu1 %v8046_v58 }
0x1d75   :  { %9529 = vmatpush3.msra.mxu1 %v8046_v58 }
0x1d76   :  { %9530 = vmatprep.subr.mxu1 %v8045_v59 }
0x1d77   :  { %9531 = vmatpush3.msra.mxu1 %v8045_v59 }
0x1d78   :  { %9532 = vmatprep.subr.mxu1 %v8044_v38 }
0x1d79   :  { %9533 = vmatpush3.msra.mxu1 %v8044_v38 }
0x1d7a   :  { %9535 = vmatmul.mubr.msk.f32.vlgmr.msra.gmra.mxu1 %vm218_vm2, %v10897_v37 }
0x1d7b   :  { %9537 = vmatprep.mubr.msk.f32.mxu1 %vm218_vm2, %v10918_v18 }
0x1d7e   :  { %v9514_v63 = vpop.f32.mrf.mxu0  ;;  %9538 = vmatmul.mubr.msk.f32.gmra.mxu1 %vm218_vm2, %v10923_v4 }
0x1d7f   :  { %v6245_v0 = vadd.f32 %v9514_v63, %v8039_v61 }
0x1d80   :  { %v6239_v2 = vpop.f32.mrf.mxu0 }
0x1d81   :  { %v6240_v3 = vadd.f32 %v8039_v61, %v6239_v2 }
0x1d82   :  { %v9517_v5 = vpop.f32.mrf.mxu0 }
0x1d83   :  { %v6255_v6 = vadd.f32 %v9517_v5, %v8039_v61  ;;  %9566 = vmatprep.mubr.msk.f32.mxu1 %vm516_vm3, %v6240_v3 }
0x1d84   :  { %v6249_v7 = vpop.f32.mrf.mxu0 }
0x1d85   :  { %v6250_v8 = vadd.f32 %v8039_v61, %v6249_v7 }
0x1d8e   :  { %v9558_v26 = vpop.f32.mrf.mxu0 }
0x1d8f   :  { %v6449_v27 = vadd.f32 %v9558_v26, %v8067_v9 }
0x1d90   :  { %v6443_v28 = vpop.f32.mrf.mxu0 }
0x1d91   :  { %v6444_v29 = vadd.f32 %v8067_v9, %v6443_v28 }
0x1d92   :  { %v9561_v31 = vpop.f32.mrf.mxu0 }
0x1d93   :  { %v6459_v32 = vadd.f32 %v9561_v31, %v8067_v9 }
0x1d94   :  { %v6453_v35 = vpop.f32.mrf.mxu0 }
0x1d95   :  { %v6454_v41 = vadd.f32 %v8067_v9, %v6453_v35  ;;  %9583 = vmatprep.subr.mxu0 %v6459_v32 }
0x1d96   :  { %9584 = vmatpush3.msra.mxu0 %v6459_v32 }
0x1d97   :  { %9585 = vmatprep.subr.mxu0 %v6454_v41 }
0x1d98   :  { %9586 = vmatpush3.msra.mxu0 %v6454_v41 }
0x1e2a   :  { %v9492_v43 = vpop.f32.mrf.mxu1 }
0x1e2b   :  { %v11406_v62 = vadd.f32 %v9492_v43, %v5349_v42 }
0x1e2c   :  { %v6133_v15 = vpop.f32.mrf.mxu1 }
0x1e2d   :  { %v11408_v16 = vadd.f32 %v6133_v15, %v5344_v22 }
0x1e32   :  { %v9495_v1 = vpop.f32.mrf.mxu1 }
0x1e33   :  { %v11414_v21 = vadd.f32 %v9495_v1, %v5359_v45  ;;  %v8085_v1 = vld [vmem:[%s11724_s10 + $0x78] sm:$0xff] }
0x1e34   :  { %v6143_v25 = vpop.f32.mrf.mxu1 }
0x1e35   :  { %v11416_v30 = vadd.f32 %v6143_v25, %v5354_v20  ;;  %v8084_v20 = vld [vmem:[%s11724_s10 + $0x70] sm:$0xff] }
0x1e3a   :  { %v9536_v10 = vpop.f32.mrf.mxu1 }
0x1e3b   :  { %v6347_v11 = vadd.f32 %v9536_v10, %v8053_v56 }
0x1e3c   :  { %v6341_v19 = vpop.f32.mrf.mxu1 }
0x1e3d   :  { %v6342_v13 = vadd.f32 %v8053_v56, %v6341_v19  ;;  %9562 = vmatprep.subr.msk.mxu1 %vm516_vm3, %v6347_v11 }
0x1e3e   :  { %v9539_v60 = vpop.f32.mrf.mxu1  ;;  %9563 = vmatpush3.xpose.msk.msra.mxu1 %vm516_vm3, %v6347_v11 }
0x1e3f   :  { %9564 = vmatprep.subr.msk.mxu1 %vm516_vm3, %v6342_v13  ;;  %v6357_v39 = vadd.f32 %v9539_v60, %v8053_v56 }
0x1e40   :  { %v6351_v23 = vpop.f32.mrf.mxu1 }
0x1e41   :  { %v6352_v24 = vadd.f32 %v8053_v56, %v6351_v23 }
0x1e42   :  { %9565 = vmatpush3.xpose.msk.msra.mxu1 %vm516_vm3, %v6342_v13  ;;  %v8091_v13 = vld [vmem:[%s11725_s11 + $0x1] ss:$0 sm:$0xff] }
0x1e43   :  { %9569 = vmatprep.subr.msk.mxu1 %vm516_vm3, %v6357_v39 }
0x1e45   :  { %9567 = vmatmul.mubr.msk.f32.vlgmr.msra.gmra.mxu1 %vm516_vm3, %v6245_v0 }
0x1e46   :  { %9570 = vmatpush3.xpose.msk.msra.mxu1 %vm516_vm3, %v6357_v39  ;;  %9573 = vmatprep.mubr.msk.f32.mxu1 %vm516_vm3, %v6250_v8 }
0x1e47   :  { %9571 = vmatprep.subr.msk.mxu1 %vm516_vm3, %v6352_v24 }
0x1e4a   :  { %9572 = vmatpush3.xpose.msk.msra.mxu1 %vm516_vm3, %v6352_v24 }
0x1e4b   :  { %9576 = vmatprep.subr.mxu1 %v6449_v27 }
0x1e4d   :  { %9574 = vmatmul.mubr.msk.f32.vlgmr.msra.gmra.mxu1 %vm516_vm3, %v6255_v6 }
0x1e4e   :  { %9577 = vmatpush3.msra.mxu1 %v6449_v27 }
0x1e4f   :  { %9578 = vmatprep.subr.mxu1 %v6444_v29 }
0x1e50   :  { %9579 = vmatpush3.msra.mxu1 %v6444_v29 }
0x1e51   :  { %9590 = vmatprep.subr.mxu1 %v8085_v1 }
0x1f05   :  { %v9568_v14 = vpop.f32.mrf.mxu1 }
0x1f06   :  { %v6637_v12 = vmul.f32 0.25, %v9568_v14 }
0x1f07   :  { %v6540_v17 = vpop.f32.mrf.mxu1 }
0x1f08   :  { %v6636_v46 = vmul.f32 0.25, %v6540_v17  ;;  %v6643_v47 = vsel %vm516_vm3, %v6637_v12, -inf }
0x1f09   :  { %6644 = vmax.xlane.f32.xlu1 %v6643_v47 }
0x1f0a   :  { %v6640_v48 = vsel %vm516_vm3, %v6636_v46, -inf }
0x1f0b   :  { %6641 = vmax.xlane.f32.xlu0 %v6640_v48 }
0x1f0d   :  { %v9575_v49 = vpop.f32.mrf.mxu1 }
0x1f0e   :  { %v6639_v50 = vmul.f32 0.25, %v9575_v49 }
0x1f0f   :  { %v6627_v51 = vpop.f32.mrf.mxu1 }
0x1f10   :  { %v6638_v36 = vmul.f32 0.25, %v6627_v51  ;;  %v6649_v52 = vsel %vm516_vm3, %v6639_v50, -inf }
0x1f11   :  { %6650 = vmax.xlane.f32.xlu1 %v6649_v52 }
0x1f12   :  { %v6646_v53 = vsel %vm516_vm3, %v6638_v36, -inf }
0x1f13   :  { %6647 = vmax.xlane.f32.xlu0 %v6646_v53 }
0x1f92   :  { %v6645_v40 = vpop.xlane.xlu1 %6644 }
0x1f93   :  { %v6653_v33 = vsub.f32 %v6637_v12, %v6645_v40 }
0x1f94   :  { %v6642_v54 = vpop.xlane.xlu0 %6641 }
0x1f95   :  { %v6658_v55 = vmul.f32 1.442695, %v6653_v33  ;;  %v6652_v44 = vsub.f32 %v6636_v46, %v6642_v54 }
0x1f97   :  { %9856 = vpow2.f32 %v6658_v55  ;;  %v6656_v57 = vmul.f32 1.442695, %v6652_v44 }
0x1f99   :  { %9858 = vpow2.f32 %v6656_v57 }
0x1f9a   :  { %v6651_v58 = vpop.xlane.xlu1 %6650 }
0x1f9b   :  { %v6655_v59 = vsub.f32 %v6639_v50, %v6651_v58 }
0x1f9c   :  { %v6648_v38 = vpop.xlane.xlu0 %6647 }
0x1f9d   :  { %v6662_v61 = vmul.f32 1.442695, %v6655_v59  ;;  %v6654_v63 = vsub.f32 %v6638_v36, %v6648_v38 }
0x1f9f   :  { %9860 = vpow2.f32 %v6662_v61  ;;  %v6660_v0 = vmul.f32 1.442695, %v6654_v63 }
0x1fa1   :  { %9862 = vpow2.f32 %v6660_v0 }
0x1fa4   :  { %v9857_v2 = vpop.eup %9856 }
0x1fa5   :  { %v6667_v3 = vsel %vm516_vm3, %v9857_v2, 0.0 }
0x1fa6   :  { %v9859_v5 = vpop.eup %9858  ;;  %6668 = vadd.xlane.f32.xlu1 %v6667_v3 }
0x1fa7   :  { %v6664_v6 = vsel %vm516_vm3, %v9859_v5, 0.0 }
0x1fa8   :  { %6665 = vadd.xlane.f32.xlu0 %v6664_v6  ;;  %v8103_v6 = vld [vmem:[%s11728_s14 + $0x78] sm:$0xff] }
0x1fa9   :  { %9600 = vmatprep.subr.mxu0 %v8103_v6 }
0x1fac   :  { %v9861_v7 = vpop.eup %9860 }
0x1fad   :  { %v6673_v8 = vsel %vm516_vm3, %v9861_v7, 0.0 }
0x1fae   :  { %v9863_v9 = vpop.eup %9862  ;;  %6674 = vadd.xlane.f32.xlu1 %v6673_v8  ;;  %v8101_v8 = vld [vmem:[%s11728_s14 + $0x68] sm:$0xff] }
0x1faf   :  { %v6670_v26 = vsel %vm516_vm3, %v9863_v9, 0.0 }
0x1fb0   :  { %6671 = vadd.xlane.f32.xlu0 %v6670_v26  ;;  %v8099_v26 = vld [vmem:[%s11728_s14 + $0x58] sm:$0xff] }
0x202f   :  { %v6669_v27 = vpop.xlane.xlu1 %6668 }
0x2030   :  { %9864 = vrcp.f32 %v6669_v27  ;;  %v8098_v27 = vld [vmem:[%s11728_s14 + $0x50] sm:$0xff] }
0x2031   :  { %v6666_v28 = vpop.xlane.xlu0 %6665 }
0x2032   :  { %9866 = vrcp.f32 %v6666_v28  ;;  %v8097_v28 = vld [vmem:[%s11728_s14 + $0x48] sm:$0xff] }
0x2037   :  { %v6675_v29 = vpop.xlane.xlu1 %6674 }
0x2038   :  { %9868 = vrcp.f32 %v6675_v29  ;;  %v8096_v29 = vld [vmem:[%s11728_s14 + $0x40] sm:$0xff] }
0x2039   :  { %v6672_v31 = vpop.xlane.xlu0 %6671 }
0x203a   :  { %9870 = vrcp.f32 %v6672_v31  ;;  %v8125_v31 = vld [vmem:[%s11730_s16 + $0xf8] sm:$0xff] }
0x203d   :  { %v9865_v32 = vpop.eup %9864 }
0x203e   :  { %v6681_v42 = vmul.f32 %v9865_v32, %v9857_v2  ;;  %v8124_v32 = vld [vmem:[%s11730_s16 + $0xf0] sm:$0xff] }
0x203f   :  { %v9867_v35 = vpop.eup %9866 }
0x2040   :  { %v6680_v41 = vmul.f32 %v9867_v35, %v9859_v5  ;;  %v8123_v35 = vld [vmem:[%s11730_s16 + $0xe8] sm:$0xff] }
0x2042   :  { %9580 = vmatprep.mubr.msk.f32.mxu1 %vm516_vm3, %v6680_v41  ;;  %v8122_v41 = vld [vmem:[%s11730_s16 + $0xe0] sm:$0xff] }
0x2043   :  { %9581 = vmatmul.mubr.msk.f32.vlgmr.msra.gmra.mxu1 %vm516_vm3, %v6681_v42  ;;  %v8121_v42 = vld [vmem:[%s11730_s16 + $0xd8] sm:$0xff] }
0x2044   :  { %9591 = vmatpush3.msra.mxu1 %v8085_v1  ;;  %v8116_v1 = vld [vmem:[%s11730_s16 + $0xb0] sm:$0xff] }
0x2045   :  { %v9869_v43 = vpop.eup %9868  ;;  %9592 = vmatprep.subr.mxu1 %v8084_v20 }
0x2046   :  { %v6683_v45 = vmul.f32 %v9869_v43, %v9861_v7  ;;  %9593 = vmatpush3.msra.mxu1 %v8084_v20  ;;  %v8102_v7 = vld [vmem:[%s11728_s14 + $0x70] sm:$0xff]  ;;  %v8115_v20 = vld [vmem:[%s11730_s16 + $0xa8] sm:$0xff] }
0x2047   :  { %v9871_v22 = vpop.eup %9870  ;;  %9622 = vmatprep.subr.mxu1 %v8125_v31  ;;  %v8120_v43 = vld [vmem:[%s11730_s16 + $0xd0] sm:$0xff] }
0x2048   :  { %v6682_v15 = vmul.f32 %v9871_v22, %v9863_v9  ;;  %v8100_v9 = vld [vmem:[%s11728_s14 + $0x60] sm:$0xff]  ;;  %v8119_v22 = vld [vmem:[%s11730_s16 + $0xc8] sm:$0xff] }
0x204a   :  { %9587 = vmatprep.mubr.msk.f32.mxu0 %vm516_vm3, %v6682_v15  ;;  %v8118_v15 = vld [vmem:[%s11730_s16 + $0xc0] sm:$0xff] }
0x204b   :  { %9588 = vmatmul.mubr.msk.f32.vlgmr.msra.gmra.mxu0 %vm516_vm3, %v6683_v45  ;;  %v8117_v45 = vld [vmem:[%s11730_s16 + $0xb8] sm:$0xff] }
0x204c   :  { %9601 = vmatpush3.msra.mxu0 %v8103_v6 }
0x204d   :  { %9602 = vmatprep.subr.mxu0 %v8102_v7 }
0x204e   :  { %9603 = vmatpush3.msra.mxu0 %v8102_v7 }
0x204f   :  { %9604 = vmatprep.subr.mxu0 %v8101_v8 }
0x2050   :  { %9605 = vmatpush3.msra.mxu0 %v8101_v8 }
0x2051   :  { %9606 = vmatprep.subr.mxu0 %v8100_v9 }
0x2052   :  { %9607 = vmatpush3.msra.mxu0 %v8100_v9 }
0x2053   :  { %9608 = vmatprep.subr.mxu0 %v8099_v26 }
0x2054   :  { %9609 = vmatpush3.msra.mxu0 %v8099_v26  ;;  %v8127_v26 = vld [vmem:[%s11731_s17 + $0x1] ss:$0 sm:$0xff] }
0x2055   :  { %9610 = vmatprep.subr.mxu0 %v8098_v27 }
0x2056   :  { %9611 = vmatpush3.msra.mxu0 %v8098_v27 }
0x2057   :  { %9612 = vmatprep.subr.mxu0 %v8097_v28 }
0x2058   :  { %9613 = vmatpush3.msra.mxu0 %v8097_v28 }
0x2059   :  { %9614 = vmatprep.subr.mxu0 %v8096_v29 }
0x205a   :  { %9615 = vmatpush3.msra.mxu0 %v8096_v29 }
0x2103   :  { %v9582_v25 = vpop.f32.mrf.mxu1 }
0x2105   :  { %v6756_v56 = vpop.f32.mrf.mxu1 }
0x2106   :  { %9594 = vmatprep.mubr.msk.f32.mxu1 %vm516_vm3, %v6756_v56 }
0x2107   :  { %9595 = vmatmul.mubr.msk.f32.vlgmr.msra.gmra.mxu1 %vm516_vm3, %v9582_v25  ;;  %v8114_v25 = vld [vmem:[%s11730_s16 + $0xa0] sm:$0xff] }
0x2108   :  { %9623 = vmatpush3.msra.mxu1 %v8125_v31 }
0x2109   :  { %9624 = vmatprep.subr.mxu1 %v8124_v32 }
0x210a   :  { %9625 = vmatpush3.msra.mxu1 %v8124_v32 }
0x210b   :  { %v9589_v10 = vpop.f32.mrf.mxu0  ;;  %9626 = vmatprep.subr.mxu1 %v8123_v35 }
0x210c   :  { %9627 = vmatpush3.msra.mxu1 %v8123_v35 }
0x210d   :  { %v6837_v11 = vpop.f32.mrf.mxu0  ;;  %9628 = vmatprep.subr.mxu1 %v8122_v41 }
0x210e   :  { %9597 = vmatprep.mubr.msk.f32.mxu1 %vm516_vm3, %v6837_v11  ;;  %9629 = vmatpush3.msra.mxu1 %v8122_v41 }
0x210f   :  { %9598 = vmatmul.mubr.msk.f32.gmra.mxu1 %vm516_vm3, %v9589_v10  ;;  %9630 = vmatprep.subr.mxu1 %v8121_v42 }
0x2110   :  { %9631 = vmatpush3.msra.mxu1 %v8121_v42 }
0x2111   :  { %9632 = vmatprep.subr.mxu1 %v8120_v43 }
0x2112   :  { %9633 = vmatpush3.msra.mxu1 %v8120_v43 }
0x2113   :  { %9634 = vmatprep.subr.mxu1 %v8119_v22 }
0x2114   :  { %9635 = vmatpush3.msra.mxu1 %v8119_v22 }
0x2115   :  { %9636 = vmatprep.subr.mxu1 %v8118_v15 }
0x2116   :  { %9637 = vmatpush3.msra.mxu1 %v8118_v15 }
0x2117   :  { %9638 = vmatprep.subr.mxu1 %v8117_v45 }
0x2118   :  { %9639 = vmatpush3.msra.mxu1 %v8117_v45 }
0x2119   :  { %9640 = vmatprep.subr.mxu1 %v8116_v1 }
0x211a   :  { %9641 = vmatpush3.msra.mxu1 %v8116_v1 }
0x211b   :  { %9642 = vmatprep.subr.mxu1 %v8115_v20 }
0x211c   :  { %9643 = vmatpush3.msra.mxu1 %v8115_v20 }
0x211d   :  { %9644 = vmatprep.subr.mxu1 %v8114_v25 }
0x211e   :  { %9645 = vmatpush3.msra.mxu1 %v8114_v25 }
0x21c7   :  { %v9596_v19 = vpop.f32.mrf.mxu1 }
0x21c8   :  { %v6947_v60 = vadd.f32 %v9596_v19, %v11406_v62 }
0x21c9   :  { %v6927_v39 = vpop.f32.mrf.mxu1 }
0x21ca   :  { %v6959_v23 = vadd.f32 %v8091_v13, %v6947_v60  ;;  %v6946_v24 = vadd.f32 %v6927_v39, %v11408_v16 }
0x21cc   :  { %v6958_v14 = vadd.f32 %v8091_v13, %v6946_v24  ;;  %v6963_v12 = vadd.f32 %v6959_v23, %v10897_v37 }
0x21ce   :  { %v6973_v17 = vsel %vm218_vm2, %v6963_v12, 0.0  ;;  %v6962_v46 = vadd.f32 %v6958_v14, %v10895_v34 }
0x21cf   :  { %6974 = vadd.xlane.f32.xlu1 %v6973_v17  ;;  %v9599_v47 = vpop.f32.mrf.mxu1 }
0x21d0   :  { %v6949_v48 = vadd.f32 %v9599_v47, %v11414_v21  ;;  %v6970_v49 = vsel %vm218_vm2, %v6962_v46, 0.0 }
0x21d1   :  { %6971 = vadd.xlane.f32.xlu0 %v6970_v49  ;;  %v6937_v50 = vpop.f32.mrf.mxu1 }
0x21d2   :  { %v6961_v62 = vadd.f32 %v8091_v13, %v6949_v48  ;;  %v6948_v51 = vadd.f32 %v6937_v50, %v11416_v30  ;;  %v8094_v48 = vld [vmem:[%s11726_s12 + $0x1] ss:$0 sm:$0xff] }
0x21d4   :  { %v6960_v36 = vadd.f32 %v8091_v13, %v6948_v51  ;;  %v6965_v16 = vadd.f32 %v6961_v62, %v10923_v4  ;;  %v8095_v51 = vld [vmem:[%s11727_s13 + $0x1] ss:$0 sm:$0xff] }
0x21d6   :  { %v6979_v37 = vsel %vm218_vm2, %v6965_v16, 0.0  ;;  %v6964_v52 = vadd.f32 %v6960_v36, %v10918_v18 }
0x21d7   :  { %6980 = vadd.xlane.f32.xlu1 %v6979_v37 }
0x21d8   :  { %v6976_v34 = vsel %vm218_vm2, %v6964_v52, 0.0 }
0x21d9   :  { %6977 = vadd.xlane.f32.xlu0 %v6976_v34 }
0x2258   :  { %v6975_v53 = vpop.xlane.xlu1 %6974 }
0x2259   :  { %v6983_v21 = vmul.f32 0.015625, %v6975_v53 }
0x225a   :  { %v6972_v40 = vpop.xlane.xlu0 %6971 }
0x225b   :  { %v11469_v33 = vsub.f32 %v6963_v12, %v6983_v21  ;;  %v6982_v54 = vmul.f32 0.015625, %v6972_v40 }
0x225d   :  { %v11471_v55 = vsub.f32 %v6962_v46, %v6982_v54  ;;  %v6991_v30 = vmul.f32 %v11469_v33, %v11469_v33 }
0x225f   :  { %v6997_v4 = vsel %vm218_vm2, %v6991_v30, 0.0  ;;  %v6990_v18 = vmul.f32 %v11471_v55, %v11471_v55  ;;  %v8113_v30 = vld [vmem:[%s11730_s16 + $0x98] sm:$0xff] }
0x2260   :  { %6998 = vadd.xlane.f32.xlu1 %v6997_v4  ;;  %v6981_v44 = vpop.xlane.xlu1 %6980  ;;  %9646 = vmatprep.subr.mxu1 %v8113_v30  ;;  %v8112_v4 = vld [vmem:[%s11730_s16 + $0x90] sm:$0xff] }
0x2261   :  { %v6985_v57 = vmul.f32 0.015625, %v6981_v44  ;;  %v6994_v58 = vsel %vm218_vm2, %v6990_v18, 0.0  ;;  %9647 = vmatpush3.msra.mxu1 %v8113_v30  ;;  %v8111_v18 = vld [vmem:[%s11730_s16 + $0x88] sm:$0xff]  ;;  %v8110_v44 = vld [vmem:[%s11730_s16 + $0x80] sm:$0xff] }
0x2262   :  { %6995 = vadd.xlane.f32.xlu0 %v6994_v58  ;;  %v6978_v59 = vpop.xlane.xlu0 %6977  ;;  %9648 = vmatprep.subr.mxu1 %v8112_v4 }
0x2263   :  { %v11479_v38 = vsub.f32 %v6965_v16, %v6985_v57  ;;  %v6984_v61 = vmul.f32 0.015625, %v6978_v59  ;;  %9649 = vmatpush3.msra.mxu1 %v8112_v4  ;;  %v8105_v57 = vld [vmem:[%s11729_s15 + $0x1] ss:$0 sm:$0xff] }
0x2264   :  { %9650 = vmatprep.subr.mxu1 %v8111_v18 }
0x2265   :  { %v11481_v63 = vsub.f32 %v6964_v52, %v6984_v61  ;;  %v6993_v0 = vmul.f32 %v11479_v38, %v11479_v38  ;;  %9651 = vmatpush3.msra.mxu1 %v8111_v18 }
0x2266   :  { %9652 = vmatprep.subr.mxu1 %v8110_v44 }
0x2267   :  { %v7003_v2 = vsel %vm218_vm2, %v6993_v0, 0.0  ;;  %v6992_v3 = vmul.f32 %v11481_v63, %v11481_v63  ;;  %9653 = vmatpush3.msra.mxu1 %v8110_v44 }
0x2268   :  { %7004 = vadd.xlane.f32.xlu1 %v7003_v2 }
0x2269   :  { %v7000_v5 = vsel %vm218_vm2, %v6992_v3, 0.0 }
0x226a   :  { %7001 = vadd.xlane.f32.xlu0 %v7000_v5 }
0x22e9   :  { %v6999_v56 = vpop.xlane.xlu1 %6998 }
0x22ea   :  { %v7007_v10 = vmul.f32 0.015625, %v6999_v56 }
0x22eb   :  { %v6996_v11 = vpop.xlane.xlu0 %6995 }
0x22ec   :  { %v7011_v19 = vadd.f32 1e-05, %v7007_v10  ;;  %v7006_v13 = vmul.f32 0.015625, %v6996_v11 }
0x22ee   :  { %9872 = vrsqrt.f32 %v7011_v19  ;;  %v7010_v60 = vadd.f32 1e-05, %v7006_v13 }
0x22f0   :  { %9874 = vrsqrt.f32 %v7010_v60 }
0x22f1   :  { %v7005_v39 = vpop.xlane.xlu1 %7004 }
0x22f2   :  { %v7009_v23 = vmul.f32 0.015625, %v7005_v39 }
0x22f3   :  { %v7002_v24 = vpop.xlane.xlu0 %7001 }
0x22f4   :  { %v7013_v14 = vadd.f32 1e-05, %v7009_v23  ;;  %v7008_v12 = vmul.f32 0.015625, %v7002_v24 }
0x22f6   :  { %9876 = vrsqrt.f32 %v7013_v14  ;;  %v7012_v17 = vadd.f32 1e-05, %v7008_v12 }
0x22f8   :  { %9878 = vrsqrt.f32 %v7012_v17 }
0x22fb   :  { %v9873_v46 = vpop.eup %9872 }
0x22fc   :  { %v7019_v47 = vmul.f32 %v9873_v46, %v11469_v33 }
0x22fd   :  { %v9875_v49 = vpop.eup %9874 }
0x22fe   :  { %v7018_v50 = vmul.f32 %v9875_v49, %v11471_v55  ;;  %v7029_v62 = vmul.f32 %v8094_v48, %v7019_v47 }
0x2300   :  { %v7028_v36 = vmul.f32 %v8094_v48, %v7018_v50  ;;  %v7039_v52 = vadd.f32 %v8095_v51, %v7029_v62 }
0x2302   :  { %v7038_v16 = vadd.f32 %v8095_v51, %v7028_v36 }
0x2303   :  { %v9877_v37 = vpop.eup %9876 }
0x2304   :  { %9616 = vmatprep.mubr.msk.f32.mxu0 %vm218_vm2, %v7038_v16  ;;  %v7021_v34 = vmul.f32 %v9877_v37, %v11479_v38 }
0x2305   :  { %v9879_v53 = vpop.eup %9878  ;;  %9617 = vmatmul.mubr.msk.f32.vlgmr.msra.gmra.mxu0 %vm218_vm2, %v7039_v52 }
0x2306   :  { %v7020_v21 = vmul.f32 %v9879_v53, %v11481_v63  ;;  %v7031_v40 = vmul.f32 %v8094_v48, %v7021_v34 }
0x2308   :  { %v7030_v33 = vmul.f32 %v8094_v48, %v7020_v21  ;;  %v7041_v55 = vadd.f32 %v8095_v51, %v7031_v40 }
0x230a   :  { %v7040_v54 = vadd.f32 %v8095_v51, %v7030_v33 }
0x230c   :  { %9619 = vmatprep.mubr.msk.f32.mxu0 %vm218_vm2, %v7040_v54 }
0x230d   :  { %9620 = vmatmul.mubr.msk.f32.gmra.mxu0 %vm218_vm2, %v7041_v55 }
0x23c5   :  { %v9618_v58 = vpop.f32.mrf.mxu0 }
0x23c6   :  { %v7143_v59 = vadd.f32 %v9618_v58, %v8105_v57 }
0x23c7   :  { %v7137_v38 = vpop.f32.mrf.mxu0 }
0x23c8   :  { %v7138_v61 = vadd.f32 %v8105_v57, %v7137_v38  ;;  %v7157_v0 = vmax.f32 %v7143_v59, 0.0  ;;  %v8131_v38 = vld [vmem:[%s11733_s19 + $0x1] ss:$0 sm:$0xff] }
0x23ca   :  { %v7156_v63 = vmax.f32 %v7138_v61, 0.0 }
0x23cc   :  { %9654 = vmatprep.mubr.f32.mxu1 %v7156_v63 }
0x23cd   :  { %v9621_v2 = vpop.f32.mrf.mxu0  ;;  %9655 = vmatmul.mubr.f32.vlgmr.msra.gmra.mxu1 %v7157_v0 }
0x23ce   :  { %v7153_v3 = vadd.f32 %v9621_v2, %v8105_v57 }
0x23cf   :  { %v7147_v5 = vpop.f32.mrf.mxu0 }
0x23d0   :  { %v7148_v6 = vadd.f32 %v8105_v57, %v7147_v5  ;;  %v7159_v8 = vmax.f32 %v7153_v3, 0.0  ;;  %v8130_v57 = vld [vmem:[%s11732_s18 + $0x1] ss:$0 sm:$0xff]  ;;  %s9912_s18 = smov [#allocation2]  }
0x23d1   :  { %s7614_s19 = sshll.u32 %s9912_s18, 4  ;;  %s7615_s19 = int_to_ptr.vmem [resolvable:$true] %s7614_s19 }
0x23d2   :  { %v7158_v7 = vmax.f32 %v7148_v6, 0.0  ;;  %p9893_p1 = scmp.lt.s32.totalorder %s7615_s19, %s7615_s19 }
0x23d4   :  { %9657 = vmatprep.mubr.f32.mxu1 %v7158_v7 }
0x23d5   :  { %9658 = vmatmul.mubr.f32.gmra.mxu1 %v7159_v8 }
0x248d   :  { %v9656_v9 = vpop.f32.mrf.mxu1 }
0x248e   :  { %v7257_v29 = vadd.f32 %v9656_v9, %v8127_v26 }
0x248f   :  { %v7251_v27 = vpop.f32.mrf.mxu1 }
0x2490   :  { %v7252_v35 = vadd.f32 %v8127_v26, %v7251_v27  ;;  %v7271_v15 = vadd.f32 %v7257_v29, %v7039_v52  ;;  %v7350_v29 = vld [vmem:[%s11738_s24] sm:$0x3] }
0x2492   :  { %v7270_v1 = vadd.f32 %v7252_v35, %v7038_v16  ;;  %v7281_v20 = vsel %vm218_vm2, %v7271_v15, 0.0  ;;  %v9910_v16 = vmov 0.0   ;;  %v7430_v35 = vld [vmem:[%s11734_s20 + $0x28] sm:$0xff] }
0x2493   :  { %9660 = vmatprep.subr.mxu0 %v9910_v16  ;;  %9690 = vmatprep.subr.mxu1 %v9910_v16 }
0x2494   :  { %v7278_v25 = vsel %vm218_vm2, %v7270_v1, 0.0  ;;  %9668 = vmatprep.mubr.msk.f32.mxu0 %vm9911_vm4, %v9910_v16  ;;  %9722 = vmatprep.mubr.msk.f32.mxu1 %vm9911_vm4, %v9910_v16 }
0x2495   :  { %v9659_v28 = vpop.f32.mrf.mxu1 }
0x2496   :  { %v7267_v31 = vadd.f32 %v9659_v28, %v8127_v26 }
0x2497   :  { %v7261_v32 = vpop.f32.mrf.mxu1 }
0x2498   :  { %v7262_v41 = vadd.f32 %v8127_v26, %v7261_v32  ;;  %v7273_v42 = vadd.f32 %v7267_v31, %v7041_v55  ;;  %v7432_v31 = vld [vmem:[%s11734_s20 + $0x38] sm:$0xff]  ;;  %v7431_v32 = vld [vmem:[%s11734_s20 + $0x30] sm:$0xff] }
0x249a   :  { %v7287_v43 = vsel %vm218_vm2, %v7273_v42, 0.0  ;;  %v7272_v22 = vadd.f32 %v7262_v41, %v7040_v54  ;;  %v7429_v41 = vld [vmem:[%s11734_s20 + $0x20] sm:$0xff] }
0x249b   :  { %7288 = vadd.xlane.f32.xlu0 %v7287_v43  ;;  %v7427_v43 = vld [vmem:[%s11734_s20 + $0x10] sm:$0xff] }
0x249c   :  { %v7284_v45 = vsel %vm218_vm2, %v7272_v22, 0.0 }
0x249d   :  { %7285 = vadd.xlane.f32.xlu1 %v7284_v45  ;;  %v7529_v45 = vld [vmem:[%s11736_s22 + $0x78] sm:$0xff] }
0x249e   :  { %9691 = vmatpush3.msra.mxu1 %v7529_v45 }
0x249f   :  { %7282 = vadd.xlane.f32.xlu0 %v7281_v20  ;;  %9692 = vmatprep.subr.mxu1 %v9910_v16  ;;  %v7527_v20 = vld [vmem:[%s11736_s22 + $0x68] sm:$0xff] }
0x24a1   :  { %7279 = vadd.xlane.f32.xlu1 %v7278_v25  ;;  %v7526_v25 = vld [vmem:[%s11736_s22 + $0x60] sm:$0xff] }
0x2524   :  { %v7289_v56 = vpop.xlane.xlu0 %7288 }
0x2525   :  { %v7293_v10 = vmul.f32 0.015625, %v7289_v56  ;;  %v7525_v56 = vld [vmem:[%s11736_s22 + $0x58] sm:$0xff] }
0x2526   :  { %v7286_v11 = vpop.xlane.xlu1 %7285 }
0x2527   :  { %v7297_v19 = vsub.f32 %v7273_v42, %v7293_v10  ;;  %v7292_v13 = vmul.f32 0.015625, %v7286_v11  ;;  %v7428_v42 = vld [vmem:[%s11734_s20 + $0x18] sm:$0xff]  ;;  %v7524_v10 = vld [vmem:[%s11736_s22 + $0x50] sm:$0xff]  ;;  %v7523_v11 = vld [vmem:[%s11736_s22 + $0x48] sm:$0xff] }
0x2528   :  { %v7283_v60 = vpop.xlane.xlu0 %7282 }
0x2529   :  { %v7296_v39 = vsub.f32 %v7272_v22, %v7292_v13  ;;  %v7291_v23 = vmul.f32 0.015625, %v7283_v60  ;;  %v7301_v24 = vmul.f32 %v7297_v19, %v7297_v19  ;;  %v7426_v22 = vld [vmem:[%s11734_s20 + $0x8] sm:$0xff]  ;;  %v7521_v13 = vld [vmem:[%s11736_s22 + $0x38] sm:$0xff]  ;;  %v7520_v60 = vld [vmem:[%s11736_s22 + $0x30] sm:$0xff] }
0x252a   :  { %v7280_v14 = vpop.xlane.xlu1 %7279 }
0x252b   :  { %v7295_v12 = vsub.f32 %v7271_v15, %v7291_v23  ;;  %v7290_v17 = vmul.f32 0.015625, %v7280_v14  ;;  %v7311_v46 = vsel %vm218_vm2, %v7301_v24, 0.0  ;;  %v7300_v47 = vmul.f32 %v7296_v39, %v7296_v39  ;;  %v7425_v15 = vld [vmem:[%s11734_s20] sm:$0xff]  ;;  %v7517_v24 = vld [vmem:[%s11736_s22 + $0x18] sm:$0xff] }
0x252c   :  { %7312 = vadd.xlane.f32.xlu0 %v7311_v46  ;;  %v7518_v23 = vld [vmem:[%s11736_s22 + $0x20] sm:$0xff]  ;;  %v7515_v46 = vld [vmem:[%s11736_s22 + $0x8] sm:$0xff] }
0x252d   :  { %v7294_v48 = vsub.f32 %v7270_v1, %v7290_v17  ;;  %v7308_v49 = vsel %vm218_vm2, %v7300_v47, 0.0  ;;  %v7299_v50 = vmul.f32 %v7295_v12, %v7295_v12  ;;  %v7528_v1 = vld [vmem:[%s11736_s22 + $0x70] sm:$0xff]  ;;  %v7514_v47 = vld [vmem:[%s11736_s22] sm:$0xff] }
0x252e   :  { %7309 = vadd.xlane.f32.xlu1 %v7308_v49  ;;  %9693 = vmatpush3.msra.mxu1 %v7528_v1  ;;  %v7516_v17 = vld [vmem:[%s11736_s22 + $0x10] sm:$0xff] }
0x252f   :  { %v7305_v62 = vsel %vm218_vm2, %v7299_v50, 0.0  ;;  %v7298_v51 = vmul.f32 %v7294_v48, %v7294_v48  ;;  %9694 = vmatprep.subr.mxu1 %v9910_v16 }
0x2530   :  { %7306 = vadd.xlane.f32.xlu0 %v7305_v62  ;;  %9695 = vmatpush3.msra.mxu1 %v7527_v20 }
0x2531   :  { %v7302_v36 = vsel %vm218_vm2, %v7298_v51, 0.0  ;;  %9696 = vmatprep.subr.mxu1 %v9910_v16 }
0x2532   :  { %7303 = vadd.xlane.f32.xlu1 %v7302_v36  ;;  %9697 = vmatpush3.msra.mxu1 %v7526_v25  ;;  %v8135_v36 = vld [vmem:[%s11737_s23] ss:$0 sm:$0xff] }
0x2533   :  { %9698 = vmatprep.subr.mxu1 %v9910_v16 }
0x2534   :  { %9699 = vmatpush3.msra.mxu1 %v7525_v56 }
0x2535   :  { %9700 = vmatprep.subr.mxu1 %v9910_v16 }
0x2536   :  { %9701 = vmatpush3.msra.mxu1 %v7524_v10 }
0x2537   :  { %9702 = vmatprep.subr.mxu1 %v9910_v16 }
0x2538   :  { %9703 = vmatpush3.msra.mxu1 %v7523_v11 }
0x2539   :  { %9704 = vmatprep.subr.mxu1 %v9910_v16 }
0x25b5   :  { %v7313_v37 = vpop.xlane.xlu0 %7312 }
0x25b6   :  { %v7317_v52 = vmul.f32 0.015625, %v7313_v37 }
0x25b7   :  { %v7310_v34 = vpop.xlane.xlu1 %7309 }
0x25b8   :  { %v7321_v53 = vadd.f32 1e-05, %v7317_v52  ;;  %v7316_v21 = vmul.f32 0.015625, %v7310_v34 }
0x25b9   :  { %v7307_v40 = vpop.xlane.xlu0 %7306 }
0x25ba   :  { %9880 = vrsqrt.f32 %v7321_v53  ;;  %v7320_v33 = vadd.f32 1e-05, %v7316_v21  ;;  %v7315_v54 = vmul.f32 0.015625, %v7307_v40 }
0x25bb   :  { %v7304_v55 = vpop.xlane.xlu1 %7303 }
0x25bc   :  { %9882 = vrsqrt.f32 %v7320_v33  ;;  %v7319_v30 = vadd.f32 1e-05, %v7315_v54  ;;  %v7314_v4 = vmul.f32 0.015625, %v7304_v55 }
0x25be   :  { %9884 = vrsqrt.f32 %v7319_v30  ;;  %v7318_v18 = vadd.f32 1e-05, %v7314_v4 }
0x25c0   :  { %9886 = vrsqrt.f32 %v7318_v18 }
0x25c7   :  { %v9881_v44 = vpop.eup %9880 }
0x25c8   :  { %v7329_v58 = vmul.f32 %v9881_v44, %v7297_v19  ;;  %v7522_v19 = vld [vmem:[%s11736_s22 + $0x40] sm:$0xff] }
0x25c9   :  { %v9883_v59 = vpop.eup %9882  ;;  %9705 = vmatpush3.msra.mxu1 %v7522_v19 }
0x25ca   :  { %v7339_v61 = vmul.f32 %v8130_v57, %v7329_v58  ;;  %v7328_v63 = vmul.f32 %v9883_v59, %v7296_v39  ;;  %9706 = vmatprep.subr.mxu1 %v9910_v16  ;;  %v7519_v39 = vld [vmem:[%s11736_s22 + $0x28] sm:$0xff]  ;;  %s9888_s22 = scalar_lea.vmem %s7615_s19, 32 }
0x25cb   :  { %v9885_v0 = vpop.eup %9884  ;;  %9707 = vmatpush3.msra.mxu1 %v7521_v13  ;;  %p9889_p0 = scmp.ne.s32.totalorder %s7615_s19, %s9888_s22  ;;  %p9894_p2 = scmp.lt.s32.totalorder %s9888_s22, %s9888_s22 }
0x25cc   :  { %v7349_v2 = vadd.f32 %v8131_v38, %v7339_v61  ;;  %v7338_v3 = vmul.f32 %v8130_v57, %v7328_v63  ;;  %v7327_v5 = vmul.f32 %v9885_v0, %v7295_v12  ;;  %9708 = vmatprep.subr.mxu1 %v9910_v16 }
0x25cd   :  { %v9887_v6 = vpop.eup %9886  ;;  %9709 = vmatpush3.msra.mxu1 %v7520_v60  ;;  %p9895_p3 = por %p9894_p2, %p9893_p1 }
0x25ce   :  { %9661 = vmatpush3.msra.mxu0 %v7349_v2  ;;  %v7348_v7 = vadd.f32 %v8131_v38, %v7338_v3  ;;  %v7337_v8 = vmul.f32 %v8130_v57, %v7327_v5  ;;  %v7326_v9 = vmul.f32 %v9887_v6, %v7294_v48  ;;  %9710 = vmatprep.subr.mxu1 %v9910_v16  ;;  %v8133_v48 = vld [vmem:[%s11735_s21] ss:$0 sm:$0xff] }
0x25cf   :  { %9662 = vmatprep.subr.mxu0 %v9910_v16  ;;  %9711 = vmatpush3.msra.mxu1 %v7519_v39  ;;  %p9896_p4 = pnand %p9895_p3, %p9889_p0 }
0x25d0   :  { %9663 = vmatpush3.msra.mxu0 %v7348_v7  ;;  %v7347_v26 = vadd.f32 %v8131_v38, %v7337_v8  ;;  %v7336_v27 = vmul.f32 %v8130_v57, %v7326_v9  ;;  %9712 = vmatprep.subr.mxu1 %v9910_v16 }
0x25d1   :  { %9664 = vmatprep.subr.mxu0 %v9910_v16  ;;  %9713 = vmatpush3.msra.mxu1 %v7518_v23 }
0x25d2   :  { %9665 = vmatpush3.msra.mxu0 %v7347_v26  ;;  %v7346_v28 = vadd.f32 %v8131_v38, %v7336_v27  ;;  %9714 = vmatprep.subr.mxu1 %v9910_v16 }
0x25d3   :  { %9666 = vmatprep.subr.mxu0 %v9910_v16  ;;  %9715 = vmatpush3.msra.mxu1 %v7517_v24 }
0x25d4   :  { %9667 = vmatpush3.msra.mxu0 %v7346_v28  ;;  %9716 = vmatprep.subr.mxu1 %v9910_v16 }
0x25d5   :  { %9669 = vmatmul.mubr.msk.f32.vlgmr.msra.gmra.mxu0 %vm7351_vm5, %v7350_v29  ;;  %9671 = vmatprep.subr.mxu0 %v9910_v16 }
0x25d6   :  { %9672 = vmatpush3.msra.mxu0 %v7432_v31  ;;  %9687 = vmatprep.mubr.msk.f32.mxu0 %vm9911_vm4, %v9910_v16 }
0x25d7   :  { %9673 = vmatprep.subr.mxu0 %v9910_v16  ;;  %9717 = vmatpush3.msra.mxu1 %v7516_v17 }
0x25d8   :  { %9674 = vmatpush3.msra.mxu0 %v7431_v32  ;;  %9718 = vmatprep.subr.mxu1 %v9910_v16 }
0x25d9   :  { %9675 = vmatprep.subr.mxu0 %v9910_v16  ;;  %9719 = vmatpush3.msra.mxu1 %v7515_v46 }
0x25da   :  { %9676 = vmatpush3.msra.mxu0 %v7430_v35  ;;  %9720 = vmatprep.subr.mxu1 %v9910_v16 }
0x25db   :  { %9677 = vmatprep.subr.mxu0 %v9910_v16  ;;  %9721 = vmatpush3.msra.mxu1 %v7514_v47 }
0x25dc   :  { %9678 = vmatpush3.msra.mxu0 %v7429_v41 }
0x25dd   :  { %9679 = vmatprep.subr.mxu0 %v9910_v16 }
0x25de   :  { %9680 = vmatpush3.msra.mxu0 %v7428_v42 }
0x25df   :  { %9681 = vmatprep.subr.mxu0 %v9910_v16 }
0x25e0   :  { %9682 = vmatpush3.msra.mxu0 %v7427_v43 }
0x25e1   :  { %9683 = vmatprep.subr.mxu0 %v9910_v16 }
0x25e2   :  { %9684 = vmatpush3.msra.mxu0 %v7426_v22 }
0x25e3   :  { %9685 = vmatprep.subr.mxu0 %v9910_v16 }
0x25e4   :  { %9686 = vmatpush3.msra.mxu0 %v7425_v15 }
0x2695   :  { %v7421_v14 = vpop.f32.mrf.mxu0 }
0x2696   :  { %9688 = vmatmul.mubr.msk.f32.vlgmr.msra.gmra.mxu0 %vm218_vm2, %v7421_v14 }
0x2697   :  { %v9670_v12 = vpop.f32.mrf.mxu0 }
0x2756   :  { %v7509_v49 = vpop.f32.mrf.mxu0 }
0x2757   :  { %v7510_v50 = vadd.f32 %v8133_v48, %v7509_v49 }
0x2758   :  { %v9689_v62 = vpop.f32.mrf.mxu0 }
0x2759   :  { %v7513_v51 = vmax.f32 %v7510_v50, 0.0 }
0x275b   :  { %9723 = vmatmul.mubr.f32.vlgmr.msra.gmra.mxu1 %v7513_v51 }
0x281b   :  { %v7603_v37 = vpop.f32.mrf.mxu1 }
0x281c   :  { %v7604_v52 = vadd.f32 %v8135_v36, %v7603_v37 }
0x281d   :  { %v9724_v16 = vpop.f32.mrf.mxu1 }
0x281e   :  { %7607 = vst [vmem:[#allocation2] sm:$0x3] %v7604_v52 }
0x281f   :  { %9899 = shalt.err (!%p9896_p4)
}
0x2820   :  { %7617 = dma.vmem_to_hbm [thread:$0]  %s7615_s19, 32, %s11739_s25, [#allocation3]  }
0x2821   :  { %9908 = dma.done.wait [#allocation3], 32  }
0x2822   :  { %9909 = vsyncadd [#allocation3], 4294967264 }
0x2823   :  { %7621 = vsyncpa [#allocation3], 1 }

</bundles_post_ra>
